<compile_context>
chip_gen: v6e
topology: v6e:2x2x1
jax: 0.10.0
libtpu: 0.0.40
codegen_flags: <defaults>
</compile_context>

<pallas_src>
import jax
import jax.numpy as jnp
from jax import lax
from jax.experimental import pallas as pl
from jax.experimental.pallas import tpu as pltpu


def _round_up(x, m):
    return (x + m - 1) // m * m


# ----------------------------- Pallas kernel --------------------------------

def atdkt_kernel(xemb_ref, qidx_ref,
                 w_ih_ref, w_hh_ref, b_ref,
                 w_heads_ref, b_heads_ref,
                 qc_ref, pv_ref,
                 xproj_scr, hall_scr, h_scr, c_scr):
    """ATDKT forward for one batch block.

    xemb_ref   : (T, Bt, Ep)     summed embeddings (time-major, padded)
    qidx_ref   : (T, Bt, 1)      shifted skill ids (int32)
    w_ih_ref   : (Ep, 4*Hp)      gate order (i, f, g, o), per-gate padded
    w_hh_ref   : (Hp, 4*Hp)
    b_ref      : (1, 4*Hp)       b_ih + b_hh
    w_heads_ref: (Hp, 2*Sp+128)  [w_out | w_qc | w_his(padded to 128)]
    b_heads_ref: (1, 2*Sp+128)
    qc_ref     : (T, Bt, Sp)     qclassifier logits
    pv_ref     : (T, Bt, 128)    lane 0 = pred, lane 1 = his (lane-dense pack)
    scratch    : xproj (T*Bt, 4*Hp), hall (T*Bt, Hp), h/c (Bt, Hp)
    """
    T, Bt, Ep = xemb_ref.shape
    Hp = h_scr.shape[1]
    Sp = qc_ref.shape[2]
    TB = T * Bt

    # ---- Phase 1: batched input projection for all timesteps (one MXU matmul)
    x_flat = xemb_ref[...].reshape(TB, Ep)
    xproj_scr[...] = (
        jnp.dot(x_flat, w_ih_ref[...], preferred_element_type=jnp.float32)
        + b_ref[...])

    # ---- Phase 2: LSTM recurrence (only h @ w_hh on the serial chain)
    h_scr[...] = jnp.zeros_like(h_scr)
    c_scr[...] = jnp.zeros_like(c_scr)

    def step(t, carry):
        row = pl.multiple_of(t * Bt, Bt)
        gates = (xproj_scr[pl.ds(row, Bt), :]
                 + jnp.dot(h_scr[...], w_hh_ref[...],
                           preferred_element_type=jnp.float32))
        i_g = jax.nn.sigmoid(gates[:, 0 * Hp:1 * Hp])
        f_g = jax.nn.sigmoid(gates[:, 1 * Hp:2 * Hp])
        g_g = jnp.tanh(gates[:, 2 * Hp:3 * Hp])
        o_g = jax.nn.sigmoid(gates[:, 3 * Hp:4 * Hp])
        c = f_g * c_scr[...] + i_g * g_g
        h = o_g * jnp.tanh(c)
        c_scr[...] = c
        h_scr[...] = h
        hall_scr[pl.ds(row, Bt), :] = h
        return carry

    lax.fori_loop(0, T, step, 0, unroll=True)

    # ---- Phase 3: all three output heads as one batched matmul over T*Bt rows
    h_all = hall_scr[...]
    logits = (jnp.dot(h_all, w_heads_ref[...],
                      preferred_element_type=jnp.float32)
              + b_heads_ref[...])                       # (TB, 2*Sp+128)

    # out_layer -> sigmoid -> gather at qshft via iota mask (no dense one-hot)
    y = jax.nn.sigmoid(logits[:, 0 * Sp:1 * Sp])        # (TB, Sp)
    qidx = qidx_ref[...].reshape(TB, 1)
    skill_iota = lax.broadcasted_iota(jnp.int32, (TB, Sp), 1)
    pred = jnp.sum(jnp.where(skill_iota == qidx, y, 0.0),
                   axis=-1, keepdims=True)              # (TB, 1)

    # qclassifier (raw logits)
    qc = logits[:, 1 * Sp:2 * Sp]                       # (TB, Sp)

    # hisclassifier -> sigmoid (real head is lane 0 of the padded block)
    his_slab = jax.nn.sigmoid(logits[:, 2 * Sp:])       # (TB, 128)
    lane = lax.broadcasted_iota(jnp.int32, his_slab.shape, 1)
    his = jnp.sum(jnp.where(lane == 0, his_slab, 0.0),
                  axis=-1, keepdims=True)               # (TB, 1)

    qc_ref[...] = qc.reshape(T, Bt, Sp)
    pv = jnp.where(lane == 0, pred, 0.0) + jnp.where(lane == 1, his, 0.0)
    pv_ref[...] = pv.reshape(T, Bt, 128)


# ------------------------------- wrapper -------------------------------------

def _pad_gate_cols(w, H, Hp):
    """(in, 4H) PyTorch-gate-ordered -> (in, 4*Hp), zero pad inside each gate."""
    parts = []
    for k in range(4):
        blk = w[:, k * H:(k + 1) * H]
        parts.append(jnp.pad(blk, ((0, 0), (0, Hp - H))))
    return jnp.concatenate(parts, axis=1)


def atdkt_forward(params, skills, responses, questions, *, block_b=8):
    """Mirrors ATDKT.forward (eval mode). skills/responses/questions: (B, L) int."""
    S = params['num_skills']
    E = params['w_ih'].shape[0]
    H = params['w_hh'].shape[0]
    B, L = skills.shape
    T = L - 1

    Ep = _round_up(E, 128)
    Hp = _round_up(H, 128)
    Sp = _round_up(S, 128)
    Bp = _round_up(max(B, block_b), block_b)

    # Glue: gather embeddings directly time-major (transpose the small int
    # index arrays, not the big embedding tensor).
    q_t = skills[:, :-1].T                                      # (T, B)
    r_t = responses[:, :-1].T
    qs_t = questions[:, :-1].T
    x_t = q_t + S * (r_t > 0).astype(jnp.int32)
    xemb_t = (params['interaction_emb'][x_t]
              + params['question_emb'][qs_t]
              + params['concept_emb'][q_t]).astype(jnp.float32)  # (T, B, E)
    xemb_t = jnp.pad(xemb_t, ((0, 0), (0, Bp - B), (0, Ep - E)))

    qidx_t = jnp.pad(skills[:, 1:].T.astype(jnp.int32),
                     ((0, 0), (0, Bp - B)))[:, :, None]          # (T, Bp, 1)

    # Pad weights to lane tiles; zero pads keep the math exact.
    w_ih = jnp.pad(_pad_gate_cols(params['w_ih'], H, Hp), ((0, Ep - E), (0, 0)))
    w_hh = jnp.pad(_pad_gate_cols(params['w_hh'], H, Hp), ((0, Hp - H), (0, 0)))
    b = _pad_gate_cols(params['b'], H, Hp)

    w_out = jnp.pad(params['w_out'], ((0, Hp - H), (0, Sp - S)))
    b_out = jnp.pad(params['b_out'], ((0, 0), (0, Sp - S)))
    w_qc = jnp.pad(params['w_qc'], ((0, Hp - H), (0, Sp - S)))
    b_qc = jnp.pad(params['b_qc'], ((0, 0), (0, Sp - S)))
    w_his = jnp.pad(params['w_his'], ((0, Hp - H), (0, 127)))
    b_his = jnp.pad(params['b_his'], ((0, 0), (0, 127)))
    w_heads = jnp.concatenate([w_out, w_qc, w_his], axis=1)     # (Hp, 2*Sp+128)
    b_heads = jnp.concatenate([b_out, b_qc, b_his], axis=1)     # (1, 2*Sp+128)
    Wt = w_heads.shape[1]

    nb = Bp // block_b
    grid_spec = pltpu.PrefetchScalarGridSpec(
        num_scalar_prefetch=0,
        grid=(nb,),                                             # batch blocks
        in_specs=[
            pl.BlockSpec((T, block_b, Ep), lambda i: (0, i, 0)),   # xemb
            pl.BlockSpec((T, block_b, 1), lambda i: (0, i, 0)),    # qshft ids
            pl.BlockSpec((Ep, 4 * Hp), lambda i: (0, 0)),          # w_ih
            pl.BlockSpec((Hp, 4 * Hp), lambda i: (0, 0)),          # w_hh
            pl.BlockSpec((1, 4 * Hp), lambda i: (0, 0)),           # b
            pl.BlockSpec((Hp, Wt), lambda i: (0, 0)),              # w_heads
            pl.BlockSpec((1, Wt), lambda i: (0, 0)),               # b_heads
        ],
        out_specs=(
            pl.BlockSpec((T, block_b, Sp), lambda i: (0, i, 0)),   # qc logits
            pl.BlockSpec((T, block_b, 128), lambda i: (0, i, 0)),  # pred/his
        ),
        scratch_shapes=[
            pltpu.VMEM((T * block_b, 4 * Hp), jnp.float32),        # xproj
            pltpu.VMEM((T * block_b, Hp), jnp.float32),            # h slab
            pltpu.VMEM((block_b, Hp), jnp.float32),                # h state
            pltpu.VMEM((block_b, Hp), jnp.float32),                # c state
        ],
    )

    qc_out, pv_out = pl.pallas_call(
        atdkt_kernel,
        out_shape=(jax.ShapeDtypeStruct((T, Bp, Sp), jnp.float32),
                   jax.ShapeDtypeStruct((T, Bp, 128), jnp.float32)),
        grid_spec=grid_spec,
        compiler_params=pltpu.CompilerParams(
            dimension_semantics=("parallel",),
            vmem_limit_bytes=64 * 1024 * 1024),
    )(xemb_t, qidx_t, w_ih, w_hh, b, w_heads, b_heads)

    pred = pv_out[:, :B, 0].T                                   # (B, T)
    his_preds = pv_out[:, :B, 1].T[..., None]                   # (B, T, 1)
    qc_preds = jnp.transpose(qc_out[:, :B, :S], (1, 0, 2))      # (B, T, S)
    return {'pred': pred, 'true': responses[:, 1:],
            'qc_preds': qc_preds, 'his_preds': his_preds}


# --------------------------- pure-JAX reference -------------------------------

def atdkt_reference(params, skills, responses, questions):
    S = params['num_skills']
    q, r = skills, responses
    x = q[:, :-1] + S * (r[:, :-1] > 0).astype(jnp.int32)
    xemb = (params['interaction_emb'][x]
            + params['question_emb'][questions[:, :-1]]
            + params['concept_emb'][q[:, :-1]]).astype(jnp.float32)
    B = xemb.shape[0]
    H = params['w_hh'].shape[0]
    xemb_t = jnp.transpose(xemb, (1, 0, 2))

    def step(carry, x_t):
        h, c = carry
        gates = x_t @ params['w_ih'] + h @ params['w_hh'] + params['b'][0]
        i_g = jax.nn.sigmoid(gates[:, 0 * H:1 * H])
        f_g = jax.nn.sigmoid(gates[:, 1 * H:2 * H])
        g_g = jnp.tanh(gates[:, 2 * H:3 * H])
        o_g = jax.nn.sigmoid(gates[:, 3 * H:4 * H])
        c = f_g * c + i_g * g_g
        h = o_g * jnp.tanh(c)
        return (h, c), h

    h0 = jnp.zeros((B, H), jnp.float32)
    (_, _), hs = lax.scan(step, (h0, h0), xemb_t)
    h = jnp.transpose(hs, (1, 0, 2))                             # (B, T, H)

    y = jax.nn.sigmoid(h @ params['w_out'] + params['b_out'][0])
    qoh = jax.nn.one_hot(q[:, 1:], S, dtype=jnp.float32)
    pred = jnp.sum(y * qoh, axis=-1)
    qc_preds = h @ params['w_qc'] + params['b_qc'][0]
    his_preds = jax.nn.sigmoid(h @ params['w_his'] + params['b_his'][0])
    return {'pred': pred, 'true': r[:, 1:], 'qc_preds': qc_preds,
            'his_preds': his_preds}


# --------------------------------- main ---------------------------------------

if __name__ == "__main__":
    num_skills = 16
    num_questions = 20
    emb_size = 32
    hidden_size = 32
    B, L = 2, 9            # sequence length 9 -> T = 8 effective steps

    key = jax.random.PRNGKey(0)
    keys = jax.random.split(key, 16)

    def init(k, shape, scale=0.1):
        return scale * jax.random.normal(k, shape, jnp.float32)

    H = hidden_size
    params = {
        'num_skills': num_skills,
        'interaction_emb': init(keys[0], (num_skills * 2, emb_size)),
        'question_emb':    init(keys[1], (num_questions, emb_size)),
        'concept_emb':     init(keys[2], (num_skills, emb_size)),
        # LSTM weights, PyTorch gate order (i, f, g, o), stored transposed (in, 4H)
        'w_ih': init(keys[3], (emb_size, 4 * H)),
        'w_hh': init(keys[4], (H, 4 * H)),
        'b':    init(keys[5], (1, 4 * H)),          # b_ih + b_hh combined
        'w_out': init(keys[6], (H, num_skills)),
        'b_out': init(keys[7], (1, num_skills)),
        'w_qc':  init(keys[8], (H, num_skills)),
        'b_qc':  init(keys[9], (1, num_skills)),
        'w_his': init(keys[10], (H, 1)),
        'b_his': init(keys[11], (1, 1)),
    }

    skills = jax.random.randint(keys[12], (B, L), 0, num_skills, dtype=jnp.int32)
    responses = jax.random.randint(keys[13], (B, L), 0, 2, dtype=jnp.int32)
    questions = jax.random.randint(keys[14], (B, L), 0, num_questions, dtype=jnp.int32)

    out = atdkt_forward(params, skills, responses, questions)
    jax.block_until_ready(out)

    ref = atdkt_reference(params, skills, responses, questions)
    for k in ('pred', 'qc_preds', 'his_preds'):
        assert out[k].shape == ref[k].shape, (k, out[k].shape, ref[k].shape)
        assert jnp.allclose(out[k], ref[k], atol=2e-4, rtol=2e-4), k
    assert jnp.array_equal(out['true'], ref['true'])

    # TODO(synk): dropout is reproduced with eval-mode (identity) semantics only.
    print("KERNEL_OK")
</pallas_src>

<mosaic_0001>
module attributes {stable_mosaic.version = 11 : i64} {
  func.func @atdkt_kernel(%arg0: i32, %arg1: memref<8x8x128xf32, #tpu.memory_space<vmem>>, %arg2: memref<8x8x1xi32, #tpu.memory_space<vmem>>, %arg3: memref<128x512xf32, #tpu.memory_space<vmem>>, %arg4: memref<128x512xf32, #tpu.memory_space<vmem>>, %arg5: memref<1x512xf32, #tpu.memory_space<vmem>>, %arg6: memref<128x384xf32, #tpu.memory_space<vmem>>, %arg7: memref<1x384xf32, #tpu.memory_space<vmem>>, %arg8: memref<8x8x128xf32, #tpu.memory_space<vmem>>, %arg9: memref<8x8x128xf32, #tpu.memory_space<vmem>>, %arg10: memref<64x512xf32, #tpu.memory_space<vmem>>, %arg11: memref<64x128xf32, #tpu.memory_space<vmem>>, %arg12: memref<8x128xf32, #tpu.memory_space<vmem>>, %arg13: memref<8x128xf32, #tpu.memory_space<vmem>>) attributes {dimension_semantics = [#tpu.dimension_semantics<parallel>], iteration_bounds = array<i64: 1>, scalar_prefetch = 0 : i64, scratch_operands = 4 : i64, tpu.core_type = #tpu.core_type<tc>, window_params = [{transform_indices = @transform_0, window_bounds = array<i64: 8, 8, 128>}, {transform_indices = @transform_1, window_bounds = array<i64: 8, 8, 1>}, {pipeline_mode = #tpu.pipeline_mode<synchronous>, transform_indices = @transform_2, window_bounds = array<i64: 128, 512>}, {pipeline_mode = #tpu.pipeline_mode<synchronous>, transform_indices = @transform_3, window_bounds = array<i64: 128, 512>}, {pipeline_mode = #tpu.pipeline_mode<synchronous>, transform_indices = @transform_4, window_bounds = array<i64: 1, 512>}, {pipeline_mode = #tpu.pipeline_mode<synchronous>, transform_indices = @transform_5, window_bounds = array<i64: 128, 384>}, {pipeline_mode = #tpu.pipeline_mode<synchronous>, transform_indices = @transform_6, window_bounds = array<i64: 1, 384>}, {transform_indices = @transform_7, window_bounds = array<i64: 8, 8, 128>}, {transform_indices = @transform_8, window_bounds = array<i64: 8, 8, 128>}]} {
    %c0 = arith.constant 0 : index
    %c0_0 = arith.constant 0 : index
    %c0_1 = arith.constant 0 : index
    %0 = vector.load %arg1[%c0, %c0_0, %c0_1] : memref<8x8x128xf32, #tpu.memory_space<vmem>>, vector<8x8x128xf32>
    %1 = vector.shape_cast %0 : vector<8x8x128xf32> to vector<64x128xf32>
    %c0_2 = arith.constant 0 : index
    %c0_3 = arith.constant 0 : index
    %2 = vector.load %arg3[%c0_2, %c0_3] : memref<128x512xf32, #tpu.memory_space<vmem>>, vector<128x512xf32>
    %cst = arith.constant dense<0.000000e+00> : vector<64x512xf32>
    %3 = tpu.matmul %1, %2, %cst {dimension_numbers = #tpu.dot_dimension_numbers<[1], [0], [0], [1], [0, 0, 1, 1], [], []>} : vector<64x128xf32>, vector<128x512xf32>, vector<64x512xf32> -> vector<64x512xf32>
    %c0_4 = arith.constant 0 : index
    %c0_5 = arith.constant 0 : index
    %4 = vector.load %arg5[%c0_4, %c0_5] : memref<1x512xf32, #tpu.memory_space<vmem>>, vector<1x512xf32>
    %5 = vector.broadcast %4 : vector<1x512xf32> to vector<64x512xf32>
    %6 = arith.addf %3, %5 : vector<64x512xf32>
    %c0_6 = arith.constant 0 : index
    %c0_7 = arith.constant 0 : index
    %7 = vector.load %arg10[%c0_6, %c0_7] : memref<64x512xf32, #tpu.memory_space<vmem>>, vector<64x512xf32>
    tpu.vector_store %arg10[%c0_6, %c0_7], %6 {strides = array<i32>} : memref<64x512xf32, #tpu.memory_space<vmem>>, vector<64x512xf32>,
    %cst_8 = arith.constant 0.000000e+00 : f32
    %8 = vector.broadcast %cst_8 : f32 to vector<8x128xf32>
    %c0_9 = arith.constant 0 : index
    %c0_10 = arith.constant 0 : index
    %9 = vector.load %arg12[%c0_9, %c0_10] : memref<8x128xf32, #tpu.memory_space<vmem>>, vector<8x128xf32>
    tpu.vector_store %arg12[%c0_9, %c0_10], %8 {strides = array<i32>} : memref<8x128xf32, #tpu.memory_space<vmem>>, vector<8x128xf32>,
    %cst_11 = arith.constant 0.000000e+00 : f32
    %10 = vector.broadcast %cst_11 : f32 to vector<8x128xf32>
    %c0_12 = arith.constant 0 : index
    %c0_13 = arith.constant 0 : index
    %11 = vector.load %arg13[%c0_12, %c0_13] : memref<8x128xf32, #tpu.memory_space<vmem>>, vector<8x128xf32>
    tpu.vector_store %arg13[%c0_12, %c0_13], %10 {strides = array<i32>} : memref<8x128xf32, #tpu.memory_space<vmem>>, vector<8x128xf32>,
    %c0_i32 = arith.constant 0 : i32
    %c8_i32 = arith.constant 8 : i32
    %12 = arith.muli %c0_i32, %c8_i32 : i32
    %13 = tpu.assume_multiple %12, 8 : i32
    %14 = arith.index_cast %13 : i32 to index
    %c0_14 = arith.constant 0 : index
    %15 = vector.load %arg10[%14, %c0_14] : memref<64x512xf32, #tpu.memory_space<vmem>>, vector<8x512xf32>
    %c0_15 = arith.constant 0 : index
    %c0_16 = arith.constant 0 : index
    %16 = vector.load %arg12[%c0_15, %c0_16] : memref<8x128xf32, #tpu.memory_space<vmem>>, vector<8x128xf32>
    %c0_17 = arith.constant 0 : index
    %c0_18 = arith.constant 0 : index
    %17 = vector.load %arg4[%c0_17, %c0_18] : memref<128x512xf32, #tpu.memory_space<vmem>>, vector<128x512xf32>
    %cst_19 = arith.constant dense<0.000000e+00> : vector<8x512xf32>
    %18 = tpu.matmul %16, %17, %cst_19 {dimension_numbers = #tpu.dot_dimension_numbers<[1], [0], [0], [1], [0, 0, 1, 1], [], []>} : vector<8x128xf32>, vector<128x512xf32>, vector<8x512xf32> -> vector<8x512xf32>
    %19 = arith.addf %15, %18 : vector<8x512xf32>
    %20 = vector.extract_strided_slice %19 {offsets = [0, 0], sizes = [8, 128], strides = [1, 1]} : vector<8x512xf32> to vector<8x128xf32>
    %21 = arith.negf %20 : vector<8x128xf32>
    %22 = math.exp %21 : vector<8x128xf32>
    %cst_20 = arith.constant 1.000000e+00 : f32
    %23 = vector.broadcast %cst_20 : f32 to vector<8x128xf32>
    %24 = arith.addf %23, %22 : vector<8x128xf32>
    %25 = arith.divf %23, %24 : vector<8x128xf32>
    %26 = vector.extract_strided_slice %19 {offsets = [0, 128], sizes = [8, 128], strides = [1, 1]} : vector<8x512xf32> to vector<8x128xf32>
    %27 = arith.negf %26 : vector<8x128xf32>
    %28 = math.exp %27 : vector<8x128xf32>
    %cst_21 = arith.constant 1.000000e+00 : f32
    %29 = vector.broadcast %cst_21 : f32 to vector<8x128xf32>
    %30 = arith.addf %29, %28 : vector<8x128xf32>
    %31 = arith.divf %29, %30 : vector<8x128xf32>
    %32 = vector.extract_strided_slice %19 {offsets = [0, 256], sizes = [8, 128], strides = [1, 1]} : vector<8x512xf32> to vector<8x128xf32>
    %33 = math.tanh %32 : vector<8x128xf32>
    %34 = vector.extract_strided_slice %19 {offsets = [0, 384], sizes = [8, 128], strides = [1, 1]} : vector<8x512xf32> to vector<8x128xf32>
    %35 = arith.negf %34 : vector<8x128xf32>
    %36 = math.exp %35 : vector<8x128xf32>
    %cst_22 = arith.constant 1.000000e+00 : f32
    %37 = vector.broadcast %cst_22 : f32 to vector<8x128xf32>
    %38 = arith.addf %37, %36 : vector<8x128xf32>
    %39 = arith.divf %37, %38 : vector<8x128xf32>
    %c0_23 = arith.constant 0 : index
    %c0_24 = arith.constant 0 : index
    %40 = vector.load %arg13[%c0_23, %c0_24] : memref<8x128xf32, #tpu.memory_space<vmem>>, vector<8x128xf32>
    %41 = arith.mulf %31, %40 : vector<8x128xf32>
    %42 = arith.mulf %25, %33 : vector<8x128xf32>
    %43 = arith.addf %41, %42 : vector<8x128xf32>
    %44 = math.tanh %43 : vector<8x128xf32>
    %45 = arith.mulf %39, %44 : vector<8x128xf32>
    %c0_25 = arith.constant 0 : index
    %c0_26 = arith.constant 0 : index
    %46 = vector.load %arg13[%c0_25, %c0_26] : memref<8x128xf32, #tpu.memory_space<vmem>>, vector<8x128xf32>
    tpu.vector_store %arg13[%c0_25, %c0_26], %43 {strides = array<i32>} : memref<8x128xf32, #tpu.memory_space<vmem>>, vector<8x128xf32>,
    %c0_27 = arith.constant 0 : index
    %c0_28 = arith.constant 0 : index
    %47 = vector.load %arg12[%c0_27, %c0_28] : memref<8x128xf32, #tpu.memory_space<vmem>>, vector<8x128xf32>
    tpu.vector_store %arg12[%c0_27, %c0_28], %45 {strides = array<i32>} : memref<8x128xf32, #tpu.memory_space<vmem>>, vector<8x128xf32>,
    %48 = arith.index_cast %13 : i32 to index
    %c0_29 = arith.constant 0 : index
    %49 = vector.load %arg11[%48, %c0_29] : memref<64x128xf32, #tpu.memory_space<vmem>>, vector<8x128xf32>
    tpu.vector_store %arg11[%48, %c0_29], %45 {strides = array<i32>} : memref<64x128xf32, #tpu.memory_space<vmem>>, vector<8x128xf32>,
    %c1_i32 = arith.constant 1 : i32
    %c8_i32_30 = arith.constant 8 : i32
    %50 = arith.muli %c1_i32, %c8_i32_30 : i32
    %51 = tpu.assume_multiple %50, 8 : i32
    %52 = arith.index_cast %51 : i32 to index
    %c0_31 = arith.constant 0 : index
    %53 = vector.load %arg10[%52, %c0_31] : memref<64x512xf32, #tpu.memory_space<vmem>>, vector<8x512xf32>
    %c0_32 = arith.constant 0 : index
    %c0_33 = arith.constant 0 : index
    %54 = vector.load %arg12[%c0_32, %c0_33] : memref<8x128xf32, #tpu.memory_space<vmem>>, vector<8x128xf32>
    %c0_34 = arith.constant 0 : index
    %c0_35 = arith.constant 0 : index
    %55 = vector.load %arg4[%c0_34, %c0_35] : memref<128x512xf32, #tpu.memory_space<vmem>>, vector<128x512xf32>
    %cst_36 = arith.constant dense<0.000000e+00> : vector<8x512xf32>
    %56 = tpu.matmul %54, %55, %cst_36 {dimension_numbers = #tpu.dot_dimension_numbers<[1], [0], [0], [1], [0, 0, 1, 1], [], []>} : vector<8x128xf32>, vector<128x512xf32>, vector<8x512xf32> -> vector<8x512xf32>
    %57 = arith.addf %53, %56 : vector<8x512xf32>
    %58 = vector.extract_strided_slice %57 {offsets = [0, 0], sizes = [8, 128], strides = [1, 1]} : vector<8x512xf32> to vector<8x128xf32>
    %59 = arith.negf %58 : vector<8x128xf32>
    %60 = math.exp %59 : vector<8x128xf32>
    %cst_37 = arith.constant 1.000000e+00 : f32
    %61 = vector.broadcast %cst_37 : f32 to vector<8x128xf32>
    %62 = arith.addf %61, %60 : vector<8x128xf32>
    %63 = arith.divf %61, %62 : vector<8x128xf32>
    %64 = vector.extract_strided_slice %57 {offsets = [0, 128], sizes = [8, 128], strides = [1, 1]} : vector<8x512xf32> to vector<8x128xf32>
    %65 = arith.negf %64 : vector<8x128xf32>
    %66 = math.exp %65 : vector<8x128xf32>
    %cst_38 = arith.constant 1.000000e+00 : f32
    %67 = vector.broadcast %cst_38 : f32 to vector<8x128xf32>
    %68 = arith.addf %67, %66 : vector<8x128xf32>
    %69 = arith.divf %67, %68 : vector<8x128xf32>
    %70 = vector.extract_strided_slice %57 {offsets = [0, 256], sizes = [8, 128], strides = [1, 1]} : vector<8x512xf32> to vector<8x128xf32>
    %71 = math.tanh %70 : vector<8x128xf32>
    %72 = vector.extract_strided_slice %57 {offsets = [0, 384], sizes = [8, 128], strides = [1, 1]} : vector<8x512xf32> to vector<8x128xf32>
    %73 = arith.negf %72 : vector<8x128xf32>
    %74 = math.exp %73 : vector<8x128xf32>
    %cst_39 = arith.constant 1.000000e+00 : f32
    %75 = vector.broadcast %cst_39 : f32 to vector<8x128xf32>
    %76 = arith.addf %75, %74 : vector<8x128xf32>
    %77 = arith.divf %75, %76 : vector<8x128xf32>
    %c0_40 = arith.constant 0 : index
    %c0_41 = arith.constant 0 : index
    %78 = vector.load %arg13[%c0_40, %c0_41] : memref<8x128xf32, #tpu.memory_space<vmem>>, vector<8x128xf32>
    %79 = arith.mulf %69, %78 : vector<8x128xf32>
    %80 = arith.mulf %63, %71 : vector<8x128xf32>
    %81 = arith.addf %79, %80 : vector<8x128xf32>
    %82 = math.tanh %81 : vector<8x128xf32>
    %83 = arith.mulf %77, %82 : vector<8x128xf32>
    %c0_42 = arith.constant 0 : index
    %c0_43 = arith.constant 0 : index
    %84 = vector.load %arg13[%c0_42, %c0_43] : memref<8x128xf32, #tpu.memory_space<vmem>>, vector<8x128xf32>
    tpu.vector_store %arg13[%c0_42, %c0_43], %81 {strides = array<i32>} : memref<8x128xf32, #tpu.memory_space<vmem>>, vector<8x128xf32>,
    %c0_44 = arith.constant 0 : index
    %c0_45 = arith.constant 0 : index
    %85 = vector.load %arg12[%c0_44, %c0_45] : memref<8x128xf32, #tpu.memory_space<vmem>>, vector<8x128xf32>
    tpu.vector_store %arg12[%c0_44, %c0_45], %83 {strides = array<i32>} : memref<8x128xf32, #tpu.memory_space<vmem>>, vector<8x128xf32>,
    %86 = arith.index_cast %51 : i32 to index
    %c0_46 = arith.constant 0 : index
    %87 = vector.load %arg11[%86, %c0_46] : memref<64x128xf32, #tpu.memory_space<vmem>>, vector<8x128xf32>
    tpu.vector_store %arg11[%86, %c0_46], %83 {strides = array<i32>} : memref<64x128xf32, #tpu.memory_space<vmem>>, vector<8x128xf32>,
    %c2_i32 = arith.constant 2 : i32
    %c8_i32_47 = arith.constant 8 : i32
    %88 = arith.muli %c2_i32, %c8_i32_47 : i32
    %89 = tpu.assume_multiple %88, 8 : i32
    %90 = arith.index_cast %89 : i32 to index
    %c0_48 = arith.constant 0 : index
    %91 = vector.load %arg10[%90, %c0_48] : memref<64x512xf32, #tpu.memory_space<vmem>>, vector<8x512xf32>
    %c0_49 = arith.constant 0 : index
    %c0_50 = arith.constant 0 : index
    %92 = vector.load %arg12[%c0_49, %c0_50] : memref<8x128xf32, #tpu.memory_space<vmem>>, vector<8x128xf32>
    %c0_51 = arith.constant 0 : index
    %c0_52 = arith.constant 0 : index
    %93 = vector.load %arg4[%c0_51, %c0_52] : memref<128x512xf32, #tpu.memory_space<vmem>>, vector<128x512xf32>
    %cst_53 = arith.constant dense<0.000000e+00> : vector<8x512xf32>
    %94 = tpu.matmul %92, %93, %cst_53 {dimension_numbers = #tpu.dot_dimension_numbers<[1], [0], [0], [1], [0, 0, 1, 1], [], []>} : vector<8x128xf32>, vector<128x512xf32>, vector<8x512xf32> -> vector<8x512xf32>
    %95 = arith.addf %91, %94 : vector<8x512xf32>
    %96 = vector.extract_strided_slice %95 {offsets = [0, 0], sizes = [8, 128], strides = [1, 1]} : vector<8x512xf32> to vector<8x128xf32>
    %97 = arith.negf %96 : vector<8x128xf32>
    %98 = math.exp %97 : vector<8x128xf32>
    %cst_54 = arith.constant 1.000000e+00 : f32
    %99 = vector.broadcast %cst_54 : f32 to vector<8x128xf32>
    %100 = arith.addf %99, %98 : vector<8x128xf32>
    %101 = arith.divf %99, %100 : vector<8x128xf32>
    %102 = vector.extract_strided_slice %95 {offsets = [0, 128], sizes = [8, 128], strides = [1, 1]} : vector<8x512xf32> to vector<8x128xf32>
    %103 = arith.negf %102 : vector<8x128xf32>
    %104 = math.exp %103 : vector<8x128xf32>
    %cst_55 = arith.constant 1.000000e+00 : f32
    %105 = vector.broadcast %cst_55 : f32 to vector<8x128xf32>
    %106 = arith.addf %105, %104 : vector<8x128xf32>
    %107 = arith.divf %105, %106 : vector<8x128xf32>
    %108 = vector.extract_strided_slice %95 {offsets = [0, 256], sizes = [8, 128], strides = [1, 1]} : vector<8x512xf32> to vector<8x128xf32>
    %109 = math.tanh %108 : vector<8x128xf32>
    %110 = vector.extract_strided_slice %95 {offsets = [0, 384], sizes = [8, 128], strides = [1, 1]} : vector<8x512xf32> to vector<8x128xf32>
    %111 = arith.negf %110 : vector<8x128xf32>
    %112 = math.exp %111 : vector<8x128xf32>
    %cst_56 = arith.constant 1.000000e+00 : f32
    %113 = vector.broadcast %cst_56 : f32 to vector<8x128xf32>
    %114 = arith.addf %113, %112 : vector<8x128xf32>
    %115 = arith.divf %113, %114 : vector<8x128xf32>
    %c0_57 = arith.constant 0 : index
    %c0_58 = arith.constant 0 : index
    %116 = vector.load %arg13[%c0_57, %c0_58] : memref<8x128xf32, #tpu.memory_space<vmem>>, vector<8x128xf32>
    %117 = arith.mulf %107, %116 : vector<8x128xf32>
    %118 = arith.mulf %101, %109 : vector<8x128xf32>
    %119 = arith.addf %117, %118 : vector<8x128xf32>
    %120 = math.tanh %119 : vector<8x128xf32>
    %121 = arith.mulf %115, %120 : vector<8x128xf32>
    %c0_59 = arith.constant 0 : index
    %c0_60 = arith.constant 0 : index
    %122 = vector.load %arg13[%c0_59, %c0_60] : memref<8x128xf32, #tpu.memory_space<vmem>>, vector<8x128xf32>
    tpu.vector_store %arg13[%c0_59, %c0_60], %119 {strides = array<i32>} : memref<8x128xf32, #tpu.memory_space<vmem>>, vector<8x128xf32>,
    %c0_61 = arith.constant 0 : index
    %c0_62 = arith.constant 0 : index
    %123 = vector.load %arg12[%c0_61, %c0_62] : memref<8x128xf32, #tpu.memory_space<vmem>>, vector<8x128xf32>
    tpu.vector_store %arg12[%c0_61, %c0_62], %121 {strides = array<i32>} : memref<8x128xf32, #tpu.memory_space<vmem>>, vector<8x128xf32>,
    %124 = arith.index_cast %89 : i32 to index
    %c0_63 = arith.constant 0 : index
    %125 = vector.load %arg11[%124, %c0_63] : memref<64x128xf32, #tpu.memory_space<vmem>>, vector<8x128xf32>
    tpu.vector_store %arg11[%124, %c0_63], %121 {strides = array<i32>} : memref<64x128xf32, #tpu.memory_space<vmem>>, vector<8x128xf32>,
    %c3_i32 = arith.constant 3 : i32
    %c8_i32_64 = arith.constant 8 : i32
    %126 = arith.muli %c3_i32, %c8_i32_64 : i32
    %127 = tpu.assume_multiple %126, 8 : i32
    %128 = arith.index_cast %127 : i32 to index
    %c0_65 = arith.constant 0 : index
    %129 = vector.load %arg10[%128, %c0_65] : memref<64x512xf32, #tpu.memory_space<vmem>>, vector<8x512xf32>
    %c0_66 = arith.constant 0 : index
    %c0_67 = arith.constant 0 : index
    %130 = vector.load %arg12[%c0_66, %c0_67] : memref<8x128xf32, #tpu.memory_space<vmem>>, vector<8x128xf32>
    %c0_68 = arith.constant 0 : index
    %c0_69 = arith.constant 0 : index
    %131 = vector.load %arg4[%c0_68, %c0_69] : memref<128x512xf32, #tpu.memory_space<vmem>>, vector<128x512xf32>
    %cst_70 = arith.constant dense<0.000000e+00> : vector<8x512xf32>
    %132 = tpu.matmul %130, %131, %cst_70 {dimension_numbers = #tpu.dot_dimension_numbers<[1], [0], [0], [1], [0, 0, 1, 1], [], []>} : vector<8x128xf32>, vector<128x512xf32>, vector<8x512xf32> -> vector<8x512xf32>
    %133 = arith.addf %129, %132 : vector<8x512xf32>
    %134 = vector.extract_strided_slice %133 {offsets = [0, 0], sizes = [8, 128], strides = [1, 1]} : vector<8x512xf32> to vector<8x128xf32>
    %135 = arith.negf %134 : vector<8x128xf32>
    %136 = math.exp %135 : vector<8x128xf32>
    %cst_71 = arith.constant 1.000000e+00 : f32
    %137 = vector.broadcast %cst_71 : f32 to vector<8x128xf32>
    %138 = arith.addf %137, %136 : vector<8x128xf32>
    %139 = arith.divf %137, %138 : vector<8x128xf32>
    %140 = vector.extract_strided_slice %133 {offsets = [0, 128], sizes = [8, 128], strides = [1, 1]} : vector<8x512xf32> to vector<8x128xf32>
    %141 = arith.negf %140 : vector<8x128xf32>
    %142 = math.exp %141 : vector<8x128xf32>
    %cst_72 = arith.constant 1.000000e+00 : f32
    %143 = vector.broadcast %cst_72 : f32 to vector<8x128xf32>
    %144 = arith.addf %143, %142 : vector<8x128xf32>
    %145 = arith.divf %143, %144 : vector<8x128xf32>
    %146 = vector.extract_strided_slice %133 {offsets = [0, 256], sizes = [8, 128], strides = [1, 1]} : vector<8x512xf32> to vector<8x128xf32>
    %147 = math.tanh %146 : vector<8x128xf32>
    %148 = vector.extract_strided_slice %133 {offsets = [0, 384], sizes = [8, 128], strides = [1, 1]} : vector<8x512xf32> to vector<8x128xf32>
    %149 = arith.negf %148 : vector<8x128xf32>
    %150 = math.exp %149 : vector<8x128xf32>
    %cst_73 = arith.constant 1.000000e+00 : f32
    %151 = vector.broadcast %cst_73 : f32 to vector<8x128xf32>
    %152 = arith.addf %151, %150 : vector<8x128xf32>
    %153 = arith.divf %151, %152 : vector<8x128xf32>
    %c0_74 = arith.constant 0 : index
    %c0_75 = arith.constant 0 : index
    %154 = vector.load %arg13[%c0_74, %c0_75] : memref<8x128xf32, #tpu.memory_space<vmem>>, vector<8x128xf32>
    %155 = arith.mulf %145, %154 : vector<8x128xf32>
    %156 = arith.mulf %139, %147 : vector<8x128xf32>
    %157 = arith.addf %155, %156 : vector<8x128xf32>
    %158 = math.tanh %157 : vector<8x128xf32>
    %159 = arith.mulf %153, %158 : vector<8x128xf32>
    %c0_76 = arith.constant 0 : index
    %c0_77 = arith.constant 0 : index
    %160 = vector.load %arg13[%c0_76, %c0_77] : memref<8x128xf32, #tpu.memory_space<vmem>>, vector<8x128xf32>
    tpu.vector_store %arg13[%c0_76, %c0_77], %157 {strides = array<i32>} : memref<8x128xf32, #tpu.memory_space<vmem>>, vector<8x128xf32>,
    %c0_78 = arith.constant 0 : index
    %c0_79 = arith.constant 0 : index
    %161 = vector.load %arg12[%c0_78, %c0_79] : memref<8x128xf32, #tpu.memory_space<vmem>>, vector<8x128xf32>
    tpu.vector_store %arg12[%c0_78, %c0_79], %159 {strides = array<i32>} : memref<8x128xf32, #tpu.memory_space<vmem>>, vector<8x128xf32>,
    %162 = arith.index_cast %127 : i32 to index
    %c0_80 = arith.constant 0 : index
    %163 = vector.load %arg11[%162, %c0_80] : memref<64x128xf32, #tpu.memory_space<vmem>>, vector<8x128xf32>
    tpu.vector_store %arg11[%162, %c0_80], %159 {strides = array<i32>} : memref<64x128xf32, #tpu.memory_space<vmem>>, vector<8x128xf32>,
    %c4_i32 = arith.constant 4 : i32
    %c8_i32_81 = arith.constant 8 : i32
    %164 = arith.muli %c4_i32, %c8_i32_81 : i32
    %165 = tpu.assume_multiple %164, 8 : i32
    %166 = arith.index_cast %165 : i32 to index
    %c0_82 = arith.constant 0 : index
    %167 = vector.load %arg10[%166, %c0_82] : memref<64x512xf32, #tpu.memory_space<vmem>>, vector<8x512xf32>
    %c0_83 = arith.constant 0 : index
    %c0_84 = arith.constant 0 : index
    %168 = vector.load %arg12[%c0_83, %c0_84] : memref<8x128xf32, #tpu.memory_space<vmem>>, vector<8x128xf32>
    %c0_85 = arith.constant 0 : index
    %c0_86 = arith.constant 0 : index
    %169 = vector.load %arg4[%c0_85, %c0_86] : memref<128x512xf32, #tpu.memory_space<vmem>>, vector<128x512xf32>
    %cst_87 = arith.constant dense<0.000000e+00> : vector<8x512xf32>
    %170 = tpu.matmul %168, %169, %cst_87 {dimension_numbers = #tpu.dot_dimension_numbers<[1], [0], [0], [1], [0, 0, 1, 1], [], []>} : vector<8x128xf32>, vector<128x512xf32>, vector<8x512xf32> -> vector<8x512xf32>
    %171 = arith.addf %167, %170 : vector<8x512xf32>
    %172 = vector.extract_strided_slice %171 {offsets = [0, 0], sizes = [8, 128], strides = [1, 1]} : vector<8x512xf32> to vector<8x128xf32>
    %173 = arith.negf %172 : vector<8x128xf32>
    %174 = math.exp %173 : vector<8x128xf32>
    %cst_88 = arith.constant 1.000000e+00 : f32
    %175 = vector.broadcast %cst_88 : f32 to vector<8x128xf32>
    %176 = arith.addf %175, %174 : vector<8x128xf32>
    %177 = arith.divf %175, %176 : vector<8x128xf32>
    %178 = vector.extract_strided_slice %171 {offsets = [0, 128], sizes = [8, 128], strides = [1, 1]} : vector<8x512xf32> to vector<8x128xf32>
    %179 = arith.negf %178 : vector<8x128xf32>
    %180 = math.exp %179 : vector<8x128xf32>
    %cst_89 = arith.constant 1.000000e+00 : f32
    %181 = vector.broadcast %cst_89 : f32 to vector<8x128xf32>
    %182 = arith.addf %181, %180 : vector<8x128xf32>
    %183 = arith.divf %181, %182 : vector<8x128xf32>
    %184 = vector.extract_strided_slice %171 {offsets = [0, 256], sizes = [8, 128], strides = [1, 1]} : vector<8x512xf32> to vector<8x128xf32>
    %185 = math.tanh %184 : vector<8x128xf32>
    %186 = vector.extract_strided_slice %171 {offsets = [0, 384], sizes = [8, 128], strides = [1, 1]} : vector<8x512xf32> to vector<8x128xf32>
    %187 = arith.negf %186 : vector<8x128xf32>
    %188 = math.exp %187 : vector<8x128xf32>
    %cst_90 = arith.constant 1.000000e+00 : f32
    %189 = vector.broadcast %cst_90 : f32 to vector<8x128xf32>
    %190 = arith.addf %189, %188 : vector<8x128xf32>
    %191 = arith.divf %189, %190 : vector<8x128xf32>
    %c0_91 = arith.constant 0 : index
    %c0_92 = arith.constant 0 : index
    %192 = vector.load %arg13[%c0_91, %c0_92] : memref<8x128xf32, #tpu.memory_space<vmem>>, vector<8x128xf32>
    %193 = arith.mulf %183, %192 : vector<8x128xf32>
    %194 = arith.mulf %177, %185 : vector<8x128xf32>
    %195 = arith.addf %193, %194 : vector<8x128xf32>
    %196 = math.tanh %195 : vector<8x128xf32>
    %197 = arith.mulf %191, %196 : vector<8x128xf32>
    %c0_93 = arith.constant 0 : index
    %c0_94 = arith.constant 0 : index
    %198 = vector.load %arg13[%c0_93, %c0_94] : memref<8x128xf32, #tpu.memory_space<vmem>>, vector<8x128xf32>
    tpu.vector_store %arg13[%c0_93, %c0_94], %195 {strides = array<i32>} : memref<8x128xf32, #tpu.memory_space<vmem>>, vector<8x128xf32>,
    %c0_95 = arith.constant 0 : index
    %c0_96 = arith.constant 0 : index
    %199 = vector.load %arg12[%c0_95, %c0_96] : memref<8x128xf32, #tpu.memory_space<vmem>>, vector<8x128xf32>
    tpu.vector_store %arg12[%c0_95, %c0_96], %197 {strides = array<i32>} : memref<8x128xf32, #tpu.memory_space<vmem>>, vector<8x128xf32>,
    %200 = arith.index_cast %165 : i32 to index
    %c0_97 = arith.constant 0 : index
    %201 = vector.load %arg11[%200, %c0_97] : memref<64x128xf32, #tpu.memory_space<vmem>>, vector<8x128xf32>
    tpu.vector_store %arg11[%200, %c0_97], %197 {strides = array<i32>} : memref<64x128xf32, #tpu.memory_space<vmem>>, vector<8x128xf32>,
    %c5_i32 = arith.constant 5 : i32
    %c8_i32_98 = arith.constant 8 : i32
    %202 = arith.muli %c5_i32, %c8_i32_98 : i32
    %203 = tpu.assume_multiple %202, 8 : i32
    %204 = arith.index_cast %203 : i32 to index
    %c0_99 = arith.constant 0 : index
    %205 = vector.load %arg10[%204, %c0_99] : memref<64x512xf32, #tpu.memory_space<vmem>>, vector<8x512xf32>
    %c0_100 = arith.constant 0 : index
    %c0_101 = arith.constant 0 : index
    %206 = vector.load %arg12[%c0_100, %c0_101] : memref<8x128xf32, #tpu.memory_space<vmem>>, vector<8x128xf32>
    %c0_102 = arith.constant 0 : index
    %c0_103 = arith.constant 0 : index
    %207 = vector.load %arg4[%c0_102, %c0_103] : memref<128x512xf32, #tpu.memory_space<vmem>>, vector<128x512xf32>
    %cst_104 = arith.constant dense<0.000000e+00> : vector<8x512xf32>
    %208 = tpu.matmul %206, %207, %cst_104 {dimension_numbers = #tpu.dot_dimension_numbers<[1], [0], [0], [1], [0, 0, 1, 1], [], []>} : vector<8x128xf32>, vector<128x512xf32>, vector<8x512xf32> -> vector<8x512xf32>
    %209 = arith.addf %205, %208 : vector<8x512xf32>
    %210 = vector.extract_strided_slice %209 {offsets = [0, 0], sizes = [8, 128], strides = [1, 1]} : vector<8x512xf32> to vector<8x128xf32>
    %211 = arith.negf %210 : vector<8x128xf32>
    %212 = math.exp %211 : vector<8x128xf32>
    %cst_105 = arith.constant 1.000000e+00 : f32
    %213 = vector.broadcast %cst_105 : f32 to vector<8x128xf32>
    %214 = arith.addf %213, %212 : vector<8x128xf32>
    %215 = arith.divf %213, %214 : vector<8x128xf32>
    %216 = vector.extract_strided_slice %209 {offsets = [0, 128], sizes = [8, 128], strides = [1, 1]} : vector<8x512xf32> to vector<8x128xf32>
    %217 = arith.negf %216 : vector<8x128xf32>
    %218 = math.exp %217 : vector<8x128xf32>
    %cst_106 = arith.constant 1.000000e+00 : f32
    %219 = vector.broadcast %cst_106 : f32 to vector<8x128xf32>
    %220 = arith.addf %219, %218 : vector<8x128xf32>
    %221 = arith.divf %219, %220 : vector<8x128xf32>
    %222 = vector.extract_strided_slice %209 {offsets = [0, 256], sizes = [8, 128], strides = [1, 1]} : vector<8x512xf32> to vector<8x128xf32>
    %223 = math.tanh %222 : vector<8x128xf32>
    %224 = vector.extract_strided_slice %209 {offsets = [0, 384], sizes = [8, 128], strides = [1, 1]} : vector<8x512xf32> to vector<8x128xf32>
    %225 = arith.negf %224 : vector<8x128xf32>
    %226 = math.exp %225 : vector<8x128xf32>
    %cst_107 = arith.constant 1.000000e+00 : f32
    %227 = vector.broadcast %cst_107 : f32 to vector<8x128xf32>
    %228 = arith.addf %227, %226 : vector<8x128xf32>
    %229 = arith.divf %227, %228 : vector<8x128xf32>
    %c0_108 = arith.constant 0 : index
    %c0_109 = arith.constant 0 : index
    %230 = vector.load %arg13[%c0_108, %c0_109] : memref<8x128xf32, #tpu.memory_space<vmem>>, vector<8x128xf32>
    %231 = arith.mulf %221, %230 : vector<8x128xf32>
    %232 = arith.mulf %215, %223 : vector<8x128xf32>
    %233 = arith.addf %231, %232 : vector<8x128xf32>
    %234 = math.tanh %233 : vector<8x128xf32>
    %235 = arith.mulf %229, %234 : vector<8x128xf32>
    %c0_110 = arith.constant 0 : index
    %c0_111 = arith.constant 0 : index
    %236 = vector.load %arg13[%c0_110, %c0_111] : memref<8x128xf32, #tpu.memory_space<vmem>>, vector<8x128xf32>
    tpu.vector_store %arg13[%c0_110, %c0_111], %233 {strides = array<i32>} : memref<8x128xf32, #tpu.memory_space<vmem>>, vector<8x128xf32>,
    %c0_112 = arith.constant 0 : index
    %c0_113 = arith.constant 0 : index
    %237 = vector.load %arg12[%c0_112, %c0_113] : memref<8x128xf32, #tpu.memory_space<vmem>>, vector<8x128xf32>
    tpu.vector_store %arg12[%c0_112, %c0_113], %235 {strides = array<i32>} : memref<8x128xf32, #tpu.memory_space<vmem>>, vector<8x128xf32>,
    %238 = arith.index_cast %203 : i32 to index
    %c0_114 = arith.constant 0 : index
    %239 = vector.load %arg11[%238, %c0_114] : memref<64x128xf32, #tpu.memory_space<vmem>>, vector<8x128xf32>
    tpu.vector_store %arg11[%238, %c0_114], %235 {strides = array<i32>} : memref<64x128xf32, #tpu.memory_space<vmem>>, vector<8x128xf32>,
    %c6_i32 = arith.constant 6 : i32
    %c8_i32_115 = arith.constant 8 : i32
    %240 = arith.muli %c6_i32, %c8_i32_115 : i32
    %241 = tpu.assume_multiple %240, 8 : i32
    %242 = arith.index_cast %241 : i32 to index
    %c0_116 = arith.constant 0 : index
    %243 = vector.load %arg10[%242, %c0_116] : memref<64x512xf32, #tpu.memory_space<vmem>>, vector<8x512xf32>
    %c0_117 = arith.constant 0 : index
    %c0_118 = arith.constant 0 : index
    %244 = vector.load %arg12[%c0_117, %c0_118] : memref<8x128xf32, #tpu.memory_space<vmem>>, vector<8x128xf32>
    %c0_119 = arith.constant 0 : index
    %c0_120 = arith.constant 0 : index
    %245 = vector.load %arg4[%c0_119, %c0_120] : memref<128x512xf32, #tpu.memory_space<vmem>>, vector<128x512xf32>
    %cst_121 = arith.constant dense<0.000000e+00> : vector<8x512xf32>
    %246 = tpu.matmul %244, %245, %cst_121 {dimension_numbers = #tpu.dot_dimension_numbers<[1], [0], [0], [1], [0, 0, 1, 1], [], []>} : vector<8x128xf32>, vector<128x512xf32>, vector<8x512xf32> -> vector<8x512xf32>
    %247 = arith.addf %243, %246 : vector<8x512xf32>
    %248 = vector.extract_strided_slice %247 {offsets = [0, 0], sizes = [8, 128], strides = [1, 1]} : vector<8x512xf32> to vector<8x128xf32>
    %249 = arith.negf %248 : vector<8x128xf32>
    %250 = math.exp %249 : vector<8x128xf32>
    %cst_122 = arith.constant 1.000000e+00 : f32
    %251 = vector.broadcast %cst_122 : f32 to vector<8x128xf32>
    %252 = arith.addf %251, %250 : vector<8x128xf32>
    %253 = arith.divf %251, %252 : vector<8x128xf32>
    %254 = vector.extract_strided_slice %247 {offsets = [0, 128], sizes = [8, 128], strides = [1, 1]} : vector<8x512xf32> to vector<8x128xf32>
    %255 = arith.negf %254 : vector<8x128xf32>
    %256 = math.exp %255 : vector<8x128xf32>
    %cst_123 = arith.constant 1.000000e+00 : f32
    %257 = vector.broadcast %cst_123 : f32 to vector<8x128xf32>
    %258 = arith.addf %257, %256 : vector<8x128xf32>
    %259 = arith.divf %257, %258 : vector<8x128xf32>
    %260 = vector.extract_strided_slice %247 {offsets = [0, 256], sizes = [8, 128], strides = [1, 1]} : vector<8x512xf32> to vector<8x128xf32>
    %261 = math.tanh %260 : vector<8x128xf32>
    %262 = vector.extract_strided_slice %247 {offsets = [0, 384], sizes = [8, 128], strides = [1, 1]} : vector<8x512xf32> to vector<8x128xf32>
    %263 = arith.negf %262 : vector<8x128xf32>
    %264 = math.exp %263 : vector<8x128xf32>
    %cst_124 = arith.constant 1.000000e+00 : f32
    %265 = vector.broadcast %cst_124 : f32 to vector<8x128xf32>
    %266 = arith.addf %265, %264 : vector<8x128xf32>
    %267 = arith.divf %265, %266 : vector<8x128xf32>
    %c0_125 = arith.constant 0 : index
    %c0_126 = arith.constant 0 : index
    %268 = vector.load %arg13[%c0_125, %c0_126] : memref<8x128xf32, #tpu.memory_space<vmem>>, vector<8x128xf32>
    %269 = arith.mulf %259, %268 : vector<8x128xf32>
    %270 = arith.mulf %253, %261 : vector<8x128xf32>
    %271 = arith.addf %269, %270 : vector<8x128xf32>
    %272 = math.tanh %271 : vector<8x128xf32>
    %273 = arith.mulf %267, %272 : vector<8x128xf32>
    %c0_127 = arith.constant 0 : index
    %c0_128 = arith.constant 0 : index
    %274 = vector.load %arg13[%c0_127, %c0_128] : memref<8x128xf32, #tpu.memory_space<vmem>>, vector<8x128xf32>
    tpu.vector_store %arg13[%c0_127, %c0_128], %271 {strides = array<i32>} : memref<8x128xf32, #tpu.memory_space<vmem>>, vector<8x128xf32>,
    %c0_129 = arith.constant 0 : index
    %c0_130 = arith.constant 0 : index
    %275 = vector.load %arg12[%c0_129, %c0_130] : memref<8x128xf32, #tpu.memory_space<vmem>>, vector<8x128xf32>
    tpu.vector_store %arg12[%c0_129, %c0_130], %273 {strides = array<i32>} : memref<8x128xf32, #tpu.memory_space<vmem>>, vector<8x128xf32>,
    %276 = arith.index_cast %241 : i32 to index
    %c0_131 = arith.constant 0 : index
    %277 = vector.load %arg11[%276, %c0_131] : memref<64x128xf32, #tpu.memory_space<vmem>>, vector<8x128xf32>
    tpu.vector_store %arg11[%276, %c0_131], %273 {strides = array<i32>} : memref<64x128xf32, #tpu.memory_space<vmem>>, vector<8x128xf32>,
    %c7_i32 = arith.constant 7 : i32
    %c8_i32_132 = arith.constant 8 : i32
    %278 = arith.muli %c7_i32, %c8_i32_132 : i32
    %279 = tpu.assume_multiple %278, 8 : i32
    %280 = arith.index_cast %279 : i32 to index
    %c0_133 = arith.constant 0 : index
    %281 = vector.load %arg10[%280, %c0_133] : memref<64x512xf32, #tpu.memory_space<vmem>>, vector<8x512xf32>
    %c0_134 = arith.constant 0 : index
    %c0_135 = arith.constant 0 : index
    %282 = vector.load %arg12[%c0_134, %c0_135] : memref<8x128xf32, #tpu.memory_space<vmem>>, vector<8x128xf32>
    %c0_136 = arith.constant 0 : index
    %c0_137 = arith.constant 0 : index
    %283 = vector.load %arg4[%c0_136, %c0_137] : memref<128x512xf32, #tpu.memory_space<vmem>>, vector<128x512xf32>
    %cst_138 = arith.constant dense<0.000000e+00> : vector<8x512xf32>
    %284 = tpu.matmul %282, %283, %cst_138 {dimension_numbers = #tpu.dot_dimension_numbers<[1], [0], [0], [1], [0, 0, 1, 1], [], []>} : vector<8x128xf32>, vector<128x512xf32>, vector<8x512xf32> -> vector<8x512xf32>
    %285 = arith.addf %281, %284 : vector<8x512xf32>
    %286 = vector.extract_strided_slice %285 {offsets = [0, 0], sizes = [8, 128], strides = [1, 1]} : vector<8x512xf32> to vector<8x128xf32>
    %287 = arith.negf %286 : vector<8x128xf32>
    %288 = math.exp %287 : vector<8x128xf32>
    %cst_139 = arith.constant 1.000000e+00 : f32
    %289 = vector.broadcast %cst_139 : f32 to vector<8x128xf32>
    %290 = arith.addf %289, %288 : vector<8x128xf32>
    %291 = arith.divf %289, %290 : vector<8x128xf32>
    %292 = vector.extract_strided_slice %285 {offsets = [0, 128], sizes = [8, 128], strides = [1, 1]} : vector<8x512xf32> to vector<8x128xf32>
    %293 = arith.negf %292 : vector<8x128xf32>
    %294 = math.exp %293 : vector<8x128xf32>
    %cst_140 = arith.constant 1.000000e+00 : f32
    %295 = vector.broadcast %cst_140 : f32 to vector<8x128xf32>
    %296 = arith.addf %295, %294 : vector<8x128xf32>
    %297 = arith.divf %295, %296 : vector<8x128xf32>
    %298 = vector.extract_strided_slice %285 {offsets = [0, 256], sizes = [8, 128], strides = [1, 1]} : vector<8x512xf32> to vector<8x128xf32>
    %299 = math.tanh %298 : vector<8x128xf32>
    %300 = vector.extract_strided_slice %285 {offsets = [0, 384], sizes = [8, 128], strides = [1, 1]} : vector<8x512xf32> to vector<8x128xf32>
    %301 = arith.negf %300 : vector<8x128xf32>
    %302 = math.exp %301 : vector<8x128xf32>
    %cst_141 = arith.constant 1.000000e+00 : f32
    %303 = vector.broadcast %cst_141 : f32 to vector<8x128xf32>
    %304 = arith.addf %303, %302 : vector<8x128xf32>
    %305 = arith.divf %303, %304 : vector<8x128xf32>
    %c0_142 = arith.constant 0 : index
    %c0_143 = arith.constant 0 : index
    %306 = vector.load %arg13[%c0_142, %c0_143] : memref<8x128xf32, #tpu.memory_space<vmem>>, vector<8x128xf32>
    %307 = arith.mulf %297, %306 : vector<8x128xf32>
    %308 = arith.mulf %291, %299 : vector<8x128xf32>
    %309 = arith.addf %307, %308 : vector<8x128xf32>
    %310 = math.tanh %309 : vector<8x128xf32>
    %311 = arith.mulf %305, %310 : vector<8x128xf32>
    %c0_144 = arith.constant 0 : index
    %c0_145 = arith.constant 0 : index
    %312 = vector.load %arg13[%c0_144, %c0_145] : memref<8x128xf32, #tpu.memory_space<vmem>>, vector<8x128xf32>
    tpu.vector_store %arg13[%c0_144, %c0_145], %309 {strides = array<i32>} : memref<8x128xf32, #tpu.memory_space<vmem>>, vector<8x128xf32>,
    %c0_146 = arith.constant 0 : index
    %c0_147 = arith.constant 0 : index
    %313 = vector.load %arg12[%c0_146, %c0_147] : memref<8x128xf32, #tpu.memory_space<vmem>>, vector<8x128xf32>
    tpu.vector_store %arg12[%c0_146, %c0_147], %311 {strides = array<i32>} : memref<8x128xf32, #tpu.memory_space<vmem>>, vector<8x128xf32>,
    %314 = arith.index_cast %279 : i32 to index
    %c0_148 = arith.constant 0 : index
    %315 = vector.load %arg11[%314, %c0_148] : memref<64x128xf32, #tpu.memory_space<vmem>>, vector<8x128xf32>
    tpu.vector_store %arg11[%314, %c0_148], %311 {strides = array<i32>} : memref<64x128xf32, #tpu.memory_space<vmem>>, vector<8x128xf32>,
    %c8_i32_149 = arith.constant 8 : i32
    %c0_150 = arith.constant 0 : index
    %c0_151 = arith.constant 0 : index
    %316 = vector.load %arg11[%c0_150, %c0_151] : memref<64x128xf32, #tpu.memory_space<vmem>>, vector<64x128xf32>
    %c0_152 = arith.constant 0 : index
    %c0_153 = arith.constant 0 : index
    %317 = vector.load %arg6[%c0_152, %c0_153] : memref<128x384xf32, #tpu.memory_space<vmem>>, vector<128x384xf32>
    %cst_154 = arith.constant dense<0.000000e+00> : vector<64x384xf32>
    %318 = tpu.matmul %316, %317, %cst_154 {dimension_numbers = #tpu.dot_dimension_numbers<[1], [0], [0], [1], [0, 0, 1, 1], [], []>} : vector<64x128xf32>, vector<128x384xf32>, vector<64x384xf32> -> vector<64x384xf32>
    %c0_155 = arith.constant 0 : index
    %c0_156 = arith.constant 0 : index
    %319 = vector.load %arg7[%c0_155, %c0_156] : memref<1x384xf32, #tpu.memory_space<vmem>>, vector<1x384xf32>
    %320 = vector.broadcast %319 : vector<1x384xf32> to vector<64x384xf32>
    %321 = arith.addf %318, %320 : vector<64x384xf32>
    %322 = vector.extract_strided_slice %321 {offsets = [0, 0], sizes = [64, 128], strides = [1, 1]} : vector<64x384xf32> to vector<64x128xf32>
    %323 = arith.negf %322 : vector<64x128xf32>
    %324 = math.exp %323 : vector<64x128xf32>
    %cst_157 = arith.constant 1.000000e+00 : f32
    %325 = vector.broadcast %cst_157 : f32 to vector<64x128xf32>
    %326 = arith.addf %325, %324 : vector<64x128xf32>
    %327 = arith.divf %325, %326 : vector<64x128xf32>
    %c0_158 = arith.constant 0 : index
    %c0_159 = arith.constant 0 : index
    %c0_160 = arith.constant 0 : index
    %328 = vector.load %arg2[%c0_158, %c0_159, %c0_160] : memref<8x8x1xi32, #tpu.memory_space<vmem>>, vector<8x8x1xi32>
    %329 = vector.shape_cast %328 : vector<8x8x1xi32> to vector<64x1xi32>
    %330 = tpu.iota {dimensions = array<i32: 1>} : vector<64x128xi32>
    %331 = vector.broadcast %329 : vector<64x1xi32> to vector<64x128xi32>
    %332 = arith.cmpi eq, %330, %331 : vector<64x128xi32>
    %cst_161 = arith.constant 0.000000e+00 : f32
    %333 = vector.broadcast %cst_161 : f32 to vector<64x128xf32>
    %334 = arith.select %332, %327, %333 : vector<64x128xi1>, vector<64x128xf32>
    %cst_162 = arith.constant dense<0.000000e+00> : vector<64xf32>
    %335 = vector.multi_reduction <add>, %334, %cst_162 [1] : vector<64x128xf32> to vector<64xf32>
    %336 = vector.shape_cast %335 : vector<64xf32> to vector<64x1xf32>
    %337 = vector.extract_strided_slice %321 {offsets = [0, 128], sizes = [64, 128], strides = [1, 1]} : vector<64x384xf32> to vector<64x128xf32>
    %338 = vector.extract_strided_slice %321 {offsets = [0, 256], sizes = [64, 128], strides = [1, 1]} : vector<64x384xf32> to vector<64x128xf32>
    %339 = arith.negf %338 : vector<64x128xf32>
    %340 = math.exp %339 : vector<64x128xf32>
    %cst_163 = arith.constant 1.000000e+00 : f32
    %341 = vector.broadcast %cst_163 : f32 to vector<64x128xf32>
    %342 = arith.addf %341, %340 : vector<64x128xf32>
    %343 = arith.divf %341, %342 : vector<64x128xf32>
    %344 = tpu.iota {dimensions = array<i32: 1>} : vector<64x128xi32>
    %c0_i32_164 = arith.constant 0 : i32
    %345 = vector.broadcast %c0_i32_164 : i32 to vector<64x128xi32>
    %346 = arith.cmpi eq, %344, %345 : vector<64x128xi32>
    %cst_165 = arith.constant 0.000000e+00 : f32
    %347 = vector.broadcast %cst_165 : f32 to vector<64x128xf32>
    %348 = arith.select %346, %343, %347 : vector<64x128xi1>, vector<64x128xf32>
    %cst_166 = arith.constant dense<0.000000e+00> : vector<64xf32>
    %349 = vector.multi_reduction <add>, %348, %cst_166 [1] : vector<64x128xf32> to vector<64xf32>
    %350 = vector.shape_cast %349 : vector<64xf32> to vector<64x1xf32>
    %351 = vector.shape_cast %337 : vector<64x128xf32> to vector<8x8x128xf32>
    %c0_167 = arith.constant 0 : index
    %c0_168 = arith.constant 0 : index
    %c0_169 = arith.constant 0 : index
    %352 = vector.load %arg8[%c0_167, %c0_168, %c0_169] : memref<8x8x128xf32, #tpu.memory_space<vmem>>, vector<8x8x128xf32>
    tpu.vector_store %arg8[%c0_167, %c0_168, %c0_169], %351 {strides = array<i32>} : memref<8x8x128xf32, #tpu.memory_space<vmem>>, vector<8x8x128xf32>,
    %c0_i32_170 = arith.constant 0 : i32
    %353 = vector.broadcast %c0_i32_170 : i32 to vector<64x128xi32>
    %354 = arith.cmpi eq, %344, %353 : vector<64x128xi32>
    %cst_171 = arith.constant 0.000000e+00 : f32
    %355 = vector.shape_cast %336 : vector<64x1xf32> to vector<64x1xf32>
    %356 = vector.broadcast %355 : vector<64x1xf32> to vector<64x128xf32>
    %357 = vector.broadcast %cst_171 : f32 to vector<64x128xf32>
    %358 = arith.select %354, %356, %357 : vector<64x128xi1>, vector<64x128xf32>
    %c1_i32_172 = arith.constant 1 : i32
    %359 = vector.broadcast %c1_i32_172 : i32 to vector<64x128xi32>
    %360 = arith.cmpi eq, %344, %359 : vector<64x128xi32>
    %cst_173 = arith.constant 0.000000e+00 : f32
    %361 = vector.shape_cast %350 : vector<64x1xf32> to vector<64x1xf32>
    %362 = vector.broadcast %361 : vector<64x1xf32> to vector<64x128xf32>
    %363 = vector.broadcast %cst_173 : f32 to vector<64x128xf32>
    %364 = arith.select %360, %362, %363 : vector<64x128xi1>, vector<64x128xf32>
    %365 = arith.addf %358, %364 : vector<64x128xf32>
    %366 = vector.shape_cast %365 : vector<64x128xf32> to vector<8x8x128xf32>
    %c0_174 = arith.constant 0 : index
    %c0_175 = arith.constant 0 : index
    %c0_176 = arith.constant 0 : index
    %367 = vector.load %arg9[%c0_174, %c0_175, %c0_176] : memref<8x8x128xf32, #tpu.memory_space<vmem>>, vector<8x8x128xf32>
    tpu.vector_store %arg9[%c0_174, %c0_175, %c0_176], %366 {strides = array<i32>} : memref<8x8x128xf32, #tpu.memory_space<vmem>>, vector<8x8x128xf32>,
    return
  }
  func.func @transform_0(%arg0: i32) -> (i32, i32, i32) {
    %c0_i32 = arith.constant 0 : i32
    %c0_i32_0 = arith.constant 0 : i32
    %c0_i32_1 = arith.constant 0 : i32
    return %c0_i32, %arg0, %c0_i32_0 : i32, i32, i32
  }
  func.func @transform_1(%arg0: i32) -> (i32, i32, i32) {
    %c0_i32 = arith.constant 0 : i32
    %c0_i32_0 = arith.constant 0 : i32
    %c0_i32_1 = arith.constant 0 : i32
    return %c0_i32, %arg0, %c0_i32_0 : i32, i32, i32
  }
  func.func @transform_2(%arg0: i32) -> (i32, i32) {
    %c0_i32 = arith.constant 0 : i32
    %c0_i32_0 = arith.constant 0 : i32
    %c0_i32_1 = arith.constant 0 : i32
    return %c0_i32, %c0_i32_0 : i32, i32
  }
  func.func @transform_3(%arg0: i32) -> (i32, i32) {
    %c0_i32 = arith.constant 0 : i32
    %c0_i32_0 = arith.constant 0 : i32
    %c0_i32_1 = arith.constant 0 : i32
    return %c0_i32, %c0_i32_0 : i32, i32
  }
  func.func @transform_4(%arg0: i32) -> (i32, i32) {
    %c0_i32 = arith.constant 0 : i32
    %c0_i32_0 = arith.constant 0 : i32
    %c0_i32_1 = arith.constant 0 : i32
    return %c0_i32, %c0_i32_0 : i32, i32
  }
  func.func @transform_5(%arg0: i32) -> (i32, i32) {
    %c0_i32 = arith.constant 0 : i32
    %c0_i32_0 = arith.constant 0 : i32
    %c0_i32_1 = arith.constant 0 : i32
    return %c0_i32, %c0_i32_0 : i32, i32
  }
  func.func @transform_6(%arg0: i32) -> (i32, i32) {
    %c0_i32 = arith.constant 0 : i32
    %c0_i32_0 = arith.constant 0 : i32
    %c0_i32_1 = arith.constant 0 : i32
    return %c0_i32, %c0_i32_0 : i32, i32
  }
  func.func @transform_7(%arg0: i32) -> (i32, i32, i32) {
    %c0_i32 = arith.constant 0 : i32
    %c0_i32_0 = arith.constant 0 : i32
    %c0_i32_1 = arith.constant 0 : i32
    return %c0_i32, %arg0, %c0_i32_0 : i32, i32, i32
  }
  func.func @transform_8(%arg0: i32) -> (i32, i32, i32) {
    %c0_i32 = arith.constant 0 : i32
    %c0_i32_0 = arith.constant 0 : i32
    %c0_i32_1 = arith.constant 0 : i32
    return %c0_i32, %arg0, %c0_i32_0 : i32, i32, i32
  }
}

</mosaic_0001>

<bundles_post_ra>
// kernel: tpu_custom_call.1
= control target key start
LH: loop header
LB: loop body
LE: loop exit
PB: predicated region body
PF: predicated region fallthrough
CT: control target
= control target key end

     0   :  { %14 = vsyncpa [#allocation7], 0  ;;  %s4559_s0 = inlined_call_operand.vmem [shape: f32[8,8,128], index: 0, kind: input, shape index: {}]   ;;  %s4560_s1 = inlined_call_operand.vmem [shape: s32[8,8,1], index: 1, kind: input, shape index: {}]   ;;  %s4561_s2 = inlined_call_operand.hbm [shape: f32[128,512], index: 2, kind: input, shape index: {}]   ;;  %s4562_s3 = inlined_call_operand.hbm [shape: f32[128,512], index: 3, kind: input, shape index: {}]   ;;  %s4563_s4 = inlined_call_operand.vmem [shape: f32[1,512], index: 4, kind: input, shape index: {}]   ;;  %s4564_s5 = inlined_call_operand.hbm [shape: f32[128,384], index: 5, kind: input, shape index: {}]   ;;  %s4565_s6 = inlined_call_operand.vmem [shape: f32[1,384], index: 6, kind: input, shape index: {}]   ;;  %s4566_s7 = inlined_call_operand.hbm [shape: f32[8,8,128], index: 7, kind: output, shape index: {0}]   ;;  %s4567_s8 = inlined_call_operand.hbm [shape: f32[8,8,128], index: 8, kind: output, shape index: {1}]  }
   0x1   :  { %15 = vsyncpa [#allocation10], 0 }
   0x2   :  { %16 = vsyncpa [#allocation8], 0 }
   0x3   :  { %17 = vsyncpa [#allocation14], 0  ;;  %s3383_s27 = smov [#allocation9]   ;;  %s3384_s29 = smov [#allocation6]  }
   0x4   :  { %s39_s28 = sshll.u32 %s3383_s27, 4  ;;  %s27_s30 = sshll.u32 %s3384_s29, 4  ;;  %s40_s28 = int_to_ptr.vmem [resolvable:$true] %s39_s28  ;;  %s28_s30 = int_to_ptr.vmem [resolvable:$true] %s27_s30 }
   0x5   :  { %s3283_s9 = scalar_lea.vmem %s40_s28, 8192  ;;  %p3288_p1 = scmp.lt.s32.totalorder %s40_s28, %s40_s28 }
   0x6   :  { %p3284_p0 = scmp.ne.s32.totalorder %s40_s28, %s3283_s9  ;;  %p3289_p2 = scmp.lt.s32.totalorder %s3283_s9, %s3283_s9 }
   0x8   :  { %p3290_p3 = por %p3289_p2, %p3288_p1 }
   0xa   :  { %p3291_p4 = pnand %p3290_p3, %p3284_p0 }
   0xc   :  { %3294 = shalt.err (!%p3291_p4)
}
   0xd   :  { %s3385_s10 = smov 512   ;;  %s3386_s11 = smov 32  }
   0xe   :  { %45 = dma.hbm_to_vmem [thread:$0]  %s4562_s3, 8192, %s40_s28, [#allocation10], %s3385_s10, %s3385_s10, %s3386_s11  }
   0xf   :  { %s3303_s14 = scalar_lea.vmem %s28_s30, 8192  ;;  %p3308_p6 = scmp.lt.s32.totalorder %s28_s30, %s28_s30 }
  0x10   :  { %p3304_p5 = scmp.ne.s32.totalorder %s28_s30, %s3303_s14  ;;  %p3309_p7 = scmp.lt.s32.totalorder %s3303_s14, %s3303_s14 }
  0x12   :  { %p3310_p8 = por %p3309_p7, %p3308_p6 }
  0x14   :  { %p3311_p9 = pnand %p3310_p8, %p3304_p5 }
  0x16   :  { %3314 = shalt.err (!%p3311_p9)
}
  0x17   :  { %33 = dma.hbm_to_vmem [thread:$0]  %s4561_s2, 8192, %s28_s30, [#allocation7], %s3385_s10, %s3385_s10, %s3386_s11  }
  0x18   :  { %s3387_s17 = smov [#allocation11]  }
  0x19   :  { %s53_s18 = sshll.u32 %s3387_s17, 4  ;;  %s54_s18 = int_to_ptr.vmem [resolvable:$true] %s53_s18 }
  0x1a   :  { %s3323_s19 = scalar_lea.vmem %s54_s18, 6144  ;;  %p3328_p11 = scmp.lt.s32.totalorder %s54_s18, %s54_s18 }
  0x1b   :  { %p3324_p10 = scmp.ne.s32.totalorder %s54_s18, %s3323_s19  ;;  %p3329_p12 = scmp.lt.s32.totalorder %s3323_s19, %s3323_s19 }
  0x1d   :  { %p3330_p13 = por %p3329_p12, %p3328_p11 }
  0x1f   :  { %p3331_p0 = pnand %p3330_p13, %p3324_p10 }
  0x21   :  { %3334 = shalt.err (!%p3331_p0)
}
  0x22   :  { %s3388_s3 = smov 384   ;;  %s3389_s20 = smov 24  }
  0x23   :  { %59 = dma.hbm_to_vmem [thread:$0]  %s4564_s5, 6144, %s54_s18, [#allocation10], %s3388_s3, %s3388_s3, %s3389_s20  }
  0x24   :  { %3375 = dma.done.wait [#allocation7], 8192  }
  0x25   :  { %3376 = vsyncadd [#allocation7], 4294959104 }
  0x26   :  { %3377 = dma.done.wait [#allocation10], 14336  }
  0x27   :  { %3378 = vsyncadd [#allocation10], 4294952960  ;;  %v4568_v0 = vmov 0.0   ;;  %v140_v1 = vld [vmem:[#allocation6 + $0x1e8] sm:$0xff]  ;;  %v142_v2 = vld [vmem:[#allocation6 + $0x1f8] sm:$0xff] }
  0x28   :  { %229 = vmatprep.mubr.f32.mxu0 %v4568_v0  ;;  %342 = vmatprep.mubr.f32.mxu1 %v4568_v0  ;;  %v139_v3 = vld [vmem:[#allocation6 + $0x1e0] sm:$0xff]  ;;  %v141_v4 = vld [vmem:[#allocation6 + $0x1f0] sm:$0xff]  ;;  %v136_v5 = vld [vmem:[#allocation6 + $0x1c8] sm:$0xff] }
  0x29   :  { %165 = vmatprep.subr.mxu0 %v140_v1  ;;  %278 = vmatprep.subr.mxu1 %v142_v2  ;;  %v138_v6 = vld [vmem:[#allocation6 + $0x1d8] sm:$0xff]  ;;  %v135_v7 = vld [vmem:[#allocation6 + $0x1c0] sm:$0xff]  ;;  %v137_v8 = vld [vmem:[#allocation6 + $0x1d0] sm:$0xff] }
  0x2a   :  { %166 = vmatpush1.msra.mxu0 %v139_v3  ;;  %279 = vmatpush1.msra.mxu1 %v141_v4  ;;  %v132_v9 = vld [vmem:[#allocation6 + $0x1a8] sm:$0xff]  ;;  %v134_v10 = vld [vmem:[#allocation6 + $0x1b8] sm:$0xff]  ;;  %v131_v11 = vld [vmem:[#allocation6 + $0x1a0] sm:$0xff] }
  0x2b   :  { %167 = vmatprep.subr.mxu0 %v136_v5  ;;  %280 = vmatprep.subr.mxu1 %v138_v6  ;;  %v133_v12 = vld [vmem:[#allocation6 + $0x1b0] sm:$0xff]  ;;  %v128_v13 = vld [vmem:[#allocation6 + $0x188] sm:$0xff]  ;;  %v130_v14 = vld [vmem:[#allocation6 + $0x198] sm:$0xff] }
  0x2c   :  { %168 = vmatpush1.msra.mxu0 %v135_v7  ;;  %281 = vmatpush1.msra.mxu1 %v137_v8  ;;  %v127_v15 = vld [vmem:[#allocation6 + $0x180] sm:$0xff]  ;;  %v129_v16 = vld [vmem:[#allocation6 + $0x190] sm:$0xff]  ;;  %v124_v17 = vld [vmem:[#allocation6 + $0x168] sm:$0xff] }
  0x2d   :  { %169 = vmatprep.subr.mxu0 %v132_v9  ;;  %282 = vmatprep.subr.mxu1 %v134_v10  ;;  %v126_v18 = vld [vmem:[#allocation6 + $0x178] sm:$0xff]  ;;  %v123_v19 = vld [vmem:[#allocation6 + $0x160] sm:$0xff]  ;;  %v125_v20 = vld [vmem:[#allocation6 + $0x170] sm:$0xff] }
  0x2e   :  { %170 = vmatpush1.msra.mxu0 %v131_v11  ;;  %283 = vmatpush1.msra.mxu1 %v133_v12  ;;  %v120_v21 = vld [vmem:[#allocation6 + $0x148] sm:$0xff]  ;;  %v122_v22 = vld [vmem:[#allocation6 + $0x158] sm:$0xff]  ;;  %v119_v23 = vld [vmem:[#allocation6 + $0x140] sm:$0xff] }
  0x2f   :  { %171 = vmatprep.subr.mxu0 %v128_v13  ;;  %284 = vmatprep.subr.mxu1 %v130_v14  ;;  %v121_v24 = vld [vmem:[#allocation6 + $0x150] sm:$0xff]  ;;  %v116_v25 = vld [vmem:[#allocation6 + $0x128] sm:$0xff]  ;;  %v118_v26 = vld [vmem:[#allocation6 + $0x138] sm:$0xff] }
  0x30   :  { %172 = vmatpush1.msra.mxu0 %v127_v15  ;;  %285 = vmatpush1.msra.mxu1 %v129_v16  ;;  %v115_v27 = vld [vmem:[#allocation6 + $0x120] sm:$0xff]  ;;  %v117_v28 = vld [vmem:[#allocation6 + $0x130] sm:$0xff]  ;;  %v112_v29 = vld [vmem:[#allocation6 + $0x108] sm:$0xff] }
  0x31   :  { %173 = vmatprep.subr.mxu0 %v124_v17  ;;  %286 = vmatprep.subr.mxu1 %v126_v18  ;;  %v114_v30 = vld [vmem:[#allocation6 + $0x118] sm:$0xff]  ;;  %v111_v31 = vld [vmem:[#allocation6 + $0x100] sm:$0xff]  ;;  %v113_v32 = vld [vmem:[#allocation6 + $0x110] sm:$0xff] }
  0x32   :  { %174 = vmatpush1.msra.mxu0 %v123_v19  ;;  %287 = vmatpush1.msra.mxu1 %v125_v20  ;;  %v108_v33 = vld [vmem:[#allocation6 + $0xe8] sm:$0xff]  ;;  %v110_v34 = vld [vmem:[#allocation6 + $0xf8] sm:$0xff]  ;;  %v107_v35 = vld [vmem:[#allocation6 + $0xe0] sm:$0xff] }
  0x33   :  { %175 = vmatprep.subr.mxu0 %v120_v21  ;;  %288 = vmatprep.subr.mxu1 %v122_v22  ;;  %v109_v36 = vld [vmem:[#allocation6 + $0xf0] sm:$0xff]  ;;  %v104_v37 = vld [vmem:[#allocation6 + $0xc8] sm:$0xff]  ;;  %v106_v38 = vld [vmem:[#allocation6 + $0xd8] sm:$0xff] }
  0x34   :  { %176 = vmatpush1.msra.mxu0 %v119_v23  ;;  %289 = vmatpush1.msra.mxu1 %v121_v24  ;;  %v103_v39 = vld [vmem:[#allocation6 + $0xc0] sm:$0xff]  ;;  %v105_v40 = vld [vmem:[#allocation6 + $0xd0] sm:$0xff]  ;;  %v100_v41 = vld [vmem:[#allocation6 + $0xa8] sm:$0xff] }
  0x35   :  { %177 = vmatprep.subr.mxu0 %v116_v25  ;;  %290 = vmatprep.subr.mxu1 %v118_v26  ;;  %v102_v42 = vld [vmem:[#allocation6 + $0xb8] sm:$0xff]  ;;  %v99_v43 = vld [vmem:[#allocation6 + $0xa0] sm:$0xff]  ;;  %v101_v44 = vld [vmem:[#allocation6 + $0xb0] sm:$0xff] }
  0x36   :  { %178 = vmatpush1.msra.mxu0 %v115_v27  ;;  %291 = vmatpush1.msra.mxu1 %v117_v28  ;;  %v96_v45 = vld [vmem:[#allocation6 + $0x88] sm:$0xff]  ;;  %v98_v46 = vld [vmem:[#allocation6 + $0x98] sm:$0xff]  ;;  %v95_v47 = vld [vmem:[#allocation6 + $0x80] sm:$0xff] }
  0x37   :  { %179 = vmatprep.subr.mxu0 %v112_v29  ;;  %292 = vmatprep.subr.mxu1 %v114_v30  ;;  %v97_v48 = vld [vmem:[#allocation6 + $0x90] sm:$0xff]  ;;  %v92_v49 = vld [vmem:[#allocation6 + $0x68] sm:$0xff]  ;;  %v94_v50 = vld [vmem:[#allocation6 + $0x78] sm:$0xff] }
  0x38   :  { %180 = vmatpush1.msra.mxu0 %v111_v31  ;;  %293 = vmatpush1.msra.mxu1 %v113_v32  ;;  %v91_v51 = vld [vmem:[#allocation6 + $0x60] sm:$0xff]  ;;  %v93_v52 = vld [vmem:[#allocation6 + $0x70] sm:$0xff]  ;;  %v88_v53 = vld [vmem:[#allocation6 + $0x48] sm:$0xff] }
  0x39   :  { %181 = vmatprep.subr.mxu0 %v108_v33  ;;  %294 = vmatprep.subr.mxu1 %v110_v34  ;;  %v90_v54 = vld [vmem:[#allocation6 + $0x58] sm:$0xff]  ;;  %v87_v55 = vld [vmem:[#allocation6 + $0x40] sm:$0xff]  ;;  %v89_v56 = vld [vmem:[#allocation6 + $0x50] sm:$0xff] }
  0x3a   :  { %182 = vmatpush1.msra.mxu0 %v107_v35  ;;  %295 = vmatpush1.msra.mxu1 %v109_v36  ;;  %v84_v57 = vld [vmem:[#allocation6 + $0x28] sm:$0xff]  ;;  %v86_v58 = vld [vmem:[#allocation6 + $0x38] sm:$0xff]  ;;  %v83_v59 = vld [vmem:[#allocation6 + $0x20] sm:$0xff] }
  0x3b   :  { %183 = vmatprep.subr.mxu0 %v104_v37  ;;  %296 = vmatprep.subr.mxu1 %v106_v38  ;;  %v85_v60 = vld [vmem:[#allocation6 + $0x30] sm:$0xff]  ;;  %v80_v61 = vld [vmem:[#allocation6 + $0x8] sm:$0xff]  ;;  %v82_v62 = vld [vmem:[#allocation6 + $0x18] sm:$0xff] }
  0x3c   :  { %184 = vmatpush1.msra.mxu0 %v103_v39  ;;  %297 = vmatpush1.msra.mxu1 %v105_v40  ;;  %v79_v63 = vld [vmem:[#allocation6] sm:$0xff]  ;;  %v81_v1 = vld [vmem:[#allocation6 + $0x10] sm:$0xff]  ;;  %v3455_v3 = vld [vmem:[#allocation9 + $0x1e8] sm:$0xff] }
  0x3d   :  { %185 = vmatprep.subr.mxu0 %v100_v41  ;;  %298 = vmatprep.subr.mxu1 %v102_v42  ;;  %v71_v2 = vld [vmem:[%s4559_s0] sm:$0xff]  ;;  %v3457_v4 = vld [vmem:[#allocation9 + $0x1f8] sm:$0xff]  ;;  %v3461_v6 = vld [vmem:[#allocation9 + $0x1f0] sm:$0xff] }
  0x3e   :  { %186 = vmatpush1.msra.mxu0 %v99_v43  ;;  %299 = vmatpush1.msra.mxu1 %v101_v44  ;;  %v3459_v5 = vld [vmem:[#allocation9 + $0x1e0] sm:$0xff]  ;;  %v3463_v7 = vld [vmem:[#allocation9 + $0x1c8] sm:$0xff]  ;;  %v3465_v8 = vld [vmem:[#allocation9 + $0x1d8] sm:$0xff] }
  0x3f   :  { %187 = vmatprep.subr.mxu0 %v96_v45  ;;  %300 = vmatprep.subr.mxu1 %v98_v46  ;;  %v3471_v9 = vld [vmem:[#allocation9 + $0x1c0] sm:$0xff]  ;;  %v3473_v10 = vld [vmem:[#allocation9 + $0x1d0] sm:$0xff]  ;;  %v72_v11 = vld [vmem:[%s4559_s0 + $0x8] sm:$0xff] }
  0x40   :  { %188 = vmatpush1.msra.mxu0 %v95_v47  ;;  %301 = vmatpush1.msra.mxu1 %v97_v48  ;;  %v3482_v12 = vld [vmem:[#allocation9 + $0x1a8] sm:$0xff]  ;;  %v3484_v13 = vld [vmem:[#allocation9 + $0x1b8] sm:$0xff]  ;;  %v3488_v14 = vld [vmem:[#allocation9 + $0x1a0] sm:$0xff] }
  0x41   :  { %189 = vmatprep.subr.mxu0 %v92_v49  ;;  %302 = vmatprep.subr.mxu1 %v94_v50  ;;  %v3490_v15 = vld [vmem:[#allocation9 + $0x1b0] sm:$0xff]  ;;  %v3492_v16 = vld [vmem:[#allocation9 + $0x188] sm:$0xff]  ;;  %v3494_v17 = vld [vmem:[#allocation9 + $0x198] sm:$0xff] }
  0x42   :  { %190 = vmatpush1.msra.mxu0 %v91_v51  ;;  %303 = vmatpush1.msra.mxu1 %v93_v52  ;;  %v3500_v18 = vld [vmem:[#allocation9 + $0x180] sm:$0xff]  ;;  %v3502_v19 = vld [vmem:[#allocation9 + $0x190] sm:$0xff]  ;;  %v3511_v21 = vld [vmem:[#allocation9 + $0x168] sm:$0xff] }
  0x43   :  { %191 = vmatprep.subr.mxu0 %v88_v53  ;;  %304 = vmatprep.subr.mxu1 %v90_v54  ;;  %v73_v20 = vld [vmem:[%s4559_s0 + $0x10] sm:$0xff]  ;;  %v3513_v22 = vld [vmem:[#allocation9 + $0x178] sm:$0xff]  ;;  %v3517_v23 = vld [vmem:[#allocation9 + $0x160] sm:$0xff] }
  0x44   :  { %192 = vmatpush1.msra.mxu0 %v87_v55  ;;  %305 = vmatpush1.msra.mxu1 %v89_v56  ;;  %v3519_v24 = vld [vmem:[#allocation9 + $0x170] sm:$0xff]  ;;  %v3521_v25 = vld [vmem:[#allocation9 + $0x148] sm:$0xff]  ;;  %v3523_v26 = vld [vmem:[#allocation9 + $0x158] sm:$0xff] }
  0x45   :  { %193 = vmatprep.subr.mxu0 %v84_v57  ;;  %306 = vmatprep.subr.mxu1 %v86_v58  ;;  %v3529_v27 = vld [vmem:[#allocation9 + $0x140] sm:$0xff]  ;;  %v3531_v28 = vld [vmem:[#allocation9 + $0x150] sm:$0xff]  ;;  %v74_v29 = vld [vmem:[%s4559_s0 + $0x18] sm:$0xff] }
  0x46   :  { %194 = vmatpush1.msra.mxu0 %v83_v59  ;;  %307 = vmatpush1.msra.mxu1 %v85_v60  ;;  %v3540_v30 = vld [vmem:[#allocation9 + $0x128] sm:$0xff]  ;;  %v3542_v31 = vld [vmem:[#allocation9 + $0x138] sm:$0xff]  ;;  %v3546_v32 = vld [vmem:[#allocation9 + $0x120] sm:$0xff] }
  0x47   :  { %195 = vmatprep.subr.mxu0 %v80_v61  ;;  %308 = vmatprep.subr.mxu1 %v82_v62  ;;  %v3548_v33 = vld [vmem:[#allocation9 + $0x130] sm:$0xff]  ;;  %v3550_v34 = vld [vmem:[#allocation9 + $0x108] sm:$0xff]  ;;  %v3552_v35 = vld [vmem:[#allocation9 + $0x118] sm:$0xff] }
  0x48   :  { %196 = vmatpush1.msra.mxu0 %v79_v63  ;;  %309 = vmatpush1.msra.mxu1 %v81_v1  ;;  %v3558_v36 = vld [vmem:[#allocation9 + $0x100] sm:$0xff]  ;;  %v3560_v37 = vld [vmem:[#allocation9 + $0x110] sm:$0xff]  ;;  %v3569_v39 = vld [vmem:[#allocation9 + $0xe8] sm:$0xff] }
  0x49   :  { %230 = vmatmul.mubr.f32.vlgmr.msra.gmra.mxu0 %v71_v2  ;;  %343 = vmatmul.mubr.f32.vlgmr.msra.gmra.mxu1 %v71_v2  ;;  %v75_v38 = vld [vmem:[%s4559_s0 + $0x20] sm:$0xff]  ;;  %v3571_v40 = vld [vmem:[#allocation9 + $0xf8] sm:$0xff]  ;;  %v3577_v42 = vld [vmem:[#allocation9 + $0xf0] sm:$0xff] }
  0x4a   :  { %497 = vmatprep.subr.mxu0 %v3455_v3  ;;  %568 = vmatprep.subr.mxu1 %v3457_v4  ;;  %v3575_v41 = vld [vmem:[#allocation9 + $0xe0] sm:$0xff]  ;;  %v3579_v43 = vld [vmem:[#allocation9 + $0xc8] sm:$0xff]  ;;  %v3581_v44 = vld [vmem:[#allocation9 + $0xd8] sm:$0xff] }
  0x4b   :  { %498 = vmatpush1.msra.mxu0 %v3459_v5  ;;  %569 = vmatpush1.msra.mxu1 %v3461_v6  ;;  %v3587_v45 = vld [vmem:[#allocation9 + $0xc0] sm:$0xff]  ;;  %v3589_v46 = vld [vmem:[#allocation9 + $0xd0] sm:$0xff]  ;;  %v76_v47 = vld [vmem:[%s4559_s0 + $0x28] sm:$0xff] }
  0x4c   :  { %499 = vmatprep.subr.mxu0 %v3463_v7  ;;  %570 = vmatprep.subr.mxu1 %v3465_v8  ;;  %v3598_v48 = vld [vmem:[#allocation9 + $0xa8] sm:$0xff]  ;;  %v3600_v49 = vld [vmem:[#allocation9 + $0xb8] sm:$0xff]  ;;  %v3604_v50 = vld [vmem:[#allocation9 + $0xa0] sm:$0xff] }
  0x4d   :  { %235 = vmatprep.mubr.f32.mxu0 %v4568_v0  ;;  %348 = vmatprep.mubr.f32.mxu1 %v4568_v0  ;;  %v3606_v51 = vld [vmem:[#allocation9 + $0xb0] sm:$0xff]  ;;  %v3608_v52 = vld [vmem:[#allocation9 + $0x88] sm:$0xff]  ;;  %v3610_v53 = vld [vmem:[#allocation9 + $0x98] sm:$0xff] }
  0x4e   :  { %500 = vmatpush1.msra.mxu0 %v3471_v9  ;;  %571 = vmatpush1.msra.mxu1 %v3473_v10  ;;  %4648 = vst [vmem:[#allocation19_spill] sm:$0xff] %v3606_v51  ;;  %4649 = vst [vmem:[#allocation20_spill] sm:$0xff] %v3608_v52  ;;  %v3616_v54 = vld [vmem:[#allocation9 + $0x80] sm:$0xff]  ;;  %v3618_v55 = vld [vmem:[#allocation9 + $0x90] sm:$0xff] }
  0x4f   :  { %236 = vmatmul.mubr.f32.gmra.mxu0 %v72_v11  ;;  %349 = vmatmul.mubr.f32.gmra.mxu1 %v72_v11  ;;  %4650 = vst [vmem:[#allocation21_spill] sm:$0xff] %v3610_v53  ;;  %4651 = vst [vmem:[#allocation22_spill] sm:$0xff] %v3616_v54  ;;  %v77_v56 = vld [vmem:[%s4559_s0 + $0x30] sm:$0xff]  ;;  %v3627_v57 = vld [vmem:[#allocation9 + $0x68] sm:$0xff] }
  0x50   :  { %501 = vmatprep.subr.mxu0 %v3482_v12  ;;  %572 = vmatprep.subr.mxu1 %v3484_v13  ;;  %4652 = vst [vmem:[#allocation23_spill] sm:$0xff] %v3618_v55  ;;  %4653 = vst [vmem:[#allocation24_spill] sm:$0xff] %v3627_v57  ;;  %v3629_v58 = vld [vmem:[#allocation9 + $0x78] sm:$0xff]  ;;  %v3633_v59 = vld [vmem:[#allocation9 + $0x60] sm:$0xff] }
  0x51   :  { %502 = vmatpush1.msra.mxu0 %v3488_v14  ;;  %573 = vmatpush1.msra.mxu1 %v3490_v15  ;;  %4654 = vst [vmem:[#allocation25_spill] sm:$0xff] %v3629_v58  ;;  %4655 = vst [vmem:[#allocation26_spill] sm:$0xff] %v3633_v59  ;;  %v3635_v60 = vld [vmem:[#allocation9 + $0x70] sm:$0xff]  ;;  %v3637_v61 = vld [vmem:[#allocation9 + $0x48] sm:$0xff] }
  0x52   :  { %503 = vmatprep.subr.mxu0 %v3492_v16  ;;  %574 = vmatprep.subr.mxu1 %v3494_v17  ;;  %4656 = vst [vmem:[#allocation27_spill] sm:$0xff] %v3635_v60  ;;  %4657 = vst [vmem:[#allocation28_spill] sm:$0xff] %v3637_v61  ;;  %v3639_v62 = vld [vmem:[#allocation9 + $0x58] sm:$0xff]  ;;  %v3645_v63 = vld [vmem:[#allocation9 + $0x40] sm:$0xff] }
  0x53   :  { %241 = vmatprep.mubr.f32.mxu0 %v4568_v0  ;;  %354 = vmatprep.mubr.f32.mxu1 %v4568_v0  ;;  %4658 = vst [vmem:[#allocation29_spill] sm:$0xff] %v3639_v62  ;;  %4659 = vst [vmem:[#allocation30_spill] sm:$0xff] %v3645_v63  ;;  %v3647_v1 = vld [vmem:[#allocation9 + $0x50] sm:$0xff]  ;;  %v78_v2 = vld [vmem:[%s4559_s0 + $0x38] sm:$0xff] }
  0x54   :  { %504 = vmatpush1.msra.mxu0 %v3500_v18  ;;  %575 = vmatpush1.msra.mxu1 %v3502_v19  ;;  %4660 = vst [vmem:[#allocation31_spill] sm:$0xff] %v3647_v1  ;;  %v3656_v11 = vld [vmem:[#allocation9 + $0x28] sm:$0xff] }
  0x55   :  { %242 = vmatmul.mubr.f32.gmra.mxu0 %v73_v20  ;;  %355 = vmatmul.mubr.f32.gmra.mxu1 %v73_v20  ;;  %4661 = vst [vmem:[#allocation32_spill] sm:$0xff] %v3656_v11  ;;  %v3658_v20 = vld [vmem:[#allocation9 + $0x38] sm:$0xff] }
  0x56   :  { %505 = vmatprep.subr.mxu0 %v3511_v21  ;;  %576 = vmatprep.subr.mxu1 %v3513_v22  ;;  %4662 = vst [vmem:[#allocation33_spill] sm:$0xff] %v3658_v20 }
  0x57   :  { %506 = vmatpush1.msra.mxu0 %v3517_v23  ;;  %577 = vmatpush1.msra.mxu1 %v3519_v24 }
  0x58   :  { %507 = vmatprep.subr.mxu0 %v3521_v25  ;;  %578 = vmatprep.subr.mxu1 %v3523_v26 }
  0x59   :  { %247 = vmatprep.mubr.f32.mxu0 %v4568_v0  ;;  %360 = vmatprep.mubr.f32.mxu1 %v4568_v0 }
  0x5a   :  { %508 = vmatpush1.msra.mxu0 %v3529_v27  ;;  %579 = vmatpush1.msra.mxu1 %v3531_v28 }
  0x5b   :  { %248 = vmatmul.mubr.f32.gmra.mxu0 %v74_v29  ;;  %361 = vmatmul.mubr.f32.gmra.mxu1 %v74_v29  ;;  %v3662_v29 = vld [vmem:[#allocation9 + $0x20] sm:$0xff] }
  0x5c   :  { %509 = vmatprep.subr.mxu0 %v3540_v30  ;;  %580 = vmatprep.subr.mxu1 %v3542_v31  ;;  %4663 = vst [vmem:[#allocation34_spill] sm:$0xff] %v3662_v29 }
  0x5d   :  { %510 = vmatpush1.msra.mxu0 %v3546_v32  ;;  %581 = vmatpush1.msra.mxu1 %v3548_v33 }
  0x5e   :  { %511 = vmatprep.subr.mxu0 %v3550_v34  ;;  %582 = vmatprep.subr.mxu1 %v3552_v35 }
  0x5f   :  { %253 = vmatprep.mubr.f32.mxu0 %v4568_v0  ;;  %366 = vmatprep.mubr.f32.mxu1 %v4568_v0 }
  0x60   :  { %512 = vmatpush1.msra.mxu0 %v3558_v36  ;;  %583 = vmatpush1.msra.mxu1 %v3560_v37 }
  0x61   :  { %254 = vmatmul.mubr.f32.gmra.mxu0 %v75_v38  ;;  %367 = vmatmul.mubr.f32.gmra.mxu1 %v75_v38  ;;  %v3664_v38 = vld [vmem:[#allocation9 + $0x30] sm:$0xff] }
  0x62   :  { %513 = vmatprep.subr.mxu0 %v3569_v39  ;;  %584 = vmatprep.subr.mxu1 %v3571_v40  ;;  %4664 = vst [vmem:[#allocation35_spill] sm:$0xff] %v3664_v38 }
  0x63   :  { %514 = vmatpush1.msra.mxu0 %v3575_v41  ;;  %585 = vmatpush1.msra.mxu1 %v3577_v42 }
  0x64   :  { %515 = vmatprep.subr.mxu0 %v3579_v43  ;;  %586 = vmatprep.subr.mxu1 %v3581_v44 }
  0x65   :  { %259 = vmatprep.mubr.f32.mxu0 %v4568_v0  ;;  %372 = vmatprep.mubr.f32.mxu1 %v4568_v0 }
  0x66   :  { %516 = vmatpush1.msra.mxu0 %v3587_v45  ;;  %587 = vmatpush1.msra.mxu1 %v3589_v46 }
  0x67   :  { %260 = vmatmul.mubr.f32.gmra.mxu0 %v76_v47  ;;  %373 = vmatmul.mubr.f32.gmra.mxu1 %v76_v47  ;;  %v3666_v47 = vld [vmem:[#allocation9 + $0x8] sm:$0xff] }
  0x68   :  { %517 = vmatprep.subr.mxu0 %v3598_v48  ;;  %588 = vmatprep.subr.mxu1 %v3600_v49  ;;  %4665 = vst [vmem:[#allocation36_spill] sm:$0xff] %v3666_v47 }
  0x69   :  { %518 = vmatpush1.msra.mxu0 %v3604_v50  ;;  %589 = vmatpush1.msra.mxu1 %v3606_v51 }
  0x6a   :  { %519 = vmatprep.subr.mxu0 %v3608_v52  ;;  %590 = vmatprep.subr.mxu1 %v3610_v53 }
  0x6b   :  { %265 = vmatprep.mubr.f32.mxu0 %v4568_v0  ;;  %378 = vmatprep.mubr.f32.mxu1 %v4568_v0 }
  0x6c   :  { %520 = vmatpush1.msra.mxu0 %v3616_v54  ;;  %591 = vmatpush1.msra.mxu1 %v3618_v55 }
  0x6d   :  { %266 = vmatmul.mubr.f32.gmra.mxu0 %v77_v56  ;;  %379 = vmatmul.mubr.f32.gmra.mxu1 %v77_v56  ;;  %v3668_v56 = vld [vmem:[#allocation9 + $0x18] sm:$0xff] }
  0x6e   :  { %521 = vmatprep.subr.mxu0 %v3627_v57  ;;  %592 = vmatprep.subr.mxu1 %v3629_v58  ;;  %4666 = vst [vmem:[#allocation37_spill] sm:$0xff] %v3668_v56 }
  0x6f   :  { %522 = vmatpush1.msra.mxu0 %v3633_v59  ;;  %593 = vmatpush1.msra.mxu1 %v3635_v60 }
  0x70   :  { %523 = vmatprep.subr.mxu0 %v3637_v61  ;;  %594 = vmatprep.subr.mxu1 %v3639_v62 }
  0x71   :  { %271 = vmatprep.mubr.f32.mxu0 %v4568_v0  ;;  %384 = vmatprep.mubr.f32.mxu1 %v4568_v0  ;;  %v3672_v0 = vld [vmem:[#allocation9] sm:$0xff] }
  0x72   :  { %524 = vmatpush1.msra.mxu0 %v3645_v63  ;;  %595 = vmatpush1.msra.mxu1 %v3647_v1  ;;  %4667 = vst [vmem:[#allocation38_spill] sm:$0xff] %v3672_v0  ;;  %v3676_v1 = vld [vmem:[#allocation9 + $0x10] sm:$0xff] }
  0x73   :  { %272 = vmatmul.mubr.f32.gmra.mxu0 %v78_v2  ;;  %385 = vmatmul.mubr.f32.gmra.mxu1 %v78_v2  ;;  %4668 = vst [vmem:[#allocation39_spill] sm:$0xff] %v3676_v1  ;;  %v4669_v2 = vmov 0.0  }
  0x74   :  { %525 = vmatprep.subr.mxu0 %v3656_v11  ;;  %596 = vmatprep.subr.mxu1 %v3658_v20 }
  0x75   :  { %526 = vmatpush1.msra.mxu0 %v3662_v29  ;;  %597 = vmatpush1.msra.mxu1 %v3664_v38 }
  0x76   :  { %527 = vmatprep.subr.mxu0 %v3666_v47  ;;  %598 = vmatprep.subr.mxu1 %v3668_v56 }
  0x77   :  { %528 = vmatpush1.msra.mxu0 %v3672_v0  ;;  %561 = vmatprep.mubr.f32.mxu0 %v4669_v2 }
  0x78   :  { %599 = vmatpush1.msra.mxu1 %v3676_v1  ;;  %632 = vmatprep.mubr.f32.mxu1 %v4669_v2 }
  0x79   :  { %562 = vmatmul.mubr.f32.vlgmr.msra.gmra.mxu0 %v4669_v2  ;;  %633 = vmatmul.mubr.f32.vlgmr.msra.gmra.mxu1 %v4669_v2 }
  0x7a   :  { %743 = vmatprep.subr.mxu0 %v3455_v3  ;;  %814 = vmatprep.subr.mxu1 %v3457_v4 }
  0x7b   :  { %744 = vmatpush1.msra.mxu0 %v3459_v5  ;;  %815 = vmatpush1.msra.mxu1 %v3461_v6 }
  0x7c   :  { %745 = vmatprep.subr.mxu0 %v3463_v7  ;;  %816 = vmatprep.subr.mxu1 %v3465_v8 }
  0x7d   :  { %746 = vmatpush1.msra.mxu0 %v3471_v9  ;;  %817 = vmatpush1.msra.mxu1 %v3473_v10 }
  0x7e   :  { %747 = vmatprep.subr.mxu0 %v3482_v12  ;;  %818 = vmatprep.subr.mxu1 %v3484_v13 }
  0x7f   :  { %748 = vmatpush1.msra.mxu0 %v3488_v14  ;;  %819 = vmatpush1.msra.mxu1 %v3490_v15 }
  0x80   :  { %749 = vmatprep.subr.mxu0 %v3492_v16  ;;  %820 = vmatprep.subr.mxu1 %v3494_v17 }
  0x81   :  { %750 = vmatpush1.msra.mxu0 %v3500_v18  ;;  %821 = vmatpush1.msra.mxu1 %v3502_v19 }
  0x82   :  { %751 = vmatprep.subr.mxu0 %v3511_v21  ;;  %822 = vmatprep.subr.mxu1 %v3513_v22 }
  0x83   :  { %752 = vmatpush1.msra.mxu0 %v3517_v23  ;;  %823 = vmatpush1.msra.mxu1 %v3519_v24 }
  0x84   :  { %753 = vmatprep.subr.mxu0 %v3521_v25  ;;  %824 = vmatprep.subr.mxu1 %v3523_v26 }
  0x85   :  { %754 = vmatpush1.msra.mxu0 %v3529_v27  ;;  %825 = vmatpush1.msra.mxu1 %v3531_v28 }
  0x86   :  { %755 = vmatprep.subr.mxu0 %v3540_v30  ;;  %826 = vmatprep.subr.mxu1 %v3542_v31 }
  0x87   :  { %756 = vmatpush1.msra.mxu0 %v3546_v32  ;;  %827 = vmatpush1.msra.mxu1 %v3548_v33 }
  0x88   :  { %757 = vmatprep.subr.mxu0 %v3550_v34  ;;  %828 = vmatprep.subr.mxu1 %v3552_v35 }
  0x89   :  { %758 = vmatpush1.msra.mxu0 %v3558_v36  ;;  %829 = vmatpush1.msra.mxu1 %v3560_v37 }
  0x8a   :  { %759 = vmatprep.subr.mxu0 %v3569_v39  ;;  %830 = vmatprep.subr.mxu1 %v3571_v40 }
  0x8b   :  { %760 = vmatpush1.msra.mxu0 %v3575_v41  ;;  %831 = vmatpush1.msra.mxu1 %v3577_v42 }
  0x8c   :  { %761 = vmatprep.subr.mxu0 %v3579_v43  ;;  %832 = vmatprep.subr.mxu1 %v3581_v44 }
  0x8d   :  { %762 = vmatpush1.msra.mxu0 %v3587_v45  ;;  %833 = vmatpush1.msra.mxu1 %v3589_v46 }
  0x8e   :  { %763 = vmatprep.subr.mxu0 %v3598_v48  ;;  %834 = vmatprep.subr.mxu1 %v3600_v49 }
  0x8f   :  { %764 = vmatpush1.msra.mxu0 %v3604_v50  ;;  %835 = vmatpush1.msra.mxu1 %v3606_v51 }
  0x90   :  { %765 = vmatprep.subr.mxu0 %v3608_v52  ;;  %836 = vmatprep.subr.mxu1 %v3610_v53  ;;  %v4670_v52 = vld [vmem:[#allocation31_spill] sm:$0xff] }
  0x91   :  { %766 = vmatpush1.msra.mxu0 %v3616_v54  ;;  %837 = vmatpush1.msra.mxu1 %v3618_v55 }
  0x92   :  { %767 = vmatprep.subr.mxu0 %v3627_v57  ;;  %838 = vmatprep.subr.mxu1 %v3629_v58 }
  0x93   :  { %768 = vmatpush1.msra.mxu0 %v3633_v59  ;;  %839 = vmatpush1.msra.mxu1 %v3635_v60 }
  0x94   :  { %769 = vmatprep.subr.mxu0 %v3637_v61  ;;  %840 = vmatprep.subr.mxu1 %v3639_v62 }
  0x95   :  { %770 = vmatpush1.msra.mxu0 %v3645_v63  ;;  %841 = vmatpush1.msra.mxu1 %v4670_v52 }
  0x96   :  { %771 = vmatprep.subr.mxu0 %v3656_v11  ;;  %842 = vmatprep.subr.mxu1 %v3658_v20  ;;  %v4581_v20 = vlaneseq }
  0x97   :  { %772 = vmatpush1.msra.mxu0 %v3662_v29  ;;  %843 = vmatpush1.msra.mxu1 %v3664_v38 }
  0x98   :  { %773 = vmatprep.subr.mxu0 %v3666_v47  ;;  %844 = vmatprep.subr.mxu1 %v3668_v56  ;;  %v3755_v29 = vshrl.u32 %v4581_v20, 7 }
  0x99   :  { %774 = vmatpush1.msra.mxu0 %v3672_v0  ;;  %807 = vmatprep.mubr.f32.mxu0 %v4669_v2 }
  0x9a   :  { %845 = vmatpush1.msra.mxu1 %v3676_v1  ;;  %878 = vmatprep.mubr.f32.mxu1 %v4669_v2  ;;  %4671 = vst [vmem:[#allocation40_spill] sm:$0xff] %v3755_v29  ;;  %v4592_v0 = vsub.s32 0, %v3755_v29  ;;  %v4593_v56 = vsub.s32 2, %v3755_v29  ;;  %v143_v1 = vld [vmem:[%s4563_s4] sm:$0xf]  ;;  %v159_v20 = vsub.s32 3, %v3755_v29 }
  0x9b   :  { %990 = vmatprep.subr.mxu0 %v3455_v3  ;;  %1061 = vmatprep.subr.mxu1 %v3457_v4  ;;  %v4596_v4 = vsub.s32 1, %v3755_v29 }
  0x9c   :  { %v148_v11 = vrot.slane %v143_v1, %v4592_v0  ;;  %v3776_v52 = vrot.slane %v143_v1, %v4593_v56  ;;  %v3780_v60 = vrot.slane %v143_v1, %v159_v20 }
  0x9d   :  { %v152_v61 = vrot.slane %v143_v1, %v4596_v4 }
 0x109   :  { %v3757_v38 = vpop.f32.mrf.mxu0  ;;  %v3759_v47 = vpop.f32.mrf.mxu1 }
 0x10b   :  { %v3766_v2 = vpop.f32.mrf.mxu0  ;;  %v3768_v3 = vpop.f32.mrf.mxu1 }
 0x10f   :  { %v237_v63 = vpop.f32.mrf.mxu0  ;;  %v350_v62 = vpop.f32.mrf.mxu1 }
 0x110   :  { %v3782_v59 = vadd.f32 %v237_v63, %v148_v11  ;;  %v3785_v58 = vadd.f32 %v350_v62, %v3776_v52 }
 0x111   :  { %v239_v57 = vpop.f32.mrf.mxu0  ;;  %v352_v55 = vpop.f32.mrf.mxu1 }
 0x112   :  { %4672 = vst [vmem:[#allocation41_spill] sm:$0xff] %v3785_v58  ;;  %v3787_v54 = vadd.f32 %v239_v57, %v152_v61  ;;  %v3790_v0 = vadd.f32 %v352_v55, %v3780_v60 }
 0x114   :  { %4673 = vst [vmem:[#allocation42_spill] sm:$0xff] %v3787_v54  ;;  %4674 = vst [vmem:[#allocation43_spill] sm:$0xff] %v3790_v0 }
 0x115   :  { %v243_v56 = vpop.f32.mrf.mxu0  ;;  %v356_v53 = vpop.f32.mrf.mxu1 }
 0x116   :  { %v3792_v51 = vadd.f32 %v243_v56, %v148_v11  ;;  %v3795_v4 = vadd.f32 %v356_v53, %v3776_v52 }
 0x117   :  { %v245_v1 = vpop.f32.mrf.mxu0  ;;  %v358_v63 = vpop.f32.mrf.mxu1 }
 0x118   :  { %4675 = vst [vmem:[#allocation44_spill] sm:$0xff] %v3792_v51  ;;  %4676 = vst [vmem:[#allocation45_spill] sm:$0xff] %v3795_v4  ;;  %v3797_v20 = vadd.f32 %v245_v1, %v152_v61  ;;  %v3800_v62 = vadd.f32 %v358_v63, %v3780_v60 }
 0x11a   :  { %4677 = vst [vmem:[#allocation46_spill] sm:$0xff] %v3797_v20  ;;  %4678 = vst [vmem:[#allocation47_spill] sm:$0xff] %v3800_v62 }
 0x11b   :  { %v249_v29 = vpop.f32.mrf.mxu0  ;;  %v362_v57 = vpop.f32.mrf.mxu1 }
 0x11c   :  { %v3802_v58 = vadd.f32 %v249_v29, %v148_v11  ;;  %v3805_v55 = vadd.f32 %v362_v57, %v3776_v52 }
 0x11d   :  { %v251_v0 = vpop.f32.mrf.mxu0  ;;  %v364_v56 = vpop.f32.mrf.mxu1 }
 0x11e   :  { %4679 = vst [vmem:[#allocation48_spill] sm:$0xff] %v3802_v58  ;;  %4680 = vst [vmem:[#allocation49_spill] sm:$0xff] %v3805_v55  ;;  %v3807_v51 = vadd.f32 %v251_v0, %v152_v61  ;;  %v3810_v53 = vadd.f32 %v364_v56, %v3780_v60 }
 0x120   :  { %4681 = vst [vmem:[#allocation50_spill] sm:$0xff] %v3807_v51  ;;  %4682 = vst [vmem:[#allocation51_spill] sm:$0xff] %v3810_v53 }
 0x121   :  { %v255_v4 = vpop.f32.mrf.mxu0  ;;  %v368_v1 = vpop.f32.mrf.mxu1 }
 0x122   :  { %v3812_v20 = vadd.f32 %v255_v4, %v148_v11  ;;  %v3815_v63 = vadd.f32 %v368_v1, %v3776_v52 }
 0x123   :  { %v257_v62 = vpop.f32.mrf.mxu0  ;;  %v370_v29 = vpop.f32.mrf.mxu1 }
 0x124   :  { %4683 = vst [vmem:[#allocation52_spill] sm:$0xff] %v3812_v20  ;;  %4684 = vst [vmem:[#allocation53_spill] sm:$0xff] %v3815_v63  ;;  %v3817_v58 = vadd.f32 %v257_v62, %v152_v61  ;;  %v3820_v57 = vadd.f32 %v370_v29, %v3780_v60 }
 0x126   :  { %4685 = vst [vmem:[#allocation54_spill] sm:$0xff] %v3817_v58  ;;  %4686 = vst [vmem:[#allocation55_spill] sm:$0xff] %v3820_v57 }
 0x127   :  { %v261_v55 = vpop.f32.mrf.mxu0  ;;  %v374_v0 = vpop.f32.mrf.mxu1 }
 0x128   :  { %v3822_v51 = vadd.f32 %v261_v55, %v148_v11  ;;  %v3825_v56 = vadd.f32 %v374_v0, %v3776_v52 }
 0x129   :  { %v263_v53 = vpop.f32.mrf.mxu0  ;;  %v376_v4 = vpop.f32.mrf.mxu1 }
 0x12a   :  { %4687 = vst [vmem:[#allocation56_spill] sm:$0xff] %v3822_v51  ;;  %4688 = vst [vmem:[#allocation57_spill] sm:$0xff] %v3825_v56  ;;  %v3827_v20 = vadd.f32 %v263_v53, %v152_v61  ;;  %v3830_v1 = vadd.f32 %v376_v4, %v3780_v60 }
 0x12c   :  { %4689 = vst [vmem:[#allocation58_spill] sm:$0xff] %v3827_v20  ;;  %4690 = vst [vmem:[#allocation59_spill] sm:$0xff] %v3830_v1 }
 0x12d   :  { %v267_v63 = vpop.f32.mrf.mxu0  ;;  %v380_v62 = vpop.f32.mrf.mxu1 }
 0x12e   :  { %v3832_v58 = vadd.f32 %v267_v63, %v148_v11  ;;  %v3835_v29 = vadd.f32 %v380_v62, %v3776_v52 }
 0x12f   :  { %v269_v57 = vpop.f32.mrf.mxu0  ;;  %v382_v55 = vpop.f32.mrf.mxu1 }
 0x130   :  { %4691 = vst [vmem:[#allocation60_spill] sm:$0xff] %v3832_v58  ;;  %4692 = vst [vmem:[#allocation61_spill] sm:$0xff] %v3835_v29  ;;  %v3837_v51 = vadd.f32 %v269_v57, %v152_v61  ;;  %v3840_v0 = vadd.f32 %v382_v55, %v3780_v60  ;;  %v232_v57 = vadd.f32 %v3757_v38, %v148_v11 }
 0x131   :  { %v234_v55 = vadd.f32 %v3766_v2, %v152_v61 }
 0x132   :  { %4693 = vst [vmem:[#allocation62_spill] sm:$0xff] %v3837_v51  ;;  %4694 = vst [vmem:[#allocation63_spill] sm:$0xff] %v3840_v0 }
 0x133   :  { %v273_v56 = vpop.f32.mrf.mxu0  ;;  %v386_v53 = vpop.f32.mrf.mxu1 }
 0x134   :  { %v3842_v20 = vadd.f32 %v273_v56, %v148_v11  ;;  %v3845_v4 = vadd.f32 %v386_v53, %v3776_v52 }
 0x135   :  { %v275_v1 = vpop.f32.mrf.mxu0  ;;  %v388_v63 = vpop.f32.mrf.mxu1 }
 0x136   :  { %4695 = vst [vmem:[#allocation64_spill] sm:$0xff] %v3842_v20  ;;  %4696 = vst [vmem:[#allocation65_spill] sm:$0xff] %v3845_v4  ;;  %v3847_v58 = vadd.f32 %v275_v1, %v152_v61  ;;  %v3850_v62 = vadd.f32 %v388_v63, %v3780_v60  ;;  %v347_v1 = vadd.f32 %v3768_v3, %v3780_v60 }
 0x137   :  { %v345_v63 = vadd.f32 %v3759_v47, %v3776_v52 }
 0x138   :  { %4697 = vst [vmem:[#allocation66_spill] sm:$0xff] %v3847_v58  ;;  %4698 = vst [vmem:[#allocation67_spill] sm:$0xff] %v3850_v62 }
 0x139   :  { %v563_v29 = vpop.f32.mrf.mxu0  ;;  %v634_v20 = vpop.f32.mrf.mxu1 }
 0x13a   :  { %v639_v0 = vadd.f32 %v563_v29, %v232_v57  ;;  %v641_v62 = vadd.f32 %v634_v20, %v345_v63 }
 0x13b   :  { %v565_v51 = vpop.f32.mrf.mxu0  ;;  %v636_v4 = vpop.f32.mrf.mxu1 }
 0x13c   :  { %v2960_v54 = vmul.f32 -1.442695, %v639_v0  ;;  %v640_v56 = vadd.f32 %v565_v51, %v234_v55  ;;  %v642_v58 = vadd.f32 %v636_v4, %v347_v1 }
 0x13e   :  { %3083 = vpow2.f32 %v2960_v54  ;;  %v2961_v53 = vmul.f32 -1.442695, %v640_v56  ;;  %v2962_v11 = vmul.f32 -1.442695, %v642_v58 }
 0x140   :  { %3085 = vpow2.f32 %v2961_v53 }
 0x141   :  { %3087 = vpow2.f32 %v2962_v11 }
 0x14b   :  { %v3084_v38 = vpop.eup %3083 }
 0x14c   :  { %v646_v61 = vadd.f32 1.0, %v3084_v38 }
 0x14d   :  { %v3086_v2 = vpop.eup %3085 }
 0x14e   :  { %3089 = vrcp.f32 %v646_v61  ;;  %v652_v51 = vadd.f32 1.0, %v3086_v2  ;;  %v3088_v54 = vpop.eup %3087  ;;  %v3943_v2 = vld [vmem:[#allocation9 + $0x1e8] sm:$0xff] }
 0x14f   :  { %3091 = vtanh.f32 %v641_v62  ;;  %v659_v55 = vadd.f32 1.0, %v3088_v54  ;;  %v3949_v54 = vld [vmem:[#allocation9 + $0x1e0] sm:$0xff] }
 0x150   :  { %3093 = vrcp.f32 %v652_v51  ;;  %v3945_v51 = vld [vmem:[#allocation9 + $0x1f8] sm:$0xff] }
 0x151   :  { %3095 = vrcp.f32 %v659_v55  ;;  %v3961_v55 = vld [vmem:[#allocation9 + $0x1c0] sm:$0xff] }
 0x15b   :  { %v3090_v29 = vpop.eup %3089 }
 0x15c   :  { %v3092_v0 = vpop.eup %3091 }
 0x15d   :  { %v3094_v57 = vpop.eup %3093  ;;  %v664_v3 = vmul.f32 %v3092_v0, %v3090_v29  ;;  %v3951_v29 = vld [vmem:[#allocation9 + $0x1f0] sm:$0xff]  ;;  %v3955_v0 = vld [vmem:[#allocation9 + $0x1c8] sm:$0xff] }
 0x15e   :  { %v663_v60 = vmul.f32 0.0, %v3094_v57  ;;  %v3096_v52 = vpop.eup %3095  ;;  %v3957_v57 = vld [vmem:[#allocation9 + $0x1d8] sm:$0xff] }
 0x160   :  { %v3858_v4 = vadd.f32 %v664_v3, %v663_v60  ;;  %v3963_v60 = vld [vmem:[#allocation9 + $0x1d0] sm:$0xff]  ;;  %v3967_v3 = vld [vmem:[#allocation9 + $0x1a8] sm:$0xff] }
 0x162   :  { %3097 = vtanh.f32 %v3858_v4 }
 0x16f   :  { %v3098_v58 = vpop.eup %3097 }
 0x170   :  { %v3861_v47 = vmul.f32 %v3098_v58, %v3096_v52  ;;  %v3973_v52 = vld [vmem:[#allocation9 + $0x1a0] sm:$0xff]  ;;  %v3975_v58 = vld [vmem:[#allocation9 + $0x1b0] sm:$0xff] }
 0x172   :  { %4699 = vst [vmem:[#allocation68_spill] sm:$0xff] %v3861_v47  ;;  %808 = vmatmul.mubr.f32.vlgmr.msra.gmra.mxu0 %v3861_v47  ;;  %879 = vmatmul.mubr.f32.vlgmr.msra.gmra.mxu1 %v3861_v47  ;;  %v4121_v47 = vld [vmem:[#allocation9 + $0x18] sm:$0xff] }
 0x173   :  { %991 = vmatpush1.msra.mxu0 %v3459_v5  ;;  %1062 = vmatpush1.msra.mxu1 %v3461_v6  ;;  %v4700_v5 = vld [vmem:[#allocation19_spill] sm:$0xff]  ;;  %v4701_v6 = vld [vmem:[#allocation20_spill] sm:$0xff] }
 0x174   :  { %992 = vmatprep.subr.mxu0 %v3463_v7  ;;  %1063 = vmatprep.subr.mxu1 %v3465_v8  ;;  %v4702_v7 = vld [vmem:[#allocation21_spill] sm:$0xff]  ;;  %v4703_v8 = vld [vmem:[#allocation22_spill] sm:$0xff]  ;;  %4726 = vst [vmem:[#allocation20_spill] sm:$0xff] %v3943_v2 }
 0x175   :  { %993 = vmatpush1.msra.mxu0 %v3471_v9  ;;  %1064 = vmatpush1.msra.mxu1 %v3473_v10  ;;  %v4704_v9 = vld [vmem:[#allocation23_spill] sm:$0xff]  ;;  %v4705_v10 = vld [vmem:[#allocation24_spill] sm:$0xff]  ;;  %4727 = vst [vmem:[#allocation21_spill] sm:$0xff] %v3945_v51 }
 0x176   :  { %994 = vmatprep.subr.mxu0 %v3482_v12  ;;  %1065 = vmatprep.subr.mxu1 %v3484_v13  ;;  %v4706_v12 = vld [vmem:[#allocation25_spill] sm:$0xff]  ;;  %v4707_v13 = vld [vmem:[#allocation26_spill] sm:$0xff] }
 0x177   :  { %995 = vmatpush1.msra.mxu0 %v3488_v14  ;;  %1066 = vmatpush1.msra.mxu1 %v3490_v15  ;;  %v4708_v14 = vld [vmem:[#allocation27_spill] sm:$0xff]  ;;  %v4709_v15 = vld [vmem:[#allocation28_spill] sm:$0xff] }
 0x178   :  { %996 = vmatprep.subr.mxu0 %v3492_v16  ;;  %1067 = vmatprep.subr.mxu1 %v3494_v17  ;;  %v4710_v16 = vld [vmem:[#allocation29_spill] sm:$0xff]  ;;  %v4711_v17 = vld [vmem:[#allocation30_spill] sm:$0xff] }
 0x179   :  { %997 = vmatpush1.msra.mxu0 %v3500_v18  ;;  %1068 = vmatpush1.msra.mxu1 %v3502_v19  ;;  %v4712_v18 = vld [vmem:[#allocation31_spill] sm:$0xff]  ;;  %v4713_v19 = vld [vmem:[#allocation32_spill] sm:$0xff] }
 0x17a   :  { %998 = vmatprep.subr.mxu0 %v3511_v21  ;;  %1069 = vmatprep.subr.mxu1 %v3513_v22  ;;  %v4714_v21 = vld [vmem:[#allocation33_spill] sm:$0xff]  ;;  %v4715_v22 = vld [vmem:[#allocation34_spill] sm:$0xff] }
 0x17b   :  { %999 = vmatpush1.msra.mxu0 %v3517_v23  ;;  %1070 = vmatpush1.msra.mxu1 %v3519_v24  ;;  %v4716_v23 = vld [vmem:[#allocation35_spill] sm:$0xff]  ;;  %v4717_v24 = vld [vmem:[#allocation36_spill] sm:$0xff] }
 0x17c   :  { %1000 = vmatprep.subr.mxu0 %v3521_v25  ;;  %1071 = vmatprep.subr.mxu1 %v3523_v26  ;;  %v4718_v25 = vld [vmem:[#allocation37_spill] sm:$0xff]  ;;  %v4719_v26 = vld [vmem:[#allocation38_spill] sm:$0xff]  ;;  %4742 = vst [vmem:[#allocation36_spill] sm:$0xff] %v4121_v47 }
 0x17d   :  { %1001 = vmatpush1.msra.mxu0 %v3529_v27  ;;  %1072 = vmatpush1.msra.mxu1 %v3531_v28  ;;  %v4720_v27 = vmov 0.0   ;;  %v4721_v28 = vld [vmem:[#allocation39_spill] sm:$0xff] }
 0x17e   :  { %1002 = vmatprep.subr.mxu0 %v3540_v30  ;;  %1073 = vmatprep.subr.mxu1 %v3542_v31 }
 0x17f   :  { %1003 = vmatpush1.msra.mxu0 %v3546_v32  ;;  %1074 = vmatpush1.msra.mxu1 %v3548_v33 }
 0x180   :  { %1004 = vmatprep.subr.mxu0 %v3550_v34  ;;  %1075 = vmatprep.subr.mxu1 %v3552_v35  ;;  %v4722_v34 = vld [vmem:[#allocation42_spill] sm:$0xff] }
 0x181   :  { %1005 = vmatpush1.msra.mxu0 %v3558_v36  ;;  %1076 = vmatpush1.msra.mxu1 %v3560_v37 }
 0x182   :  { %1006 = vmatprep.subr.mxu0 %v3569_v39  ;;  %1077 = vmatprep.subr.mxu1 %v3571_v40  ;;  %v4723_v40 = vld [vmem:[#allocation43_spill] sm:$0xff] }
 0x183   :  { %1007 = vmatpush1.msra.mxu0 %v3575_v41  ;;  %1078 = vmatpush1.msra.mxu1 %v3577_v42  ;;  %v4724_v42 = vld [vmem:[#allocation41_spill] sm:$0xff] }
 0x184   :  { %1008 = vmatprep.subr.mxu0 %v3579_v43  ;;  %1079 = vmatprep.subr.mxu1 %v3581_v44 }
 0x185   :  { %1009 = vmatpush1.msra.mxu0 %v3587_v45  ;;  %1080 = vmatpush1.msra.mxu1 %v3589_v46 }
 0x186   :  { %1010 = vmatprep.subr.mxu0 %v3598_v48  ;;  %1081 = vmatprep.subr.mxu1 %v3600_v49 }
 0x187   :  { %1011 = vmatpush1.msra.mxu0 %v3604_v50  ;;  %1082 = vmatpush1.msra.mxu1 %v4700_v5  ;;  %v3979_v5 = vld [vmem:[#allocation9 + $0x188] sm:$0xff] }
 0x188   :  { %1012 = vmatprep.subr.mxu0 %v4701_v6  ;;  %1083 = vmatprep.subr.mxu1 %v4702_v7  ;;  %v3981_v6 = vld [vmem:[#allocation9 + $0x198] sm:$0xff]  ;;  %v3985_v7 = vld [vmem:[#allocation9 + $0x180] sm:$0xff] }
 0x189   :  { %1013 = vmatpush1.msra.mxu0 %v4703_v8  ;;  %1084 = vmatpush1.msra.mxu1 %v4704_v9  ;;  %v3987_v8 = vld [vmem:[#allocation9 + $0x190] sm:$0xff]  ;;  %v3991_v9 = vld [vmem:[#allocation9 + $0x168] sm:$0xff] }
 0x18a   :  { %1014 = vmatprep.subr.mxu0 %v4705_v10  ;;  %1085 = vmatprep.subr.mxu1 %v4706_v12  ;;  %v3993_v10 = vld [vmem:[#allocation9 + $0x178] sm:$0xff]  ;;  %v3997_v12 = vld [vmem:[#allocation9 + $0x160] sm:$0xff] }
 0x18b   :  { %1015 = vmatpush1.msra.mxu0 %v4707_v13  ;;  %1086 = vmatpush1.msra.mxu1 %v4708_v14  ;;  %v3999_v13 = vld [vmem:[#allocation9 + $0x170] sm:$0xff]  ;;  %v4003_v14 = vld [vmem:[#allocation9 + $0x148] sm:$0xff] }
 0x18c   :  { %1016 = vmatprep.subr.mxu0 %v4709_v15  ;;  %1087 = vmatprep.subr.mxu1 %v4710_v16  ;;  %v4005_v15 = vld [vmem:[#allocation9 + $0x158] sm:$0xff]  ;;  %v4009_v16 = vld [vmem:[#allocation9 + $0x140] sm:$0xff] }
 0x18d   :  { %1017 = vmatpush1.msra.mxu0 %v4711_v17  ;;  %1088 = vmatpush1.msra.mxu1 %v4712_v18  ;;  %v4011_v17 = vld [vmem:[#allocation9 + $0x150] sm:$0xff]  ;;  %v4015_v18 = vld [vmem:[#allocation9 + $0x128] sm:$0xff] }
 0x18e   :  { %1018 = vmatprep.subr.mxu0 %v4713_v19  ;;  %1089 = vmatprep.subr.mxu1 %v4714_v21  ;;  %v4017_v19 = vld [vmem:[#allocation9 + $0x138] sm:$0xff]  ;;  %v4021_v21 = vld [vmem:[#allocation9 + $0x120] sm:$0xff] }
 0x18f   :  { %1019 = vmatpush1.msra.mxu0 %v4715_v22  ;;  %1090 = vmatpush1.msra.mxu1 %v4716_v23  ;;  %v4023_v22 = vld [vmem:[#allocation9 + $0x130] sm:$0xff]  ;;  %v4027_v23 = vld [vmem:[#allocation9 + $0x108] sm:$0xff] }
 0x190   :  { %1020 = vmatprep.subr.mxu0 %v4717_v24  ;;  %1091 = vmatprep.subr.mxu1 %v4718_v25  ;;  %v4029_v24 = vld [vmem:[#allocation9 + $0x118] sm:$0xff]  ;;  %v4031_v25 = vld [vmem:[#allocation9 + $0x100] sm:$0xff] }
 0x191   :  { %1021 = vmatpush1.msra.mxu0 %v4719_v26  ;;  %1054 = vmatprep.mubr.f32.mxu0 %v4720_v27  ;;  %v4035_v26 = vld [vmem:[#allocation9 + $0x110] sm:$0xff] }
 0x192   :  { %1092 = vmatpush1.msra.mxu1 %v4721_v28  ;;  %1125 = vmatprep.mubr.f32.mxu1 %v4720_v27  ;;  %v4037_v28 = vld [vmem:[#allocation9 + $0xe8] sm:$0xff] }
 0x193   :  { %1237 = vmatprep.subr.mxu0 %v3943_v2  ;;  %1308 = vmatprep.subr.mxu1 %v3945_v51 }
 0x232   :  { %v809_v30 = vpop.f32.mrf.mxu0  ;;  %v880_v36 = vpop.f32.mrf.mxu1 }
 0x233   :  { %v885_v31 = vadd.f32 %v809_v30, %v3782_v59  ;;  %v887_v43 = vadd.f32 %v880_v36, %v4724_v42  ;;  %v4039_v30 = vld [vmem:[#allocation9 + $0xf8] sm:$0xff]  ;;  %v4055_v36 = vld [vmem:[#allocation9 + $0xd0] sm:$0xff]  ;;  %v4071_v42 = vld [vmem:[#allocation9 + $0x88] sm:$0xff] }
 0x234   :  { %v811_v32 = vpop.f32.mrf.mxu0  ;;  %v882_v39 = vpop.f32.mrf.mxu1 }
 0x235   :  { %v2963_v33 = vmul.f32 -1.442695, %v885_v31  ;;  %v886_v35 = vadd.f32 %v811_v32, %v4722_v34  ;;  %v888_v41 = vadd.f32 %v882_v39, %v4723_v40  ;;  %v4043_v31 = vld [vmem:[#allocation9 + $0xe0] sm:$0xff]  ;;  %v4045_v32 = vld [vmem:[#allocation9 + $0xf0] sm:$0xff]  ;;  %v4051_v34 = vld [vmem:[#allocation9 + $0xd8] sm:$0xff] }
 0x236   :  { %v4061_v39 = vld [vmem:[#allocation9 + $0xb8] sm:$0xff]  ;;  %v4065_v40 = vld [vmem:[#allocation9 + $0xa0] sm:$0xff] }
 0x237   :  { %3099 = vpow2.f32 %v2963_v33  ;;  %v2964_v37 = vmul.f32 -1.442695, %v886_v35  ;;  %v2965_v44 = vmul.f32 -1.442695, %v888_v41  ;;  %v4047_v33 = vld [vmem:[#allocation9 + $0xc8] sm:$0xff]  ;;  %v4053_v35 = vld [vmem:[#allocation9 + $0xc0] sm:$0xff] }
 0x238   :  { %v4067_v41 = vld [vmem:[#allocation9 + $0xb0] sm:$0xff] }
 0x239   :  { %3101 = vpow2.f32 %v2964_v37  ;;  %v4059_v37 = vld [vmem:[#allocation9 + $0xa8] sm:$0xff] }
 0x23a   :  { %3103 = vtanh.f32 %v887_v43  ;;  %v4073_v43 = vld [vmem:[#allocation9 + $0x98] sm:$0xff] }
 0x23b   :  { %3105 = vpow2.f32 %v2965_v44  ;;  %v4077_v44 = vld [vmem:[#allocation9 + $0x80] sm:$0xff] }
 0x244   :  { %v3100_v45 = vpop.eup %3099 }
 0x245   :  { %v892_v46 = vadd.f32 1.0, %v3100_v45  ;;  %v4079_v45 = vld [vmem:[#allocation9 + $0x90] sm:$0xff] }
 0x246   :  { %v3102_v48 = vpop.eup %3101  ;;  %4728 = vst [vmem:[#allocation22_spill] sm:$0xff] %v4079_v45 }
 0x247   :  { %3107 = vrcp.f32 %v892_v46  ;;  %v898_v49 = vadd.f32 1.0, %v3102_v48  ;;  %v3104_v50 = vpop.eup %3103  ;;  %v4083_v46 = vld [vmem:[#allocation9 + $0x68] sm:$0xff]  ;;  %v4085_v48 = vld [vmem:[#allocation9 + $0x78] sm:$0xff] }
 0x248   :  { %v3106_v59 = vpop.eup %3105  ;;  %4729 = vst [vmem:[#allocation23_spill] sm:$0xff] %v4083_v46  ;;  %4730 = vst [vmem:[#allocation24_spill] sm:$0xff] %v4085_v48 }
 0x249   :  { %3109 = vrcp.f32 %v898_v49  ;;  %v905_v53 = vadd.f32 1.0, %v3106_v59  ;;  %v4089_v49 = vld [vmem:[#allocation9 + $0x60] sm:$0xff]  ;;  %v4095_v59 = vld [vmem:[#allocation9 + $0x48] sm:$0xff] }
 0x24a   :  { %4731 = vst [vmem:[#allocation25_spill] sm:$0xff] %v4089_v49  ;;  %4733 = vst [vmem:[#allocation27_spill] sm:$0xff] %v4095_v59 }
 0x24b   :  { %3111 = vrcp.f32 %v905_v53  ;;  %v4107_v53 = vld [vmem:[#allocation9 + $0x28] sm:$0xff] }
 0x24c   :  { %4737 = vst [vmem:[#allocation31_spill] sm:$0xff] %v4107_v53 }
 0x254   :  { %v3108_v20 = vpop.eup %3107 }
 0x255   :  { %v910_v62 = vmul.f32 %v3108_v20, %v3104_v50  ;;  %v4091_v50 = vld [vmem:[#allocation9 + $0x70] sm:$0xff]  ;;  %v4097_v20 = vld [vmem:[#allocation9 + $0x58] sm:$0xff] }
 0x256   :  { %v3110_v56 = vpop.eup %3109  ;;  %4732 = vst [vmem:[#allocation26_spill] sm:$0xff] %v4091_v50  ;;  %4734 = vst [vmem:[#allocation28_spill] sm:$0xff] %v4097_v20 }
 0x257   :  { %v909_v1 = vmul.f32 %v3110_v56, %v3858_v4  ;;  %v3969_v4 = vld [vmem:[#allocation9 + $0x1b8] sm:$0xff]  ;;  %v4103_v56 = vld [vmem:[#allocation9 + $0x50] sm:$0xff] }
 0x258   :  { %v3112_v11 = vpop.eup %3111  ;;  %4736 = vst [vmem:[#allocation30_spill] sm:$0xff] %v4103_v56 }
 0x259   :  { %v3934_v63 = vadd.f32 %v910_v62, %v909_v1  ;;  %v4101_v62 = vld [vmem:[#allocation9 + $0x40] sm:$0xff]  ;;  %v4109_v1 = vld [vmem:[#allocation9 + $0x38] sm:$0xff] }
 0x25a   :  { %4735 = vst [vmem:[#allocation29_spill] sm:$0xff] %v4101_v62  ;;  %4738 = vst [vmem:[#allocation32_spill] sm:$0xff] %v4109_v1 }
 0x25b   :  { %3113 = vtanh.f32 %v3934_v63 }
 0x268   :  { %v3114_v38 = vpop.eup %3113 }
 0x269   :  { %v3937_v61 = vmul.f32 %v3114_v38, %v3112_v11  ;;  %v4113_v11 = vld [vmem:[#allocation9 + $0x20] sm:$0xff]  ;;  %v4115_v38 = vld [vmem:[#allocation9 + $0x30] sm:$0xff] }
 0x26a   :  { %4739 = vst [vmem:[#allocation33_spill] sm:$0xff] %v4113_v11  ;;  %4740 = vst [vmem:[#allocation34_spill] sm:$0xff] %v4115_v38 }
 0x26b   :  { %4725 = vst [vmem:[#allocation19_spill] sm:$0xff] %v3937_v61  ;;  %1055 = vmatmul.mubr.f32.vlgmr.msra.gmra.mxu0 %v3937_v61  ;;  %1126 = vmatmul.mubr.f32.vlgmr.msra.gmra.mxu1 %v3937_v61  ;;  %v4119_v61 = vld [vmem:[#allocation9 + $0x8] sm:$0xff] }
 0x26c   :  { %1301 = vmatprep.mubr.f32.mxu0 %v4720_v27  ;;  %1372 = vmatprep.mubr.f32.mxu1 %v4720_v27  ;;  %4741 = vst [vmem:[#allocation35_spill] sm:$0xff] %v4119_v61  ;;  %v4125_v27 = vld [vmem:[#allocation9] sm:$0xff] }
 0x26d   :  { %1238 = vmatpush1.msra.mxu0 %v3949_v54  ;;  %1309 = vmatpush1.msra.mxu1 %v3951_v29  ;;  %4743 = vst [vmem:[#allocation37_spill] sm:$0xff] %v4125_v27 }
 0x26e   :  { %1239 = vmatprep.subr.mxu0 %v3955_v0  ;;  %1310 = vmatprep.subr.mxu1 %v3957_v57 }
 0x26f   :  { %1240 = vmatpush1.msra.mxu0 %v3961_v55  ;;  %1311 = vmatpush1.msra.mxu1 %v3963_v60 }
 0x270   :  { %1241 = vmatprep.subr.mxu0 %v3967_v3  ;;  %1312 = vmatprep.subr.mxu1 %v3969_v4 }
 0x271   :  { %1242 = vmatpush1.msra.mxu0 %v3973_v52  ;;  %1313 = vmatpush1.msra.mxu1 %v3975_v58 }
 0x272   :  { %1243 = vmatprep.subr.mxu0 %v3979_v5  ;;  %1314 = vmatprep.subr.mxu1 %v3981_v6 }
 0x273   :  { %1244 = vmatpush1.msra.mxu0 %v3985_v7  ;;  %1315 = vmatpush1.msra.mxu1 %v3987_v8 }
 0x274   :  { %1245 = vmatprep.subr.mxu0 %v3991_v9  ;;  %1316 = vmatprep.subr.mxu1 %v3993_v10 }
 0x275   :  { %1246 = vmatpush1.msra.mxu0 %v3997_v12  ;;  %1317 = vmatpush1.msra.mxu1 %v3999_v13 }
 0x276   :  { %1247 = vmatprep.subr.mxu0 %v4003_v14  ;;  %1318 = vmatprep.subr.mxu1 %v4005_v15 }
 0x277   :  { %1248 = vmatpush1.msra.mxu0 %v4009_v16  ;;  %1319 = vmatpush1.msra.mxu1 %v4011_v17 }
 0x278   :  { %1249 = vmatprep.subr.mxu0 %v4015_v18  ;;  %1320 = vmatprep.subr.mxu1 %v4017_v19 }
 0x279   :  { %1250 = vmatpush1.msra.mxu0 %v4021_v21  ;;  %1321 = vmatpush1.msra.mxu1 %v4023_v22 }
 0x27a   :  { %1251 = vmatprep.subr.mxu0 %v4027_v23  ;;  %1322 = vmatprep.subr.mxu1 %v4029_v24 }
 0x27b   :  { %1252 = vmatpush1.msra.mxu0 %v4031_v25  ;;  %1323 = vmatpush1.msra.mxu1 %v4035_v26 }
 0x27c   :  { %1253 = vmatprep.subr.mxu0 %v4037_v28  ;;  %1324 = vmatprep.subr.mxu1 %v4039_v30 }
 0x27d   :  { %1254 = vmatpush1.msra.mxu0 %v4043_v31  ;;  %1325 = vmatpush1.msra.mxu1 %v4045_v32 }
 0x27e   :  { %1255 = vmatprep.subr.mxu0 %v4047_v33  ;;  %1326 = vmatprep.subr.mxu1 %v4051_v34 }
 0x27f   :  { %1256 = vmatpush1.msra.mxu0 %v4053_v35  ;;  %1327 = vmatpush1.msra.mxu1 %v4055_v36 }
 0x280   :  { %1257 = vmatprep.subr.mxu0 %v4059_v37  ;;  %1328 = vmatprep.subr.mxu1 %v4061_v39 }
 0x281   :  { %1258 = vmatpush1.msra.mxu0 %v4065_v40  ;;  %1329 = vmatpush1.msra.mxu1 %v4067_v41 }
 0x282   :  { %1259 = vmatprep.subr.mxu0 %v4071_v42  ;;  %1330 = vmatprep.subr.mxu1 %v4073_v43 }
 0x283   :  { %1260 = vmatpush1.msra.mxu0 %v4077_v44  ;;  %1331 = vmatpush1.msra.mxu1 %v4079_v45 }
 0x284   :  { %1261 = vmatprep.subr.mxu0 %v4083_v46  ;;  %1332 = vmatprep.subr.mxu1 %v4085_v48  ;;  %v4748_v48 = vld [vmem:[#allocation45_spill] sm:$0xff] }
 0x285   :  { %1262 = vmatpush1.msra.mxu0 %v4089_v49  ;;  %1333 = vmatpush1.msra.mxu1 %v4091_v50  ;;  %v4747_v49 = vld [vmem:[#allocation47_spill] sm:$0xff] }
 0x286   :  { %1263 = vmatprep.subr.mxu0 %v4095_v59  ;;  %1334 = vmatprep.subr.mxu1 %v4097_v20  ;;  %v4127_v59 = vld [vmem:[#allocation9 + $0x10] sm:$0xff] }
 0x287   :  { %1264 = vmatpush1.msra.mxu0 %v4101_v62  ;;  %1335 = vmatpush1.msra.mxu1 %v4103_v56  ;;  %4744 = vst [vmem:[#allocation38_spill] sm:$0xff] %v4127_v59 }
 0x288   :  { %1265 = vmatprep.subr.mxu0 %v4107_v53  ;;  %1336 = vmatprep.subr.mxu1 %v4109_v1  ;;  %v4745_v53 = vld [vmem:[#allocation44_spill] sm:$0xff] }
 0x289   :  { %1266 = vmatpush1.msra.mxu0 %v4113_v11  ;;  %1337 = vmatpush1.msra.mxu1 %v4115_v38  ;;  %v4746_v11 = vld [vmem:[#allocation46_spill] sm:$0xff] }
 0x28a   :  { %1267 = vmatprep.subr.mxu0 %v4119_v61  ;;  %1338 = vmatprep.subr.mxu1 %v4121_v47 }
 0x28b   :  { %1268 = vmatpush1.msra.mxu0 %v4125_v27  ;;  %1339 = vmatpush1.msra.mxu1 %v4127_v59 }
 0x28c   :  { %1484 = vmatprep.subr.mxu0 %v3943_v2  ;;  %1555 = vmatprep.subr.mxu1 %v3945_v51 }
 0x32b   :  { %v1056_v1 = vpop.f32.mrf.mxu0  ;;  %v1127_v38 = vpop.f32.mrf.mxu1 }
 0x32c   :  { %v1132_v56 = vadd.f32 %v1056_v1, %v4745_v53  ;;  %v1134_v59 = vadd.f32 %v1127_v38, %v4748_v48  ;;  %v4756_v38 = vld [vmem:[#allocation28_spill] sm:$0xff] }
 0x32d   :  { %v1058_v62 = vpop.f32.mrf.mxu0  ;;  %v1129_v47 = vpop.f32.mrf.mxu1 }
 0x32e   :  { %v2966_v20 = vmul.f32 -1.442695, %v1132_v56  ;;  %v1133_v50 = vadd.f32 %v1058_v62, %v4746_v11  ;;  %v1135_v27 = vadd.f32 %v1129_v47, %v4747_v49  ;;  %v4754_v49 = vld [vmem:[#allocation26_spill] sm:$0xff] }
 0x330   :  { %3115 = vpow2.f32 %v2966_v20  ;;  %v2967_v61 = vmul.f32 -1.442695, %v1133_v50  ;;  %v2968_v46 = vmul.f32 -1.442695, %v1135_v27 }
 0x332   :  { %3117 = vpow2.f32 %v2967_v61 }
 0x333   :  { %3119 = vtanh.f32 %v1134_v59  ;;  %v4755_v59 = vld [vmem:[#allocation27_spill] sm:$0xff] }
 0x334   :  { %3121 = vpow2.f32 %v2968_v46  ;;  %v4753_v46 = vld [vmem:[#allocation25_spill] sm:$0xff] }
 0x33d   :  { %v3116_v2 = vpop.eup %3115 }
 0x33e   :  { %v1139_v45 = vadd.f32 1.0, %v3116_v2 }
 0x33f   :  { %v3118_v51 = vpop.eup %3117 }
 0x340   :  { %3123 = vrcp.f32 %v1139_v45  ;;  %v1145_v53 = vadd.f32 1.0, %v3118_v51  ;;  %v3120_v56 = vpop.eup %3119  ;;  %v4751_v51 = vld [vmem:[#allocation23_spill] sm:$0xff]  ;;  %v4752_v45 = vld [vmem:[#allocation24_spill] sm:$0xff] }
 0x341   :  { %v3122_v62 = vpop.eup %3121 }
 0x342   :  { %3125 = vrcp.f32 %v1145_v53  ;;  %v1152_v61 = vadd.f32 1.0, %v3122_v62  ;;  %v4757_v53 = vld [vmem:[#allocation29_spill] sm:$0xff]  ;;  %v4759_v62 = vld [vmem:[#allocation31_spill] sm:$0xff] }
 0x344   :  { %3127 = vrcp.f32 %v1152_v61  ;;  %v4763_v61 = vld [vmem:[#allocation35_spill] sm:$0xff] }
 0x34d   :  { %v3124_v20 = vpop.eup %3123 }
 0x34e   :  { %v1157_v1 = vmul.f32 %v3124_v20, %v3120_v56  ;;  %v4758_v56 = vld [vmem:[#allocation30_spill] sm:$0xff]  ;;  %v4760_v20 = vld [vmem:[#allocation32_spill] sm:$0xff] }
 0x34f   :  { %v3126_v50 = vpop.eup %3125 }
 0x350   :  { %v1156_v11 = vmul.f32 %v3126_v50, %v3934_v63  ;;  %v4750_v63 = vld [vmem:[#allocation22_spill] sm:$0xff] }
 0x351   :  { %v3128_v27 = vpop.eup %3127  ;;  %v4762_v50 = vld [vmem:[#allocation34_spill] sm:$0xff] }
 0x352   :  { %v4142_v47 = vadd.f32 %v1157_v1, %v1156_v11  ;;  %v4761_v1 = vld [vmem:[#allocation33_spill] sm:$0xff]  ;;  %v4764_v11 = vld [vmem:[#allocation36_spill] sm:$0xff] }
 0x354   :  { %3129 = vtanh.f32 %v4142_v47 }
 0x361   :  { %v3130_v2 = vpop.eup %3129 }
 0x362   :  { %v4145_v48 = vmul.f32 %v3130_v2, %v3128_v27  ;;  %v4765_v27 = vld [vmem:[#allocation37_spill] sm:$0xff]  ;;  %v4766_v2 = vmov 0.0  }
 0x364   :  { %4749 = vst [vmem:[#allocation39_spill] sm:$0xff] %v4145_v48  ;;  %1302 = vmatmul.mubr.f32.vlgmr.msra.gmra.mxu0 %v4145_v48  ;;  %1373 = vmatmul.mubr.f32.vlgmr.msra.gmra.mxu1 %v4145_v48  ;;  %v4767_v48 = vld [vmem:[#allocation38_spill] sm:$0xff] }
 0x365   :  { %1485 = vmatpush1.msra.mxu0 %v3949_v54  ;;  %1556 = vmatpush1.msra.mxu1 %v3951_v29 }
 0x366   :  { %1486 = vmatprep.subr.mxu0 %v3955_v0  ;;  %1557 = vmatprep.subr.mxu1 %v3957_v57 }
 0x367   :  { %1487 = vmatpush1.msra.mxu0 %v3961_v55  ;;  %1558 = vmatpush1.msra.mxu1 %v3963_v60 }
 0x368   :  { %1488 = vmatprep.subr.mxu0 %v3967_v3  ;;  %1559 = vmatprep.subr.mxu1 %v3969_v4 }
 0x369   :  { %1489 = vmatpush1.msra.mxu0 %v3973_v52  ;;  %1560 = vmatpush1.msra.mxu1 %v3975_v58 }
 0x36a   :  { %1490 = vmatprep.subr.mxu0 %v3979_v5  ;;  %1561 = vmatprep.subr.mxu1 %v3981_v6 }
 0x36b   :  { %1491 = vmatpush1.msra.mxu0 %v3985_v7  ;;  %1562 = vmatpush1.msra.mxu1 %v3987_v8 }
 0x36c   :  { %1492 = vmatprep.subr.mxu0 %v3991_v9  ;;  %1563 = vmatprep.subr.mxu1 %v3993_v10 }
 0x36d   :  { %1493 = vmatpush1.msra.mxu0 %v3997_v12  ;;  %1564 = vmatpush1.msra.mxu1 %v3999_v13 }
 0x36e   :  { %1494 = vmatprep.subr.mxu0 %v4003_v14  ;;  %1565 = vmatprep.subr.mxu1 %v4005_v15 }
 0x36f   :  { %1495 = vmatpush1.msra.mxu0 %v4009_v16  ;;  %1566 = vmatpush1.msra.mxu1 %v4011_v17 }
 0x370   :  { %1496 = vmatprep.subr.mxu0 %v4015_v18  ;;  %1567 = vmatprep.subr.mxu1 %v4017_v19 }
 0x371   :  { %1497 = vmatpush1.msra.mxu0 %v4021_v21  ;;  %1568 = vmatpush1.msra.mxu1 %v4023_v22 }
 0x372   :  { %1498 = vmatprep.subr.mxu0 %v4027_v23  ;;  %1569 = vmatprep.subr.mxu1 %v4029_v24 }
 0x373   :  { %1499 = vmatpush1.msra.mxu0 %v4031_v25  ;;  %1570 = vmatpush1.msra.mxu1 %v4035_v26 }
 0x374   :  { %1500 = vmatprep.subr.mxu0 %v4037_v28  ;;  %1571 = vmatprep.subr.mxu1 %v4039_v30 }
 0x375   :  { %1501 = vmatpush1.msra.mxu0 %v4043_v31  ;;  %1572 = vmatpush1.msra.mxu1 %v4045_v32 }
 0x376   :  { %1502 = vmatprep.subr.mxu0 %v4047_v33  ;;  %1573 = vmatprep.subr.mxu1 %v4051_v34 }
 0x377   :  { %1503 = vmatpush1.msra.mxu0 %v4053_v35  ;;  %1574 = vmatpush1.msra.mxu1 %v4055_v36 }
 0x378   :  { %1504 = vmatprep.subr.mxu0 %v4059_v37  ;;  %1575 = vmatprep.subr.mxu1 %v4061_v39 }
 0x379   :  { %1505 = vmatpush1.msra.mxu0 %v4065_v40  ;;  %1576 = vmatpush1.msra.mxu1 %v4067_v41 }
 0x37a   :  { %1506 = vmatprep.subr.mxu0 %v4071_v42  ;;  %1577 = vmatprep.subr.mxu1 %v4073_v43 }
 0x37b   :  { %1507 = vmatpush1.msra.mxu0 %v4077_v44  ;;  %1578 = vmatpush1.msra.mxu1 %v4750_v63 }
 0x37c   :  { %1508 = vmatprep.subr.mxu0 %v4751_v51  ;;  %1579 = vmatprep.subr.mxu1 %v4752_v45  ;;  %v4773_v45 = vld [vmem:[#allocation49_spill] sm:$0xff] }
 0x37d   :  { %1509 = vmatpush1.msra.mxu0 %v4753_v46  ;;  %1580 = vmatpush1.msra.mxu1 %v4754_v49  ;;  %v4772_v46 = vld [vmem:[#allocation51_spill] sm:$0xff] }
 0x37e   :  { %1510 = vmatprep.subr.mxu0 %v4755_v59  ;;  %1581 = vmatprep.subr.mxu1 %v4756_v38 }
 0x37f   :  { %1511 = vmatpush1.msra.mxu0 %v4757_v53  ;;  %1582 = vmatpush1.msra.mxu1 %v4758_v56  ;;  %v4768_v56 = vld [vmem:[#allocation20_spill] sm:$0xff] }
 0x380   :  { %1512 = vmatprep.subr.mxu0 %v4759_v62  ;;  %1583 = vmatprep.subr.mxu1 %v4760_v20  ;;  %v4769_v62 = vld [vmem:[#allocation21_spill] sm:$0xff] }
 0x381   :  { %1513 = vmatpush1.msra.mxu0 %v4761_v1  ;;  %1584 = vmatpush1.msra.mxu1 %v4762_v50  ;;  %v4770_v1 = vld [vmem:[#allocation48_spill] sm:$0xff] }
 0x382   :  { %1514 = vmatprep.subr.mxu0 %v4763_v61  ;;  %1585 = vmatprep.subr.mxu1 %v4764_v11  ;;  %v4771_v61 = vld [vmem:[#allocation50_spill] sm:$0xff] }
 0x383   :  { %1515 = vmatpush1.msra.mxu0 %v4765_v27  ;;  %1548 = vmatprep.mubr.f32.mxu0 %v4766_v2 }
 0x384   :  { %1586 = vmatpush1.msra.mxu1 %v4767_v48  ;;  %1619 = vmatprep.mubr.f32.mxu1 %v4766_v2 }
 0x385   :  { %1731 = vmatprep.subr.mxu0 %v4768_v56  ;;  %1802 = vmatprep.subr.mxu1 %v4769_v62 }
 0x424   :  { %v1303_v20 = vpop.f32.mrf.mxu0  ;;  %v1374_v11 = vpop.f32.mrf.mxu1 }
 0x425   :  { %v1379_v53 = vadd.f32 %v1303_v20, %v4770_v1  ;;  %v1381_v2 = vadd.f32 %v1374_v11, %v4773_v45  ;;  %v4780_v11 = vld [vmem:[#allocation27_spill] sm:$0xff] }
 0x426   :  { %v1305_v50 = vpop.f32.mrf.mxu0  ;;  %v1376_v49 = vpop.f32.mrf.mxu1 }
 0x427   :  { %v2969_v38 = vmul.f32 -1.442695, %v1379_v53  ;;  %v1380_v59 = vadd.f32 %v1305_v50, %v4771_v61  ;;  %v1382_v48 = vadd.f32 %v1376_v49, %v4772_v46 }
 0x429   :  { %3131 = vpow2.f32 %v2969_v38  ;;  %v2970_v27 = vmul.f32 -1.442695, %v1380_v59  ;;  %v2971_v51 = vmul.f32 -1.442695, %v1382_v48 }
 0x42b   :  { %3133 = vpow2.f32 %v2970_v27 }
 0x42c   :  { %3135 = vtanh.f32 %v1381_v2  ;;  %v4781_v2 = vld [vmem:[#allocation28_spill] sm:$0xff] }
 0x42d   :  { %3137 = vpow2.f32 %v2971_v51  ;;  %v4777_v51 = vld [vmem:[#allocation24_spill] sm:$0xff] }
 0x436   :  { %v3132_v56 = vpop.eup %3131 }
 0x437   :  { %v1386_v63 = vadd.f32 1.0, %v3132_v56  ;;  %v4778_v56 = vld [vmem:[#allocation25_spill] sm:$0xff] }
 0x438   :  { %v3134_v62 = vpop.eup %3133 }
 0x439   :  { %3139 = vrcp.f32 %v1386_v63  ;;  %v1392_v20 = vadd.f32 1.0, %v3134_v62  ;;  %v3136_v53 = vpop.eup %3135  ;;  %v4776_v63 = vld [vmem:[#allocation23_spill] sm:$0xff]  ;;  %v4779_v62 = vld [vmem:[#allocation26_spill] sm:$0xff] }
 0x43a   :  { %v3138_v1 = vpop.eup %3137 }
 0x43b   :  { %3141 = vrcp.f32 %v1392_v20  ;;  %v1399_v61 = vadd.f32 1.0, %v3138_v1  ;;  %v4782_v20 = vld [vmem:[#allocation29_spill] sm:$0xff]  ;;  %v4784_v1 = vld [vmem:[#allocation31_spill] sm:$0xff] }
 0x43d   :  { %3143 = vrcp.f32 %v1399_v61  ;;  %v4788_v61 = vld [vmem:[#allocation35_spill] sm:$0xff] }
 0x446   :  { %v3140_v38 = vpop.eup %3139 }
 0x447   :  { %v1404_v50 = vmul.f32 %v3140_v38, %v3136_v53  ;;  %v4783_v53 = vld [vmem:[#allocation30_spill] sm:$0xff]  ;;  %v4785_v38 = vld [vmem:[#allocation32_spill] sm:$0xff] }
 0x448   :  { %v3142_v59 = vpop.eup %3141 }
 0x449   :  { %v1403_v27 = vmul.f32 %v3142_v59, %v4142_v47  ;;  %v4775_v47 = vld [vmem:[#allocation22_spill] sm:$0xff] }
 0x44a   :  { %v3144_v48 = vpop.eup %3143  ;;  %v4787_v59 = vld [vmem:[#allocation34_spill] sm:$0xff] }
 0x44b   :  { %v4220_v46 = vadd.f32 %v1404_v50, %v1403_v27  ;;  %v4786_v50 = vld [vmem:[#allocation33_spill] sm:$0xff]  ;;  %v4789_v27 = vld [vmem:[#allocation36_spill] sm:$0xff] }
 0x44d   :  { %3145 = vtanh.f32 %v4220_v46 }
 0x45a   :  { %v3146_v45 = vpop.eup %3145 }
 0x45b   :  { %v4223_v49 = vmul.f32 %v3146_v45, %v3144_v48  ;;  %v4790_v48 = vld [vmem:[#allocation37_spill] sm:$0xff]  ;;  %v4791_v45 = vmov 0.0  }
 0x45d   :  { %4774 = vst [vmem:[#allocation42_spill] sm:$0xff] %v4223_v49  ;;  %1549 = vmatmul.mubr.f32.vlgmr.msra.gmra.mxu0 %v4223_v49  ;;  %1620 = vmatmul.mubr.f32.vlgmr.msra.gmra.mxu1 %v4223_v49  ;;  %v4792_v49 = vld [vmem:[#allocation38_spill] sm:$0xff] }
 0x45e   :  { %1732 = vmatpush1.msra.mxu0 %v3949_v54  ;;  %1803 = vmatpush1.msra.mxu1 %v3951_v29 }
 0x45f   :  { %1733 = vmatprep.subr.mxu0 %v3955_v0  ;;  %1804 = vmatprep.subr.mxu1 %v3957_v57 }
 0x460   :  { %1734 = vmatpush1.msra.mxu0 %v3961_v55  ;;  %1805 = vmatpush1.msra.mxu1 %v3963_v60 }
 0x461   :  { %1735 = vmatprep.subr.mxu0 %v3967_v3  ;;  %1806 = vmatprep.subr.mxu1 %v3969_v4 }
 0x462   :  { %1736 = vmatpush1.msra.mxu0 %v3973_v52  ;;  %1807 = vmatpush1.msra.mxu1 %v3975_v58 }
 0x463   :  { %1737 = vmatprep.subr.mxu0 %v3979_v5  ;;  %1808 = vmatprep.subr.mxu1 %v3981_v6 }
 0x464   :  { %1738 = vmatpush1.msra.mxu0 %v3985_v7  ;;  %1809 = vmatpush1.msra.mxu1 %v3987_v8 }
 0x465   :  { %1739 = vmatprep.subr.mxu0 %v3991_v9  ;;  %1810 = vmatprep.subr.mxu1 %v3993_v10 }
 0x466   :  { %1740 = vmatpush1.msra.mxu0 %v3997_v12  ;;  %1811 = vmatpush1.msra.mxu1 %v3999_v13 }
 0x467   :  { %1741 = vmatprep.subr.mxu0 %v4003_v14  ;;  %1812 = vmatprep.subr.mxu1 %v4005_v15 }
 0x468   :  { %1742 = vmatpush1.msra.mxu0 %v4009_v16  ;;  %1813 = vmatpush1.msra.mxu1 %v4011_v17 }
 0x469   :  { %1743 = vmatprep.subr.mxu0 %v4015_v18  ;;  %1814 = vmatprep.subr.mxu1 %v4017_v19 }
 0x46a   :  { %1744 = vmatpush1.msra.mxu0 %v4021_v21  ;;  %1815 = vmatpush1.msra.mxu1 %v4023_v22 }
 0x46b   :  { %1745 = vmatprep.subr.mxu0 %v4027_v23  ;;  %1816 = vmatprep.subr.mxu1 %v4029_v24 }
 0x46c   :  { %1746 = vmatpush1.msra.mxu0 %v4031_v25  ;;  %1817 = vmatpush1.msra.mxu1 %v4035_v26 }
 0x46d   :  { %1747 = vmatprep.subr.mxu0 %v4037_v28  ;;  %1818 = vmatprep.subr.mxu1 %v4039_v30 }
 0x46e   :  { %1748 = vmatpush1.msra.mxu0 %v4043_v31  ;;  %1819 = vmatpush1.msra.mxu1 %v4045_v32 }
 0x46f   :  { %1749 = vmatprep.subr.mxu0 %v4047_v33  ;;  %1820 = vmatprep.subr.mxu1 %v4051_v34 }
 0x470   :  { %1750 = vmatpush1.msra.mxu0 %v4053_v35  ;;  %1821 = vmatpush1.msra.mxu1 %v4055_v36 }
 0x471   :  { %1751 = vmatprep.subr.mxu0 %v4059_v37  ;;  %1822 = vmatprep.subr.mxu1 %v4061_v39 }
 0x472   :  { %1752 = vmatpush1.msra.mxu0 %v4065_v40  ;;  %1823 = vmatpush1.msra.mxu1 %v4067_v41 }
 0x473   :  { %1753 = vmatprep.subr.mxu0 %v4071_v42  ;;  %1824 = vmatprep.subr.mxu1 %v4073_v43 }
 0x474   :  { %1754 = vmatpush1.msra.mxu0 %v4077_v44  ;;  %1825 = vmatpush1.msra.mxu1 %v4775_v47 }
 0x475   :  { %1755 = vmatprep.subr.mxu0 %v4776_v63  ;;  %1826 = vmatprep.subr.mxu1 %v4777_v51  ;;  %v4798_v51 = vld [vmem:[#allocation53_spill] sm:$0xff] }
 0x476   :  { %1756 = vmatpush1.msra.mxu0 %v4778_v56  ;;  %1827 = vmatpush1.msra.mxu1 %v4779_v62  ;;  %v4797_v56 = vld [vmem:[#allocation55_spill] sm:$0xff] }
 0x477   :  { %1757 = vmatprep.subr.mxu0 %v4780_v11  ;;  %1828 = vmatprep.subr.mxu1 %v4781_v2 }
 0x478   :  { %1758 = vmatpush1.msra.mxu0 %v4782_v20  ;;  %1829 = vmatpush1.msra.mxu1 %v4783_v53  ;;  %v4793_v53 = vld [vmem:[#allocation20_spill] sm:$0xff] }
 0x479   :  { %1759 = vmatprep.subr.mxu0 %v4784_v1  ;;  %1830 = vmatprep.subr.mxu1 %v4785_v38  ;;  %v4794_v1 = vld [vmem:[#allocation21_spill] sm:$0xff] }
 0x47a   :  { %1760 = vmatpush1.msra.mxu0 %v4786_v50  ;;  %1831 = vmatpush1.msra.mxu1 %v4787_v59  ;;  %v4795_v50 = vld [vmem:[#allocation52_spill] sm:$0xff] }
 0x47b   :  { %1761 = vmatprep.subr.mxu0 %v4788_v61  ;;  %1832 = vmatprep.subr.mxu1 %v4789_v27  ;;  %v4796_v61 = vld [vmem:[#allocation54_spill] sm:$0xff] }
 0x47c   :  { %1762 = vmatpush1.msra.mxu0 %v4790_v48  ;;  %1795 = vmatprep.mubr.f32.mxu0 %v4791_v45 }
 0x47d   :  { %1833 = vmatpush1.msra.mxu1 %v4792_v49  ;;  %1866 = vmatprep.mubr.f32.mxu1 %v4791_v45 }
 0x47e   :  { %1978 = vmatprep.subr.mxu0 %v4793_v53  ;;  %2049 = vmatprep.subr.mxu1 %v4794_v1 }
 0x51d   :  { %v1550_v38 = vpop.f32.mrf.mxu0  ;;  %v1621_v27 = vpop.f32.mrf.mxu1 }
 0x51e   :  { %v1626_v20 = vadd.f32 %v1550_v38, %v4795_v50  ;;  %v1628_v45 = vadd.f32 %v1621_v27, %v4798_v51  ;;  %v2222_v27 = vld [vmem:[#allocation9 + $0x1e8] sm:$0xff] }
 0x51f   :  { %v1552_v59 = vpop.f32.mrf.mxu0  ;;  %v1623_v62 = vpop.f32.mrf.mxu1 }
 0x520   :  { %v2972_v2 = vmul.f32 -1.442695, %v1626_v20  ;;  %v1627_v11 = vadd.f32 %v1552_v59, %v4796_v61  ;;  %v1629_v49 = vadd.f32 %v1623_v62, %v4797_v56 }
 0x522   :  { %3147 = vpow2.f32 %v2972_v2  ;;  %v2973_v48 = vmul.f32 -1.442695, %v1627_v11  ;;  %v2974_v63 = vmul.f32 -1.442695, %v1629_v49 }
 0x524   :  { %3149 = vpow2.f32 %v2973_v48 }
 0x525   :  { %3151 = vtanh.f32 %v1628_v45  ;;  %v2224_v45 = vld [vmem:[#allocation9 + $0x1f8] sm:$0xff] }
 0x526   :  { %3153 = vpow2.f32 %v2974_v63 }
 0x52f   :  { %v3148_v53 = vpop.eup %3147 }
 0x530   :  { %v1633_v47 = vadd.f32 1.0, %v3148_v53  ;;  %v2221_v53 = vld [vmem:[#allocation9 + $0x1e0] sm:$0xff] }
 0x531   :  { %v3150_v1 = vpop.eup %3149 }
 0x532   :  { %3155 = vrcp.f32 %v1633_v47  ;;  %v1639_v38 = vadd.f32 1.0, %v3150_v1  ;;  %v3152_v20 = vpop.eup %3151  ;;  %v2223_v1 = vld [vmem:[#allocation9 + $0x1f0] sm:$0xff] }
 0x533   :  { %v3154_v50 = vpop.eup %3153 }
 0x534   :  { %3157 = vrcp.f32 %v1639_v38  ;;  %v1646_v61 = vadd.f32 1.0, %v3154_v50  ;;  %v2218_v38 = vld [vmem:[#allocation9 + $0x1c8] sm:$0xff]  ;;  %v2217_v50 = vld [vmem:[#allocation9 + $0x1c0] sm:$0xff] }
 0x536   :  { %3159 = vrcp.f32 %v1646_v61  ;;  %v2213_v61 = vld [vmem:[#allocation9 + $0x1a0] sm:$0xff] }
 0x53f   :  { %v3156_v2 = vpop.eup %3155 }
 0x540   :  { %v1651_v59 = vmul.f32 %v3156_v2, %v3152_v20  ;;  %v2220_v20 = vld [vmem:[#allocation9 + $0x1d8] sm:$0xff]  ;;  %v2219_v2 = vld [vmem:[#allocation9 + $0x1d0] sm:$0xff] }
 0x541   :  { %v3158_v11 = vpop.eup %3157 }
 0x542   :  { %v1650_v48 = vmul.f32 %v3158_v11, %v4220_v46  ;;  %v2216_v11 = vld [vmem:[#allocation9 + $0x1b8] sm:$0xff] }
 0x543   :  { %v3160_v49 = vpop.eup %3159 }
 0x544   :  { %v4298_v56 = vadd.f32 %v1651_v59, %v1650_v48  ;;  %v2214_v59 = vld [vmem:[#allocation9 + $0x1a8] sm:$0xff]  ;;  %v2215_v48 = vld [vmem:[#allocation9 + $0x1b0] sm:$0xff] }
 0x546   :  { %3161 = vtanh.f32 %v4298_v56 }
 0x553   :  { %v3162_v51 = vpop.eup %3161 }
 0x554   :  { %v4301_v62 = vmul.f32 %v3162_v51, %v3160_v49  ;;  %v2212_v49 = vld [vmem:[#allocation9 + $0x198] sm:$0xff]  ;;  %v2209_v51 = vld [vmem:[#allocation9 + $0x180] sm:$0xff] }
 0x556   :  { %1796 = vmatmul.mubr.f32.vlgmr.msra.gmra.mxu0 %v4301_v62  ;;  %1867 = vmatmul.mubr.f32.vlgmr.msra.gmra.mxu1 %v4301_v62 }
 0x557   :  { %1979 = vmatpush1.msra.mxu0 %v3949_v54  ;;  %2050 = vmatpush1.msra.mxu1 %v3951_v29  ;;  %v4799_v54 = vld [vmem:[#allocation22_spill] sm:$0xff]  ;;  %v4800_v29 = vld [vmem:[#allocation23_spill] sm:$0xff] }
 0x558   :  { %1980 = vmatprep.subr.mxu0 %v3955_v0  ;;  %2051 = vmatprep.subr.mxu1 %v3957_v57  ;;  %v4801_v0 = vld [vmem:[#allocation24_spill] sm:$0xff]  ;;  %v4802_v57 = vld [vmem:[#allocation25_spill] sm:$0xff] }
 0x559   :  { %1981 = vmatpush1.msra.mxu0 %v3961_v55  ;;  %2052 = vmatpush1.msra.mxu1 %v3963_v60  ;;  %v4803_v55 = vld [vmem:[#allocation26_spill] sm:$0xff]  ;;  %v4804_v60 = vld [vmem:[#allocation27_spill] sm:$0xff] }
 0x55a   :  { %1982 = vmatprep.subr.mxu0 %v3967_v3  ;;  %2053 = vmatprep.subr.mxu1 %v3969_v4  ;;  %v4805_v3 = vld [vmem:[#allocation28_spill] sm:$0xff]  ;;  %v4806_v4 = vld [vmem:[#allocation29_spill] sm:$0xff] }
 0x55b   :  { %1983 = vmatpush1.msra.mxu0 %v3973_v52  ;;  %2054 = vmatpush1.msra.mxu1 %v3975_v58  ;;  %v4807_v52 = vld [vmem:[#allocation30_spill] sm:$0xff]  ;;  %v4808_v58 = vld [vmem:[#allocation31_spill] sm:$0xff] }
 0x55c   :  { %1984 = vmatprep.subr.mxu0 %v3979_v5  ;;  %2055 = vmatprep.subr.mxu1 %v3981_v6  ;;  %v4809_v5 = vld [vmem:[#allocation32_spill] sm:$0xff]  ;;  %v4810_v6 = vld [vmem:[#allocation33_spill] sm:$0xff] }
 0x55d   :  { %1985 = vmatpush1.msra.mxu0 %v3985_v7  ;;  %2056 = vmatpush1.msra.mxu1 %v3987_v8  ;;  %v4811_v7 = vld [vmem:[#allocation34_spill] sm:$0xff]  ;;  %v4812_v8 = vld [vmem:[#allocation35_spill] sm:$0xff] }
 0x55e   :  { %1986 = vmatprep.subr.mxu0 %v3991_v9  ;;  %2057 = vmatprep.subr.mxu1 %v3993_v10  ;;  %v4813_v9 = vld [vmem:[#allocation36_spill] sm:$0xff]  ;;  %v4814_v10 = vld [vmem:[#allocation37_spill] sm:$0xff] }
 0x55f   :  { %1987 = vmatpush1.msra.mxu0 %v3997_v12  ;;  %2058 = vmatpush1.msra.mxu1 %v3999_v13  ;;  %v4815_v12 = vmov 0.0   ;;  %v4816_v13 = vld [vmem:[#allocation38_spill] sm:$0xff] }
 0x560   :  { %1988 = vmatprep.subr.mxu0 %v4003_v14  ;;  %2059 = vmatprep.subr.mxu1 %v4005_v15  ;;  %v4817_v15 = vld [vmem:[#allocation56_spill] sm:$0xff] }
 0x561   :  { %1989 = vmatpush1.msra.mxu0 %v4009_v16  ;;  %2060 = vmatpush1.msra.mxu1 %v4011_v17 }
 0x562   :  { %1990 = vmatprep.subr.mxu0 %v4015_v18  ;;  %2061 = vmatprep.subr.mxu1 %v4017_v19  ;;  %v4818_v19 = vld [vmem:[#allocation58_spill] sm:$0xff] }
 0x563   :  { %1991 = vmatpush1.msra.mxu0 %v4021_v21  ;;  %2062 = vmatpush1.msra.mxu1 %v4023_v22 }
 0x564   :  { %1992 = vmatprep.subr.mxu0 %v4027_v23  ;;  %2063 = vmatprep.subr.mxu1 %v4029_v24 }
 0x565   :  { %1993 = vmatpush1.msra.mxu0 %v4031_v25  ;;  %2064 = vmatpush1.msra.mxu1 %v4035_v26  ;;  %v4819_v25 = vld [vmem:[#allocation59_spill] sm:$0xff] }
 0x566   :  { %1994 = vmatprep.subr.mxu0 %v4037_v28  ;;  %2065 = vmatprep.subr.mxu1 %v4039_v30  ;;  %v4820_v28 = vld [vmem:[#allocation57_spill] sm:$0xff] }
 0x567   :  { %1995 = vmatpush1.msra.mxu0 %v4043_v31  ;;  %2066 = vmatpush1.msra.mxu1 %v4045_v32 }
 0x568   :  { %1996 = vmatprep.subr.mxu0 %v4047_v33  ;;  %2067 = vmatprep.subr.mxu1 %v4051_v34 }
 0x569   :  { %1997 = vmatpush1.msra.mxu0 %v4053_v35  ;;  %2068 = vmatpush1.msra.mxu1 %v4055_v36 }
 0x56a   :  { %1998 = vmatprep.subr.mxu0 %v4059_v37  ;;  %2069 = vmatprep.subr.mxu1 %v4061_v39 }
 0x56b   :  { %1999 = vmatpush1.msra.mxu0 %v4065_v40  ;;  %2070 = vmatpush1.msra.mxu1 %v4067_v41 }
 0x56c   :  { %2000 = vmatprep.subr.mxu0 %v4071_v42  ;;  %2071 = vmatprep.subr.mxu1 %v4073_v43 }
 0x56d   :  { %2001 = vmatpush1.msra.mxu0 %v4077_v44  ;;  %2072 = vmatpush1.msra.mxu1 %v4799_v54  ;;  %v2211_v54 = vld [vmem:[#allocation9 + $0x190] sm:$0xff] }
 0x56e   :  { %2002 = vmatprep.subr.mxu0 %v4800_v29  ;;  %2073 = vmatprep.subr.mxu1 %v4801_v0  ;;  %v2206_v29 = vld [vmem:[#allocation9 + $0x168] sm:$0xff]  ;;  %v2208_v0 = vld [vmem:[#allocation9 + $0x178] sm:$0xff] }
 0x56f   :  { %2003 = vmatpush1.msra.mxu0 %v4802_v57  ;;  %2074 = vmatpush1.msra.mxu1 %v4803_v55  ;;  %v2205_v57 = vld [vmem:[#allocation9 + $0x160] sm:$0xff]  ;;  %v2207_v55 = vld [vmem:[#allocation9 + $0x170] sm:$0xff] }
 0x570   :  { %2004 = vmatprep.subr.mxu0 %v4804_v60  ;;  %2075 = vmatprep.subr.mxu1 %v4805_v3  ;;  %v2202_v60 = vld [vmem:[#allocation9 + $0x148] sm:$0xff]  ;;  %v2204_v3 = vld [vmem:[#allocation9 + $0x158] sm:$0xff] }
 0x571   :  { %2005 = vmatpush1.msra.mxu0 %v4806_v4  ;;  %2076 = vmatpush1.msra.mxu1 %v4807_v52  ;;  %v2201_v4 = vld [vmem:[#allocation9 + $0x140] sm:$0xff]  ;;  %v2203_v52 = vld [vmem:[#allocation9 + $0x150] sm:$0xff] }
 0x572   :  { %2006 = vmatprep.subr.mxu0 %v4808_v58  ;;  %2077 = vmatprep.subr.mxu1 %v4809_v5  ;;  %v2198_v58 = vld [vmem:[#allocation9 + $0x128] sm:$0xff]  ;;  %v2200_v5 = vld [vmem:[#allocation9 + $0x138] sm:$0xff] }
 0x573   :  { %2007 = vmatpush1.msra.mxu0 %v4810_v6  ;;  %2078 = vmatpush1.msra.mxu1 %v4811_v7  ;;  %v2197_v6 = vld [vmem:[#allocation9 + $0x120] sm:$0xff]  ;;  %v2199_v7 = vld [vmem:[#allocation9 + $0x130] sm:$0xff] }
 0x574   :  { %2008 = vmatprep.subr.mxu0 %v4812_v8  ;;  %2079 = vmatprep.subr.mxu1 %v4813_v9  ;;  %v2194_v8 = vld [vmem:[#allocation9 + $0x108] sm:$0xff]  ;;  %v2196_v9 = vld [vmem:[#allocation9 + $0x118] sm:$0xff] }
 0x575   :  { %2009 = vmatpush1.msra.mxu0 %v4814_v10  ;;  %2042 = vmatprep.mubr.f32.mxu0 %v4815_v12  ;;  %v2193_v10 = vld [vmem:[#allocation9 + $0x100] sm:$0xff] }
 0x576   :  { %2080 = vmatpush1.msra.mxu1 %v4816_v13  ;;  %2113 = vmatprep.mubr.f32.mxu1 %v4815_v12  ;;  %v2195_v13 = vld [vmem:[#allocation9 + $0x110] sm:$0xff] }
 0x577   :  { %2225 = vmatprep.subr.mxu0 %v2222_v27  ;;  %2296 = vmatprep.subr.mxu1 %v2224_v45  ;;  %v2162_v27 = vld [vmem:[#allocation9 + $0x8] sm:$0xff]  ;;  %v2164_v45 = vld [vmem:[#allocation9 + $0x18] sm:$0xff] }
 0x616   :  { %v1797_v14 = vpop.f32.mrf.mxu0  ;;  %v1868_v22 = vpop.f32.mrf.mxu1 }
 0x617   :  { %v1873_v16 = vadd.f32 %v1797_v14, %v4817_v15  ;;  %v1875_v30 = vadd.f32 %v1868_v22, %v4820_v28  ;;  %v2190_v14 = vld [vmem:[#allocation9 + $0xe8] sm:$0xff]  ;;  %v2192_v15 = vld [vmem:[#allocation9 + $0xf8] sm:$0xff]  ;;  %v2187_v22 = vld [vmem:[#allocation9 + $0xd0] sm:$0xff] }
 0x618   :  { %v1799_v17 = vpop.f32.mrf.mxu0  ;;  %v1870_v24 = vpop.f32.mrf.mxu1  ;;  %v2178_v28 = vld [vmem:[#allocation9 + $0x88] sm:$0xff] }
 0x619   :  { %v2975_v18 = vmul.f32 -1.442695, %v1873_v16  ;;  %v1874_v21 = vadd.f32 %v1799_v17, %v4818_v19  ;;  %v1876_v26 = vadd.f32 %v1870_v24, %v4819_v25  ;;  %v2189_v16 = vld [vmem:[#allocation9 + $0xe0] sm:$0xff]  ;;  %v2191_v17 = vld [vmem:[#allocation9 + $0xf0] sm:$0xff]  ;;  %v2188_v19 = vld [vmem:[#allocation9 + $0xd8] sm:$0xff] }
 0x61a   :  { %v2184_v24 = vld [vmem:[#allocation9 + $0xb8] sm:$0xff]  ;;  %v2181_v25 = vld [vmem:[#allocation9 + $0xa0] sm:$0xff] }
 0x61b   :  { %3163 = vpow2.f32 %v2975_v18  ;;  %v2976_v23 = vmul.f32 -1.442695, %v1874_v21  ;;  %v2977_v31 = vmul.f32 -1.442695, %v1876_v26  ;;  %v2186_v18 = vld [vmem:[#allocation9 + $0xc8] sm:$0xff]  ;;  %v2185_v21 = vld [vmem:[#allocation9 + $0xc0] sm:$0xff] }
 0x61c   :  { %v2183_v26 = vld [vmem:[#allocation9 + $0xb0] sm:$0xff] }
 0x61d   :  { %3165 = vpow2.f32 %v2976_v23  ;;  %v2182_v23 = vld [vmem:[#allocation9 + $0xa8] sm:$0xff] }
 0x61e   :  { %3167 = vtanh.f32 %v1875_v30  ;;  %v2180_v30 = vld [vmem:[#allocation9 + $0x98] sm:$0xff] }
 0x61f   :  { %3169 = vpow2.f32 %v2977_v31  ;;  %v2177_v31 = vld [vmem:[#allocation9 + $0x80] sm:$0xff] }
 0x628   :  { %v3164_v32 = vpop.eup %3163 }
 0x629   :  { %v1880_v33 = vadd.f32 1.0, %v3164_v32  ;;  %v2179_v32 = vld [vmem:[#allocation9 + $0x90] sm:$0xff] }
 0x62a   :  { %v3166_v34 = vpop.eup %3165 }
 0x62b   :  { %3171 = vrcp.f32 %v1880_v33  ;;  %v1886_v35 = vadd.f32 1.0, %v3166_v34  ;;  %v3168_v36 = vpop.eup %3167  ;;  %v2174_v33 = vld [vmem:[#allocation9 + $0x68] sm:$0xff]  ;;  %v2176_v34 = vld [vmem:[#allocation9 + $0x78] sm:$0xff] }
 0x62c   :  { %v3170_v37 = vpop.eup %3169 }
 0x62d   :  { %3173 = vrcp.f32 %v1886_v35  ;;  %v1893_v42 = vadd.f32 1.0, %v3170_v37  ;;  %v2173_v35 = vld [vmem:[#allocation9 + $0x60] sm:$0xff]  ;;  %v2170_v37 = vld [vmem:[#allocation9 + $0x48] sm:$0xff] }
 0x62f   :  { %3175 = vrcp.f32 %v1893_v42  ;;  %v2166_v42 = vld [vmem:[#allocation9 + $0x28] sm:$0xff] }
 0x638   :  { %v3172_v39 = vpop.eup %3171 }
 0x639   :  { %v1898_v40 = vmul.f32 %v3172_v39, %v3168_v36  ;;  %v2175_v36 = vld [vmem:[#allocation9 + $0x70] sm:$0xff]  ;;  %v2172_v39 = vld [vmem:[#allocation9 + $0x58] sm:$0xff] }
 0x63a   :  { %v3174_v41 = vpop.eup %3173 }
 0x63b   :  { %v1897_v43 = vmul.f32 %v3174_v41, %v4298_v56  ;;  %v2210_v56 = vld [vmem:[#allocation9 + $0x188] sm:$0xff]  ;;  %v2171_v41 = vld [vmem:[#allocation9 + $0x50] sm:$0xff] }
 0x63c   :  { %v3176_v46 = vpop.eup %3175 }
 0x63d   :  { %v4374_v44 = vadd.f32 %v1898_v40, %v1897_v43  ;;  %v2169_v40 = vld [vmem:[#allocation9 + $0x40] sm:$0xff]  ;;  %v2168_v43 = vld [vmem:[#allocation9 + $0x38] sm:$0xff] }
 0x63f   :  { %3177 = vtanh.f32 %v4374_v44 }
 0x64c   :  { %v3178_v47 = vpop.eup %3177 }
 0x64d   :  { %v4377_v63 = vmul.f32 %v3178_v47, %v3176_v46  ;;  %v2165_v46 = vld [vmem:[#allocation9 + $0x20] sm:$0xff]  ;;  %v2167_v47 = vld [vmem:[#allocation9 + $0x30] sm:$0xff] }
 0x64f   :  { %2043 = vmatmul.mubr.f32.vlgmr.msra.gmra.mxu0 %v4377_v63  ;;  %2114 = vmatmul.mubr.f32.vlgmr.msra.gmra.mxu1 %v4377_v63 }
 0x650   :  { %2289 = vmatprep.mubr.f32.mxu0 %v4815_v12  ;;  %2360 = vmatprep.mubr.f32.mxu1 %v4815_v12 }
 0x651   :  { %2226 = vmatpush1.msra.mxu0 %v2221_v53  ;;  %2297 = vmatpush1.msra.mxu1 %v2223_v1  ;;  %v2161_v53 = vld [vmem:[#allocation9] sm:$0xff]  ;;  %v2163_v1 = vld [vmem:[#allocation9 + $0x10] sm:$0xff] }
 0x652   :  { %2227 = vmatprep.subr.mxu0 %v2218_v38  ;;  %2298 = vmatprep.subr.mxu1 %v2220_v20  ;;  %v2454_v38 = vld [vmem:[#allocation11 + $0x170] sm:$0xff]  ;;  %v4383_v20 = vld [vmem:[#allocation11 + $0x178] sm:$0xff] }
 0x653   :  { %2228 = vmatpush1.msra.mxu0 %v2217_v50  ;;  %2299 = vmatpush1.msra.mxu1 %v2219_v2  ;;  %v2739_v50 = vld [vmem:[%s4560_s1] sm:$0xff]  ;;  %v2741_v2 = vld [vmem:[%s4560_s1 + $0x10] sm:$0xff] }
 0x654   :  { %2229 = vmatprep.subr.mxu0 %v2214_v59  ;;  %2300 = vmatprep.subr.mxu1 %v2216_v11  ;;  %v3391_v59 = vmov 0   ;;  %v2740_v11 = vld [vmem:[%s4560_s1 + $0x8] sm:$0xff] }
 0x655   :  { %2230 = vmatpush1.msra.mxu0 %v2213_v61  ;;  %2301 = vmatpush1.msra.mxu1 %v2215_v48  ;;  %v2742_v61 = vld [vmem:[%s4560_s1 + $0x18] sm:$0xff]  ;;  %v2743_v48 = vld [vmem:[%s4560_s1 + $0x20] sm:$0xff] }
 0x656   :  { %2231 = vmatprep.subr.mxu0 %v2210_v56  ;;  %2302 = vmatprep.subr.mxu1 %v2212_v49  ;;  %v2744_v56 = vld [vmem:[%s4560_s1 + $0x28] sm:$0xff]  ;;  %v2745_v49 = vld [vmem:[%s4560_s1 + $0x30] sm:$0xff] }
 0x657   :  { %2232 = vmatpush1.msra.mxu0 %v2209_v51  ;;  %2303 = vmatpush1.msra.mxu1 %v2211_v54  ;;  %v4821_v54 = vld [vmem:[#allocation60_spill] sm:$0xff] }
 0x658   :  { %2233 = vmatprep.subr.mxu0 %v2206_v29  ;;  %2304 = vmatprep.subr.mxu1 %v2208_v0 }
 0x659   :  { %2234 = vmatpush1.msra.mxu0 %v2205_v57  ;;  %2305 = vmatpush1.msra.mxu1 %v2207_v55  ;;  %v4822_v55 = vld [vmem:[#allocation62_spill] sm:$0xff] }
 0x65a   :  { %2235 = vmatprep.subr.mxu0 %v2202_v60  ;;  %2306 = vmatprep.subr.mxu1 %v2204_v3 }
 0x65b   :  { %2236 = vmatpush1.msra.mxu0 %v2201_v4  ;;  %2307 = vmatpush1.msra.mxu1 %v2203_v52 }
 0x65c   :  { %2237 = vmatprep.subr.mxu0 %v2198_v58  ;;  %2308 = vmatprep.subr.mxu1 %v2200_v5  ;;  %v4823_v58 = vld [vmem:[#allocation63_spill] sm:$0xff] }
 0x65d   :  { %2238 = vmatpush1.msra.mxu0 %v2197_v6  ;;  %2309 = vmatpush1.msra.mxu1 %v2199_v7  ;;  %v4824_v6 = vld [vmem:[#allocation61_spill] sm:$0xff] }
 0x65e   :  { %2239 = vmatprep.subr.mxu0 %v2194_v8  ;;  %2310 = vmatprep.subr.mxu1 %v2196_v9 }
 0x65f   :  { %2240 = vmatpush1.msra.mxu0 %v2193_v10  ;;  %2311 = vmatpush1.msra.mxu1 %v2195_v13 }
 0x660   :  { %2241 = vmatprep.subr.mxu0 %v2190_v14  ;;  %2312 = vmatprep.subr.mxu1 %v2192_v15 }
 0x661   :  { %2242 = vmatpush1.msra.mxu0 %v2189_v16  ;;  %2313 = vmatpush1.msra.mxu1 %v2191_v17 }
 0x662   :  { %2243 = vmatprep.subr.mxu0 %v2186_v18  ;;  %2314 = vmatprep.subr.mxu1 %v2188_v19 }
 0x663   :  { %2244 = vmatpush1.msra.mxu0 %v2185_v21  ;;  %2315 = vmatpush1.msra.mxu1 %v2187_v22 }
 0x664   :  { %2245 = vmatprep.subr.mxu0 %v2182_v23  ;;  %2316 = vmatprep.subr.mxu1 %v2184_v24 }
 0x665   :  { %2246 = vmatpush1.msra.mxu0 %v2181_v25  ;;  %2317 = vmatpush1.msra.mxu1 %v2183_v26 }
 0x666   :  { %2247 = vmatprep.subr.mxu0 %v2178_v28  ;;  %2318 = vmatprep.subr.mxu1 %v2180_v30  ;;  %v2453_v28 = vld [vmem:[#allocation11 + $0x168] sm:$0xff]  ;;  %v2451_v30 = vld [vmem:[#allocation11 + $0x158] sm:$0xff] }
 0x667   :  { %2248 = vmatpush1.msra.mxu0 %v2177_v31  ;;  %2319 = vmatpush1.msra.mxu1 %v2179_v32  ;;  %v2452_v31 = vld [vmem:[#allocation11 + $0x160] sm:$0xff]  ;;  %v2450_v32 = vld [vmem:[#allocation11 + $0x150] sm:$0xff] }
 0x668   :  { %2249 = vmatprep.subr.mxu0 %v2174_v33  ;;  %2320 = vmatprep.subr.mxu1 %v2176_v34  ;;  %v2449_v33 = vld [vmem:[#allocation11 + $0x148] sm:$0xff]  ;;  %v2447_v34 = vld [vmem:[#allocation11 + $0x138] sm:$0xff] }
 0x669   :  { %2250 = vmatpush1.msra.mxu0 %v2173_v35  ;;  %2321 = vmatpush1.msra.mxu1 %v2175_v36  ;;  %v4825_v35 = vld [vmem:[#allocation68_spill] sm:$0xff] }
 0x66a   :  { %2251 = vmatprep.subr.mxu0 %v2170_v37  ;;  %2322 = vmatprep.subr.mxu1 %v2172_v39  ;;  %v2445_v36 = vld [vmem:[#allocation11 + $0x128] sm:$0xff]  ;;  %v2446_v37 = vld [vmem:[#allocation11 + $0x130] sm:$0xff]  ;;  %v2444_v39 = vld [vmem:[#allocation11 + $0x120] sm:$0xff] }
 0x66b   :  { %2252 = vmatpush1.msra.mxu0 %v2169_v40  ;;  %2323 = vmatpush1.msra.mxu1 %v2171_v41  ;;  %v2442_v40 = vld [vmem:[#allocation11 + $0x110] sm:$0xff]  ;;  %v2443_v41 = vld [vmem:[#allocation11 + $0x118] sm:$0xff] }
 0x66c   :  { %2253 = vmatprep.subr.mxu0 %v2166_v42  ;;  %2324 = vmatprep.subr.mxu1 %v2168_v43  ;;  %v2441_v42 = vld [vmem:[#allocation11 + $0x108] sm:$0xff]  ;;  %v2439_v43 = vld [vmem:[#allocation11 + $0xf8] sm:$0xff] }
 0x66d   :  { %2254 = vmatpush1.msra.mxu0 %v2165_v46  ;;  %2325 = vmatpush1.msra.mxu1 %v2167_v47  ;;  %v2440_v46 = vld [vmem:[#allocation11 + $0x100] sm:$0xff]  ;;  %v2438_v47 = vld [vmem:[#allocation11 + $0xf0] sm:$0xff] }
 0x66e   :  { %2255 = vmatprep.subr.mxu0 %v2162_v27  ;;  %2326 = vmatprep.subr.mxu1 %v2164_v45  ;;  %v2436_v27 = vld [vmem:[#allocation11 + $0xe0] sm:$0xff]  ;;  %v2437_v45 = vld [vmem:[#allocation11 + $0xe8] sm:$0xff] }
 0x66f   :  { %2256 = vmatpush1.msra.mxu0 %v2161_v53  ;;  %2327 = vmatpush1.msra.mxu1 %v2163_v1  ;;  %v2435_v53 = vld [vmem:[#allocation11 + $0xd8] sm:$0xff]  ;;  %v2433_v1 = vld [vmem:[#allocation11 + $0xc8] sm:$0xff] }
 0x670   :  { %2473 = vmatprep.subr.mxu0 %v2454_v38  ;;  %3024 = vmatprep.subr.mxu1 %v4383_v20  ;;  %v2434_v38 = vld [vmem:[#allocation11 + $0xd0] sm:$0xff] }
 0x671   :  { %3081 = vset.pattern.permute.xlu0 %v3391_v59  ;;  %3082 = vset.pattern.permute.xlu1 %v3391_v59  ;;  %v2429_v59 = vld [vmem:[#allocation11 + $0xa8] sm:$0xff] }
 0x672   :  { %2750 = vperm.xlu0 %3081, %v2739_v50   ;;  %2756 = vperm.xlu1 %3082, %v2741_v2   ;;  %v2430_v50 = vld [vmem:[#allocation11 + $0xb0] sm:$0xff]  ;;  %v2431_v2 = vld [vmem:[#allocation11 + $0xb8] sm:$0xff] }
 0x676   :  { %2753 = vperm.xlu0 %3081, %v2740_v11   ;;  %2759 = vperm.xlu1 %3082, %v2742_v61   ;;  %v2427_v11 = vld [vmem:[#allocation11 + $0x98] sm:$0xff]  ;;  %v2428_v61 = vld [vmem:[#allocation11 + $0xa0] sm:$0xff] }
 0x67a   :  { %2762 = vperm.xlu0 %3081, %v2743_v48   ;;  %2765 = vperm.xlu1 %3082, %v2744_v56   ;;  %v2426_v48 = vld [vmem:[#allocation11 + $0x90] sm:$0xff]  ;;  %v2424_v56 = vld [vmem:[#allocation11 + $0x80] sm:$0xff] }
 0x67e   :  { %2768 = vperm.xlu0 %3081, %v2745_v49   ;;  %v2425_v49 = vld [vmem:[#allocation11 + $0x88] sm:$0xff] }
 0x70f   :  { %v2044_v51 = vpop.f32.mrf.mxu0  ;;  %v2115_v3 = vpop.f32.mrf.mxu1 }
 0x710   :  { %v2120_v29 = vadd.f32 %v2044_v51, %v4821_v54  ;;  %v2122_v7 = vadd.f32 %v2115_v3, %v4824_v6  ;;  %v2423_v51 = vld [vmem:[#allocation11 + $0x78] sm:$0xff]  ;;  %v2421_v54 = vld [vmem:[#allocation11 + $0x68] sm:$0xff] }
 0x711   :  { %v2046_v0 = vpop.f32.mrf.mxu0  ;;  %v2117_v52 = vpop.f32.mrf.mxu1  ;;  %v2415_v3 = vld [vmem:[#allocation11 + $0x38] sm:$0xff] }
 0x712   :  { %v2978_v57 = vmul.f32 -1.442695, %v2120_v29  ;;  %v2121_v60 = vadd.f32 %v2046_v0, %v4822_v55  ;;  %v2123_v5 = vadd.f32 %v2117_v52, %v4823_v58  ;;  %v2422_v29 = vld [vmem:[#allocation11 + $0x70] sm:$0xff]  ;;  %v2420_v0 = vld [vmem:[#allocation11 + $0x60] sm:$0xff]  ;;  %v2419_v55 = vld [vmem:[#allocation11 + $0x58] sm:$0xff] }
 0x713   :  { %v2414_v52 = vld [vmem:[#allocation11 + $0x30] sm:$0xff]  ;;  %v2412_v58 = vld [vmem:[#allocation11 + $0x20] sm:$0xff]  ;;  %v2411_v6 = vld [vmem:[#allocation11 + $0x18] sm:$0xff] }
 0x714   :  { %3179 = vpow2.f32 %v2978_v57  ;;  %v2979_v4 = vmul.f32 -1.442695, %v2121_v60  ;;  %v2980_v8 = vmul.f32 -1.442695, %v2123_v5  ;;  %v2418_v57 = vld [vmem:[#allocation11 + $0x50] sm:$0xff]  ;;  %v2417_v60 = vld [vmem:[#allocation11 + $0x48] sm:$0xff] }
 0x715   :  { %v2413_v5 = vld [vmem:[#allocation11 + $0x28] sm:$0xff] }
 0x716   :  { %3181 = vpow2.f32 %v2979_v4  ;;  %v2416_v4 = vld [vmem:[#allocation11 + $0x40] sm:$0xff] }
 0x717   :  { %3183 = vtanh.f32 %v2122_v7  ;;  %v2409_v7 = vld [vmem:[#allocation11 + $0x8] sm:$0xff] }
 0x718   :  { %3185 = vpow2.f32 %v2980_v8  ;;  %v2410_v8 = vld [vmem:[#allocation11 + $0x10] sm:$0xff] }
 0x721   :  { %v3180_v9 = vpop.eup %3179 }
 0x722   :  { %v2127_v10 = vadd.f32 1.0, %v3180_v9  ;;  %v2408_v9 = vld [vmem:[#allocation11] sm:$0xff] }
 0x723   :  { %v3182_v13 = vpop.eup %3181 }
 0x724   :  { %3187 = vrcp.f32 %v2127_v10  ;;  %v2133_v14 = vadd.f32 1.0, %v3182_v13  ;;  %v3184_v15 = vpop.eup %3183  ;;  %v4826_v10 = vld [vmem:[#allocation19_spill] sm:$0xff] }
 0x725   :  { %v3186_v16 = vpop.eup %3185  ;;  %v4827_v13 = vld [vmem:[#allocation39_spill] sm:$0xff] }
 0x726   :  { %3189 = vrcp.f32 %v2133_v14  ;;  %v2140_v21 = vadd.f32 1.0, %v3186_v16  ;;  %v4828_v14 = vld [vmem:[#allocation42_spill] sm:$0xff] }
 0x728   :  { %3191 = vrcp.f32 %v2140_v21 }
 0x731   :  { %v3188_v17 = vpop.eup %3187 }
 0x732   :  { %v2145_v18 = vmul.f32 %v3188_v17, %v3184_v15  ;;  %v2746_v15 = vld [vmem:[%s4560_s1 + $0x38] sm:$0xff]  ;;  %v4829_v17 = vld [vmem:[#allocation64_spill] sm:$0xff] }
 0x733   :  { %v3190_v19 = vpop.eup %3189  ;;  %2771 = vperm.xlu1 %3082, %v2746_v15  }
 0x734   :  { %v2144_v22 = vmul.f32 %v3190_v19, %v4374_v44  ;;  %v2448_v44 = vld [vmem:[#allocation11 + $0x140] sm:$0xff] }
 0x735   :  { %v3192_v24 = vpop.eup %3191 }
 0x736   :  { %v4412_v23 = vadd.f32 %v2145_v18, %v2144_v22  ;;  %v4830_v22 = vld [vmem:[#allocation66_spill] sm:$0xff] }
 0x738   :  { %3193 = vtanh.f32 %v4412_v23 }
 0x745   :  { %v3194_v25 = vpop.eup %3193 }
 0x746   :  { %v4415_v26 = vmul.f32 %v3194_v25, %v3192_v24 }
 0x748   :  { %2290 = vmatmul.mubr.f32.vlgmr.msra.gmra.mxu0 %v4415_v26  ;;  %2361 = vmatmul.mubr.f32.vlgmr.msra.gmra.mxu1 %v4415_v26 }
 0x749   :  { %2474 = vmatpush1.msra.mxu0 %v2453_v28  ;;  %3025 = vmatpush3.msra.mxu1 %v4383_v20  ;;  %v2432_v20 = vld [vmem:[#allocation11 + $0xc0] sm:$0xff] }
 0x74a   :  { %2475 = vmatprep.subr.mxu0 %v2451_v30  ;;  %3026 = vmatprep.subr.mxu1 %v2452_v31  ;;  %v4832_v30 = vld [vmem:[#allocation65_spill] sm:$0xff] }
 0x74b   :  { %3056 = vmatprep.mubr.f32.mxu1 %v4825_v35  ;;  %2476 = vmatpush1.msra.mxu0 %v2450_v32 }
 0x74c   :  { %3027 = vmatpush3.msra.mxu1 %v2452_v31  ;;  %2477 = vmatprep.subr.mxu0 %v2448_v44 }
 0x74d   :  { %3028 = vmatprep.subr.mxu1 %v2449_v33  ;;  %2478 = vmatpush1.msra.mxu0 %v2447_v34 }
 0x74e   :  { %3029 = vmatpush3.msra.mxu1 %v2449_v33  ;;  %2479 = vmatprep.subr.mxu0 %v2445_v36 }
 0x74f   :  { %3030 = vmatprep.subr.mxu1 %v2446_v37  ;;  %2480 = vmatpush1.msra.mxu0 %v2444_v39 }
 0x750   :  { %3031 = vmatpush3.msra.mxu1 %v2446_v37  ;;  %2481 = vmatprep.subr.mxu0 %v2442_v40  ;;  %v4833_v37 = vld [vmem:[#allocation40_spill] sm:$0xff] }
 0x751   :  { %3032 = vmatprep.subr.mxu1 %v2443_v41  ;;  %2482 = vmatpush1.msra.mxu0 %v2441_v42  ;;  %v4834_v39 = vsub.s32 0, %v4833_v37 }
 0x752   :  { %3033 = vmatpush3.msra.mxu1 %v2443_v41  ;;  %2483 = vmatprep.subr.mxu0 %v2439_v43  ;;  %v4835_v41 = vsub.s32 2, %v4833_v37  ;;  %v4836_v43 = vsub.s32 1, %v4833_v37 }
 0x753   :  { %3034 = vmatprep.subr.mxu1 %v2440_v46  ;;  %2484 = vmatpush1.msra.mxu0 %v2438_v47 }
 0x754   :  { %3035 = vmatpush3.msra.mxu1 %v2440_v46  ;;  %2485 = vmatprep.subr.mxu0 %v2436_v27 }
 0x755   :  { %3036 = vmatprep.subr.mxu1 %v2437_v45  ;;  %2486 = vmatpush1.msra.mxu0 %v2435_v53 }
 0x756   :  { %3037 = vmatpush3.msra.mxu1 %v2437_v45  ;;  %2487 = vmatprep.subr.mxu0 %v2433_v1 }
 0x757   :  { %3038 = vmatprep.subr.mxu1 %v2434_v38  ;;  %2488 = vmatpush1.msra.mxu0 %v2432_v20 }
 0x758   :  { %3039 = vmatpush3.msra.mxu1 %v2434_v38  ;;  %2489 = vmatprep.subr.mxu0 %v2430_v50 }
 0x759   :  { %3040 = vmatprep.subr.mxu1 %v2431_v2  ;;  %2490 = vmatpush1.msra.mxu0 %v2429_v59 }
 0x75a   :  { %3041 = vmatpush3.msra.mxu1 %v2431_v2  ;;  %2491 = vmatprep.subr.mxu0 %v2427_v11 }
 0x75b   :  { %3042 = vmatprep.subr.mxu1 %v2428_v61  ;;  %2492 = vmatpush1.msra.mxu0 %v2426_v48 }
 0x75c   :  { %3043 = vmatpush3.msra.mxu1 %v2428_v61  ;;  %2493 = vmatprep.subr.mxu0 %v2424_v56 }
 0x75d   :  { %3044 = vmatprep.subr.mxu1 %v2425_v49  ;;  %2494 = vmatpush1.msra.mxu0 %v2423_v51 }
 0x75e   :  { %3045 = vmatpush3.msra.mxu1 %v2425_v49  ;;  %2495 = vmatprep.subr.mxu0 %v2421_v54 }
 0x75f   :  { %3046 = vmatprep.subr.mxu1 %v2422_v29  ;;  %2496 = vmatpush1.msra.mxu0 %v2420_v0 }
 0x760   :  { %3047 = vmatpush3.msra.mxu1 %v2422_v29  ;;  %2497 = vmatprep.subr.mxu0 %v2418_v57 }
 0x761   :  { %3048 = vmatprep.subr.mxu1 %v2419_v55  ;;  %2498 = vmatpush1.msra.mxu0 %v2417_v60 }
 0x762   :  { %3049 = vmatpush3.msra.mxu1 %v2419_v55  ;;  %2499 = vmatprep.subr.mxu0 %v2415_v3 }
 0x763   :  { %3050 = vmatprep.subr.mxu1 %v2416_v4  ;;  %2500 = vmatpush1.msra.mxu0 %v2414_v52 }
 0x764   :  { %3051 = vmatpush3.msra.mxu1 %v2416_v4  ;;  %2501 = vmatprep.subr.mxu0 %v2412_v58 }
 0x765   :  { %3052 = vmatprep.subr.mxu1 %v2413_v5  ;;  %2502 = vmatpush1.msra.mxu0 %v2411_v6 }
 0x766   :  { %3053 = vmatpush3.msra.mxu1 %v2413_v5  ;;  %2503 = vmatprep.subr.mxu0 %v2409_v7 }
 0x767   :  { %3054 = vmatprep.subr.mxu1 %v2410_v8  ;;  %2504 = vmatpush1.msra.mxu0 %v2408_v9 }
 0x768   :  { %2537 = vmatprep.mubr.f32.mxu0 %v4815_v12  ;;  %3055 = vmatpush3.msra.mxu1 %v2410_v8 }
 0x769   :  { %2538 = vmatmul.mubr.f32.vlgmr.msra.gmra.mxu0 %v4825_v35  ;;  %3057 = vmatmul.mubr.f32.vlgmr.msra.gmra.mxu1 %v4826_v10  ;;  %v2456_v35 = vld [vmem:[%s4565_s6] sm:$0x7]  ;;  %s3392_s6 = smov [#allocation12]  }
 0x76a   :  { %3059 = vmatprep.mubr.f32.mxu1 %v4827_v13  ;;  %2543 = vmatprep.mubr.f32.mxu0 %v4815_v12  ;;  %v4454_v40 = vrot.slane %v2456_v35, %v4834_v39  ;;  %v4458_v42 = vrot.slane %v2456_v35, %v4835_v41  ;;  %v4462_v46 = vrot.slane %v2456_v35, %v4836_v43  ;;  %s2924_s29 = sshll.u32 %s3392_s6, 4  ;;  %s2925_s29 = int_to_ptr.vmem [resolvable:$true] %s2924_s29 }
 0x76b   :  { %s3335_s30 = scalar_lea.vmem %s2925_s29, 1024  ;;  %p3340_p2 = scmp.lt.s32.totalorder %s2925_s29, %s2925_s29 }
 0x76c   :  { %p3336_p1 = scmp.ne.s32.totalorder %s2925_s29, %s3335_s30  ;;  %p3341_p3 = scmp.lt.s32.totalorder %s3335_s30, %s3335_s30 }
 0x76d   :  { %2544 = vmatmul.mubr.f32.gmra.mxu0 %v4826_v10  ;;  %3060 = vmatmul.mubr.f32.gmra.mxu1 %v4828_v14 }
 0x76e   :  { %3062 = vmatprep.mubr.f32.mxu1 %v4301_v62  ;;  %2549 = vmatprep.mubr.f32.mxu0 %v4815_v12  ;;  %p3342_p4 = por %p3341_p3, %p3340_p2 }
 0x770   :  { %p3343_p5 = pnand %p3342_p4, %p3336_p1 }
 0x771   :  { %2550 = vmatmul.mubr.f32.gmra.mxu0 %v4827_v13  ;;  %3063 = vmatmul.mubr.f32.gmra.mxu1 %v4377_v63 }
 0x772   :  { %3065 = vmatprep.mubr.f32.mxu1 %v4415_v26  ;;  %2555 = vmatprep.mubr.f32.mxu0 %v4815_v12 }
 0x775   :  { %2556 = vmatmul.mubr.f32.gmra.mxu0 %v4828_v14 }
 0x776   :  { %2561 = vmatprep.mubr.f32.mxu0 %v4815_v12 }
 0x779   :  { %2562 = vmatmul.mubr.f32.gmra.mxu0 %v4301_v62 }
 0x77a   :  { %2567 = vmatprep.mubr.f32.mxu0 %v4815_v12 }
 0x77d   :  { %2568 = vmatmul.mubr.f32.gmra.mxu0 %v4377_v63 }
 0x77e   :  { %2573 = vmatprep.mubr.f32.mxu0 %v4815_v12 }
 0x781   :  { %2574 = vmatmul.mubr.f32.gmra.mxu0 %v4415_v26  ;;  %v4831_v26 = vld [vmem:[#allocation67_spill] sm:$0xff] }
 0x782   :  { %2579 = vmatprep.mubr.f32.mxu0 %v4815_v12 }
 0x808   :  { %v2291_v16 = vpop.f32.mrf.mxu0  ;;  %v2362_v19 = vpop.f32.mrf.mxu1 }
 0x809   :  { %v2367_v18 = vadd.f32 %v2291_v16, %v4829_v17  ;;  %v2369_v31 = vadd.f32 %v2362_v19, %v4832_v30 }
 0x80a   :  { %v2293_v62 = vpop.f32.mrf.mxu0  ;;  %v2364_v25 = vpop.f32.mrf.mxu1 }
 0x80b   :  { %v2981_v21 = vmul.f32 -1.442695, %v2367_v18  ;;  %v2368_v24 = vadd.f32 %v2293_v62, %v4830_v22  ;;  %v2370_v28 = vadd.f32 %v2364_v25, %v4831_v26 }
 0x80d   :  { %3195 = vpow2.f32 %v2981_v21  ;;  %v2982_v63 = vmul.f32 -1.442695, %v2368_v24  ;;  %v2983_v12 = vmul.f32 -1.442695, %v2370_v28 }
 0x80f   :  { %3197 = vpow2.f32 %v2982_v63 }
 0x810   :  { %3199 = vpow2.f32 %v2983_v12 }
 0x811   :  { %3201 = vtanh.f32 %v2369_v31 }
 0x81a   :  { %v3196_v32 = vpop.eup %3195 }
 0x81b   :  { %v2374_v44 = vadd.f32 1.0, %v3196_v32 }
 0x81c   :  { %v3198_v33 = vpop.eup %3197 }
 0x81d   :  { %3203 = vrcp.f32 %v2374_v44  ;;  %v2380_v34 = vadd.f32 1.0, %v3198_v33  ;;  %v3200_v36 = vpop.eup %3199 }
 0x81e   :  { %v3202_v47 = vpop.eup %3201  ;;  %v2387_v27 = vadd.f32 1.0, %v3200_v36 }
 0x81f   :  { %3205 = vrcp.f32 %v2380_v34 }
 0x820   :  { %3207 = vrcp.f32 %v2387_v27 }
 0x829   :  { %v2539_v45 = vpop.f32.mrf.mxu0  ;;  %v3058_v53 = vpop.f32.mrf.mxu1 }
 0x82a   :  { %v3204_v1 = vpop.eup %3203  ;;  %v2540_v38 = vadd.f32 %v2539_v45, %v4454_v40  ;;  %v2658_v20 = vadd.f32 %v3058_v53, %v4458_v42 }
 0x82b   :  { %v2392_v50 = vmul.f32 %v3204_v1, %v3202_v47  ;;  %v2541_v2 = vpop.f32.mrf.mxu0  ;;  %v2652_v59 = vpop.f32.mrf.mxu1 }
 0x82c   :  { %v3206_v11 = vpop.eup %3205  ;;  %v2984_v61 = vmul.f32 -1.442695, %v2540_v38  ;;  %v2993_v48 = vmul.f32 -1.442695, %v2658_v20  ;;  %v2542_v56 = vadd.f32 %v2541_v2, %v4462_v46  ;;  %v2653_v49 = vadd.f32 %v2652_v59, %v4458_v42 }
 0x82d   :  { %v2391_v51 = vmul.f32 %v3206_v11, %v4412_v23  ;;  %v2545_v54 = vpop.f32.mrf.mxu0  ;;  %v3061_v29 = vpop.f32.mrf.mxu1 }
 0x82e   :  { %3209 = vpow2.f32 %v2984_v61  ;;  %2878 = vst [vmem:[#allocation12] sm:$0xff] %v2542_v56  ;;  %v2992_v0 = vmul.f32 -1.442695, %v2653_v49  ;;  %v2546_v57 = vadd.f32 %v2545_v54, %v4454_v40  ;;  %v2668_v55 = vadd.f32 %v3061_v29, %v4458_v42  ;;  %v3208_v26 = vpop.eup %3207 }
 0x82f   :  { %3211 = vpow2.f32 %v2993_v48  ;;  %v2547_v60 = vpop.f32.mrf.mxu0  ;;  %v2662_v3 = vpop.f32.mrf.mxu1  ;;  %v2393_v4 = vadd.f32 %v2392_v50, %v2391_v51  ;;  %v4837_v29 = vlaneseq }
 0x830   :  { %3213 = vpow2.f32 %v2992_v0  ;;  %v2985_v52 = vmul.f32 -1.442695, %v2546_v57  ;;  %v2995_v58 = vmul.f32 -1.442695, %v2668_v55  ;;  %v2548_v5 = vadd.f32 %v2547_v60, %v4462_v46  ;;  %v2751_v60 = vpop.permute.xlu0 %2750 }
 0x831   :  { %v2663_v23 = vadd.f32 %v2662_v3, %v4458_v42  ;;  %v2551_v6 = vpop.f32.mrf.mxu0  ;;  %v3064_v7 = vpop.f32.mrf.mxu1  ;;  %3215 = vtanh.f32 %v2393_v4  ;;  %v4486_v0 = vand.u32 127, %v4837_v29 }
 0x832   :  { %3217 = vpow2.f32 %v2985_v52  ;;  %2879 = vst [vmem:[#allocation12 + $0x8] sm:$0xff] %v2548_v5  ;;  %v2552_v8 = vadd.f32 %v2551_v6, %v4454_v40  ;;  %v2678_v9 = vadd.f32 %v3064_v7, %v4458_v42 }
 0x833   :  { %3219 = vpow2.f32 %v2995_v58  ;;  %v2994_v10 = vmul.f32 -1.442695, %v2663_v23  ;;  %v2553_v13 = vpop.f32.mrf.mxu0  ;;  %v2672_v14 = vpop.f32.mrf.mxu1  ;;  %vm2773_vm0 = vcmp.eq.s32.totalorder %v4486_v0, %v2751_v60  ;;  %vm2853_vm1 = vcmp.eq.s32.totalorder %v4486_v0, 0 }
 0x834   :  { %v2986_v15 = vmul.f32 -1.442695, %v2552_v8  ;;  %v2997_v16 = vmul.f32 -1.442695, %v2678_v9  ;;  %v2554_v17 = vadd.f32 %v2553_v13, %v4462_v46  ;;  %v2673_v18 = vadd.f32 %v2672_v14, %v4458_v42  ;;  %v2754_v6 = vpop.permute.xlu0 %2753 }
 0x835   :  { %3221 = vpow2.f32 %v2994_v10  ;;  %v2557_v19 = vpop.f32.mrf.mxu0  ;;  %vm2774_vm2 = vcmp.eq.s32.totalorder %v4486_v0, %v2754_v6  ;;  %vm2894_vm8 = vcmp.eq.s32.totalorder %v4486_v0, 1 }
 0x836   :  { %3223 = vpow2.f32 %v2986_v15  ;;  %2880 = vst [vmem:[#allocation12 + $0x10] sm:$0xff] %v2554_v17  ;;  %v2996_v62 = vmul.f32 -1.442695, %v2673_v18  ;;  %v2558_v21 = vadd.f32 %v2557_v19, %v4454_v40  ;;  %v2757_v18 = vpop.permute.xlu1 %2756 }
 0x837   :  { %3225 = vpow2.f32 %v2997_v16  ;;  %v2559_v22 = vpop.f32.mrf.mxu0  ;;  %vm2775_vm3 = vcmp.eq.s32.totalorder %v4486_v0, %v2757_v18 }
 0x838   :  { %3227 = vpow2.f32 %v2996_v62  ;;  %v2987_v24 = vmul.f32 -1.442695, %v2558_v21  ;;  %v2560_v63 = vadd.f32 %v2559_v22, %v4462_v46 }
 0x839   :  { %v2563_v25 = vpop.f32.mrf.mxu0 }
 0x83a   :  { %2881 = vst [vmem:[#allocation12 + $0x18] sm:$0xff] %v2560_v63  ;;  %v2564_v28 = vadd.f32 %v2563_v25, %v4454_v40  ;;  %3229 = vpow2.f32 %v2987_v24 }
 0x83b   :  { %v3210_v12 = vpop.eup %3209  ;;  %v2565_v30 = vpop.f32.mrf.mxu0 }
 0x83c   :  { %v3212_v31 = vpop.eup %3211  ;;  %v2715_v32 = vadd.f32 1.0, %v3210_v12  ;;  %v2566_v44 = vadd.f32 %v2565_v30, %v4462_v46  ;;  %v2988_v35 = vmul.f32 -1.442695, %v2564_v28  ;;  %v2763_v30 = vpop.permute.xlu0 %2762 }
 0x83d   :  { %v3214_v33 = vpop.eup %3213  ;;  %v2830_v34 = vadd.f32 1.0, %v3212_v31  ;;  %v2569_v36 = vpop.f32.mrf.mxu0  ;;  %vm2777_vm4 = vcmp.eq.s32.totalorder %v4486_v0, %v2763_v30 }
 0x83e   :  { %v3216_v37 = vpop.eup %3215  ;;  %3231 = vrcp.f32 %v2715_v32  ;;  %v2829_v39 = vadd.f32 1.0, %v3214_v33  ;;  %2882 = vst [vmem:[#allocation12 + $0x20] sm:$0xff] %v2566_v44  ;;  %v2570_v41 = vadd.f32 %v2569_v36, %v4454_v40  ;;  %v2760_v31 = vpop.permute.xlu1 %2759 }
 0x83f   :  { %v3218_v43 = vpop.eup %3217  ;;  %3233 = vrcp.f32 %v2830_v34  ;;  %v2571_v47 = vpop.f32.mrf.mxu0  ;;  %v2395_v27 = vmul.f32 %v3216_v37, %v3208_v26  ;;  %vm2776_vm5 = vcmp.eq.s32.totalorder %v4486_v0, %v2760_v31 }
 0x840   :  { %v3220_v45 = vpop.eup %3219  ;;  %3235 = vrcp.f32 %v2829_v39  ;;  %v2716_v53 = vadd.f32 1.0, %v3218_v43  ;;  %v2989_v1 = vmul.f32 -1.442695, %v2570_v41  ;;  %v2572_v38 = vadd.f32 %v2571_v47, %v4462_v46  ;;  %v2769_v41 = vpop.permute.xlu0 %2768 }
 0x841   :  { %v2832_v20 = vadd.f32 1.0, %v3220_v45  ;;  %3237 = vpow2.f32 %v2988_v35  ;;  %v2575_v50 = vpop.f32.mrf.mxu0  ;;  %2580 = vmatmul.mubr.f32.gmra.mxu0 %v2395_v27  ;;  %3066 = vmatmul.mubr.f32.gmra.mxu1 %v2395_v27  ;;  %vm2779_vm7 = vcmp.eq.s32.totalorder %v4486_v0, %v2769_v41 }
 0x842   :  { %v3222_v2 = vpop.eup %3221  ;;  %3239 = vrcp.f32 %v2716_v53  ;;  %2883 = vst [vmem:[#allocation12 + $0x28] sm:$0xff] %v2572_v38  ;;  %v2576_v59 = vadd.f32 %v2575_v50, %v4454_v40  ;;  %v2766_v35 = vpop.permute.xlu1 %2765 }
 0x843   :  { %v3224_v11 = vpop.eup %3223  ;;  %3241 = vrcp.f32 %v2832_v20  ;;  %v2831_v61 = vadd.f32 1.0, %v3222_v2  ;;  %v2577_v48 = vpop.f32.mrf.mxu0  ;;  %vm2778_vm6 = vcmp.eq.s32.totalorder %v4486_v0, %v2766_v35 }
 0x844   :  { %v3226_v56 = vpop.eup %3225  ;;  %v2717_v49 = vadd.f32 1.0, %v3224_v11  ;;  %3243 = vpow2.f32 %v2989_v1  ;;  %v2578_v51 = vadd.f32 %v2577_v48, %v4462_v46  ;;  %v2990_v57 = vmul.f32 -1.442695, %v2576_v59 }
 0x845   :  { %v3228_v54 = vpop.eup %3227  ;;  %3245 = vrcp.f32 %v2831_v61  ;;  %v2834_v3 = vadd.f32 1.0, %v3226_v56 }
 0x846   :  { %v2833_v55 = vadd.f32 1.0, %v3228_v54  ;;  %2884 = vst [vmem:[#allocation12 + $0x30] sm:$0xff] %v2578_v51  ;;  %3247 = vrcp.f32 %v2717_v49  ;;  %v4508_v45 = vpop.permute.xlu1 %2771 }
 0x847   :  { %v3230_v4 = vpop.eup %3229  ;;  %3249 = vpow2.f32 %v2990_v57  ;;  %vm2780_vm9 = vcmp.eq.s32.totalorder %v4486_v0, %v4508_v45 }
 0x848   :  { %3251 = vrcp.f32 %v2833_v55  ;;  %v2718_v5 = vadd.f32 1.0, %v3230_v4 }
 0x849   :  { %3253 = vrcp.f32 %v2834_v3 }
 0x84a   :  { %3255 = vrcp.f32 %v2718_v5 }
 0x84b   :  { %v3232_v52 = vpop.eup %3231 }
 0x84c   :  { %v3234_v58 = vpop.eup %3233  ;;  %v2781_v23 = vsel %vm2773_vm0, %v3232_v52, 0.0 }
 0x84d   :  { %v3236_v7 = vpop.eup %3235  ;;  %2789 = vadd.xlane.f32.xlu0 %v2781_v23  ;;  %v2855_v15 = vsel %vm2853_vm1, %v3234_v58, 0.0 }
 0x84e   :  { %v3238_v8 = vpop.eup %3237  ;;  %v2854_v9 = vsel %vm2853_vm1, %v3236_v7, 0.0 }
 0x84f   :  { %v3240_v10 = vpop.eup %3239  ;;  %v2719_v13 = vadd.f32 1.0, %v3238_v8  ;;  %2862 = vadd.xlane.f32.xlu1 %v2854_v9 }
 0x850   :  { %v3242_v14 = vpop.eup %3241  ;;  %v2782_v19 = vsel %vm2774_vm2, %v3240_v10, 0.0 }
 0x851   :  { %v3244_v16 = vpop.eup %3243  ;;  %3257 = vrcp.f32 %v2719_v13  ;;  %2864 = vadd.xlane.f32.xlu0 %v2855_v15  ;;  %v2857_v21 = vsel %vm2853_vm1, %v3242_v14, 0.0 }
 0x852   :  { %v2720_v17 = vadd.f32 1.0, %v3244_v16  ;;  %v3246_v62 = vpop.eup %3245 }
 0x853   :  { %2791 = vadd.xlane.f32.xlu1 %v2782_v19  ;;  %v3248_v22 = vpop.eup %3247  ;;  %v2856_v63 = vsel %vm2853_vm1, %v3246_v62, 0.0 }
 0x854   :  { %3259 = vrcp.f32 %v2720_v17  ;;  %v3250_v24 = vpop.eup %3249  ;;  %v2783_v28 = vsel %vm2775_vm3, %v3248_v22, 0.0 }
 0x855   :  { %2868 = vadd.xlane.f32.xlu0 %v2857_v21  ;;  %v3252_v25 = vpop.eup %3251  ;;  %v2721_v26 = vadd.f32 1.0, %v3250_v24 }
 0x856   :  { %v3254_v12 = vpop.eup %3253  ;;  %v2858_v32 = vsel %vm2853_vm1, %v3252_v25, 0.0 }
 0x857   :  { %2866 = vadd.xlane.f32.xlu1 %v2856_v63  ;;  %3261 = vrcp.f32 %v2721_v26  ;;  %v2859_v44 = vsel %vm2853_vm1, %v3254_v12, 0.0  ;;  %v3256_v33 = vpop.eup %3255 }
 0x858   :  { %v2784_v37 = vsel %vm2776_vm5, %v3256_v33, 0.0 }
 0x859   :  { %2793 = vadd.xlane.f32.xlu0 %v2783_v28 }
 0x85b   :  { %2870 = vadd.xlane.f32.xlu1 %v2858_v32 }
 0x85d   :  { %2872 = vadd.xlane.f32.xlu0 %v2859_v44 }
 0x85e   :  { %v3258_v34 = vpop.eup %3257 }
 0x85f   :  { %v2785_v36 = vsel %vm2777_vm4, %v3258_v34, 0.0 }
 0x860   :  { %2797 = vadd.xlane.f32.xlu1 %v2785_v36 }
 0x861   :  { %v3260_v39 = vpop.eup %3259  ;;  %2795 = vadd.xlane.f32.xlu0 %v2784_v37 }
 0x862   :  { %v2786_v43 = vsel %vm2778_vm6, %v3260_v39, 0.0 }
 0x864   :  { %v3262_v47 = vpop.eup %3261 }
 0x865   :  { %2799 = vadd.xlane.f32.xlu0 %v2786_v43  ;;  %v2787_v27 = vsel %vm2779_vm7, %v3262_v47, 0.0 }
 0x866   :  { %2801 = vadd.xlane.f32.xlu1 %v2787_v27 }
 0x8d6   :  { %v2790_v53 = vpop.xlane.xlu0 %2789 }
 0x8d7   :  { %v2886_v38 = vsel %vm2853_vm1, %v2790_v53, 0.0 }
 0x8d8   :  { %v2863_v1 = vpop.xlane.xlu1 %2862 }
 0x8d9   :  { %v2895_v20 = vsel %vm2894_vm8, %v2863_v1, 0.0 }
 0x8da   :  { %v2903_v50 = vadd.f32 %v2895_v20, %v2886_v38  ;;  %v2865_v2 = vpop.xlane.xlu0 %2864 }
 0x8db   :  { %v2896_v11 = vsel %vm2894_vm8, %v2865_v2, 0.0 }
 0x8dc   :  { %2911 = vst [vmem:[#allocation13] sm:$0xff] %v2903_v50  ;;  %v2792_v59 = vpop.xlane.xlu1 %2791 }
 0x8dd   :  { %v2887_v61 = vsel %vm2853_vm1, %v2792_v59, 0.0 }
 0x8de   :  { %v2904_v48 = vadd.f32 %v2896_v11, %v2887_v61  ;;  %v2869_v56 = vpop.xlane.xlu0 %2868 }
 0x8df   :  { %v2898_v5 = vsel %vm2894_vm8, %v2869_v56, 0.0 }
 0x8e0   :  { %2912 = vst [vmem:[#allocation13 + $0x8] sm:$0xff] %v2904_v48  ;;  %v2867_v49 = vpop.xlane.xlu1 %2866 }
 0x8e1   :  { %v2897_v54 = vsel %vm2894_vm8, %v2867_v49, 0.0 }
 0x8e2   :  { %v2794_v51 = vpop.xlane.xlu0 %2793 }
 0x8e3   :  { %v2888_v29 = vsel %vm2853_vm1, %v2794_v51, 0.0 }
 0x8e4   :  { %v2905_v57 = vadd.f32 %v2897_v54, %v2888_v29  ;;  %v2871_v55 = vpop.xlane.xlu1 %2870 }
 0x8e5   :  { %v2899_v4 = vsel %vm2894_vm8, %v2871_v55, 0.0 }
 0x8e6   :  { %2913 = vst [vmem:[#allocation13 + $0x10] sm:$0xff] %v2905_v57  ;;  %v2873_v60 = vpop.xlane.xlu0 %2872 }
 0x8e7   :  { %v2900_v9 = vsel %vm2894_vm8, %v2873_v60, 0.0 }
 0x8e9   :  { %v2798_v3 = vpop.xlane.xlu1 %2797 }
 0x8ea   :  { %v2890_v52 = vsel %vm2853_vm1, %v2798_v3, 0.0  ;;  %v2796_v58 = vpop.xlane.xlu0 %2795 }
 0x8eb   :  { %v2907_v23 = vadd.f32 %v2899_v4, %v2890_v52  ;;  %v2889_v6 = vsel %vm2853_vm1, %v2796_v58, 0.0 }
 0x8ec   :  { %v2906_v7 = vadd.f32 %v2898_v5, %v2889_v6 }
 0x8ed   :  { %2915 = vst [vmem:[#allocation13 + $0x20] sm:$0xff] %v2907_v23 }
 0x8ee   :  { %2914 = vst [vmem:[#allocation13 + $0x18] sm:$0xff] %v2906_v7  ;;  %v2800_v8 = vpop.xlane.xlu0 %2799 }
 0x8ef   :  { %v2891_v10 = vsel %vm2853_vm1, %v2800_v8, 0.0 }
 0x8f0   :  { %v2908_v13 = vadd.f32 %v2900_v9, %v2891_v10 }
 0x8f2   :  { %2916 = vst [vmem:[#allocation13 + $0x28] sm:$0xff] %v2908_v13 }
 0x901   :  { %v2581_v14 = vpop.f32.mrf.mxu0  ;;  %v3067_v15 = vpop.f32.mrf.mxu1 }
 0x902   :  { %v2582_v16 = vadd.f32 %v2581_v14, %v4454_v40  ;;  %v2688_v17 = vadd.f32 %v3067_v15, %v4458_v42 }
 0x903   :  { %v2583_v18 = vpop.f32.mrf.mxu0  ;;  %v2682_v19 = vpop.f32.mrf.mxu1 }
 0x904   :  { %v2991_v62 = vmul.f32 -1.442695, %v2582_v16  ;;  %v2999_v21 = vmul.f32 -1.442695, %v2688_v17  ;;  %v2584_v22 = vadd.f32 %v2583_v18, %v4462_v46  ;;  %v2683_v24 = vadd.f32 %v2682_v19, %v4458_v42 }
 0x906   :  { %3263 = vpow2.f32 %v2991_v62  ;;  %2885 = vst [vmem:[#allocation12 + $0x38] sm:$0xff] %v2584_v22  ;;  %v2998_v63 = vmul.f32 -1.442695, %v2683_v24 }
 0x907   :  { %3265 = vpow2.f32 %v2999_v21 }
 0x908   :  { %3267 = vpow2.f32 %v2998_v63 }
 0x913   :  { %v3264_v25 = vpop.eup %3263 }
 0x914   :  { %v3266_v26 = vpop.eup %3265  ;;  %v2722_v28 = vadd.f32 1.0, %v3264_v25 }
 0x915   :  { %v3268_v12 = vpop.eup %3267  ;;  %v2836_v40 = vadd.f32 1.0, %v3266_v26 }
 0x916   :  { %3269 = vrcp.f32 %v2722_v28  ;;  %v2835_v30 = vadd.f32 1.0, %v3268_v12 }
 0x917   :  { %3271 = vrcp.f32 %v2836_v40 }
 0x918   :  { %3273 = vrcp.f32 %v2835_v30 }
 0x923   :  { %v3270_v31 = vpop.eup %3269 }
 0x924   :  { %v3272_v46 = vpop.eup %3271  ;;  %v2788_v42 = vsel %vm2780_vm9, %v3270_v31, 0.0 }
 0x925   :  { %v3274_v32 = vpop.eup %3273  ;;  %2803 = vadd.xlane.f32.xlu0 %v2788_v42  ;;  %v2861_v33 = vsel %vm2853_vm1, %v3272_v46, 0.0 }
 0x926   :  { %v2860_v44 = vsel %vm2853_vm1, %v3274_v32, 0.0 }
 0x927   :  { %2874 = vadd.xlane.f32.xlu1 %v2860_v44 }
 0x929   :  { %2876 = vadd.xlane.f32.xlu0 %v2861_v33 }
 0x92a   :  { %3346 = shalt.err (!%p3343_p5)
}
 0x92b   :  { %s3393_s9 = smov 128   ;;  %s3394_s10 = smov 8   ;;  %v2802_v34 = vpop.xlane.xlu1 %2801 }
 0x92c   :  { %2930 = dma.vmem_to_hbm [thread:$0]  %s2925_s29, 1024, %s4566_s7, [#allocation8], %s3393_s9, %s3393_s9, %s3394_s10   ;;  %v2892_v37 = vsel %vm2853_vm1, %v2802_v34, 0.0 }
 0x92d   :  { %s3395_s13 = smov [#allocation13]  }
 0x92e   :  { %s2936_s14 = sshll.u32 %s3395_s13, 4  ;;  %s2937_s14 = int_to_ptr.vmem [resolvable:$true] %s2936_s14 }
 0x92f   :  { %s3355_s7 = scalar_lea.vmem %s2937_s14, 1024  ;;  %p3360_p7 = scmp.lt.s32.totalorder %s2937_s14, %s2937_s14 }
 0x930   :  { %p3356_p6 = scmp.ne.s32.totalorder %s2937_s14, %s3355_s7  ;;  %p3361_p8 = scmp.lt.s32.totalorder %s3355_s7, %s3355_s7 }
 0x932   :  { %p3362_p9 = por %p3361_p8, %p3360_p7 }
 0x934   :  { %p3363_p10 = pnand %p3362_p9, %p3356_p6 }
 0x9ae   :  { %v2804_v35 = vpop.xlane.xlu0 %2803 }
 0x9af   :  { %v2893_v47 = vsel %vm2853_vm1, %v2804_v35, 0.0 }
 0x9b0   :  { %v2875_v36 = vpop.xlane.xlu1 %2874 }
 0x9b1   :  { %v2901_v39 = vsel %vm2894_vm8, %v2875_v36, 0.0 }
 0x9b2   :  { %v2909_v41 = vadd.f32 %v2901_v39, %v2892_v37  ;;  %v2877_v43 = vpop.xlane.xlu0 %2876 }
 0x9b3   :  { %v2902_v27 = vsel %vm2894_vm8, %v2877_v43, 0.0 }
 0x9b4   :  { %2917 = vst [vmem:[#allocation13 + $0x30] sm:$0xff] %v2909_v41  ;;  %v2910_v45 = vadd.f32 %v2902_v27, %v2893_v47 }
 0x9b6   :  { %2918 = vst [vmem:[#allocation13 + $0x38] sm:$0xff] %v2910_v45 }
 0x9b7   :  { %3366 = shalt.err (!%p3363_p10)
}
 0x9b8   :  { %2942 = dma.vmem_to_hbm [thread:$0]  %s2937_s14, 1024, %s4567_s8, [#allocation14], %s3393_s9, %s3393_s9, %s3394_s10  }
 0x9b9   :  { %3379 = dma.done.wait [#allocation8], 1024  }
 0x9ba   :  { %3380 = vsyncadd [#allocation8], 4294966272 }
 0x9bb   :  { %3381 = dma.done.wait [#allocation14], 1024  }
 0x9bc   :  { %3382 = vsyncadd [#allocation14], 4294966272 }
 0x9bd   :  { %2949 = vsyncpa [#allocation7], 1 }
 0x9be   :  { %2950 = vsyncpa [#allocation10], 1 }
 0x9bf   :  { %2951 = vsyncpa [#allocation8], 1 }
 0x9c0   :  { %2952 = vsyncpa [#allocation14], 1 }

</bundles_post_ra>
